<compile_context>
chip_gen: v7x
topology: tpu7x:2x2x1
jax: 0.10.0
libtpu: 0.0.40
codegen_flags: <defaults>
</compile_context>

<pallas_src>
import jax
import jax.numpy as jnp
from jax import lax
from jax.experimental import pallas as pl
from jax.experimental.pallas import tpu as pltpu

HIDDEN = 128     # hidden_size (lane-aligned, kept small; original uses 256)
OUTPUT = 256     # output_size (vocab)


def decoder_rnn_kernel(tok_ref,    # SMEM (T,) int32 — scalar-prefetched token ids
                       emb_ref,    # (O, H)   f32   — full embedding table, VMEM-resident
                       h0_ref,     # (1, H)   f32   — initial hidden state
                       wg_ref,     # (2H, 4H) bf16  — fused GRU weight  [x;h] -> [r,z,gi_n,gh_n]
                       bg_ref,     # (1, 4H)  f32   — fused GRU bias
                       wout_ref,   # (H, O)   bf16  — output projection (transposed)
                       bout_ref,   # (1, O)   f32
                       logp_ref,   # out (T, O) f32 — per-step log-softmax rows
                       hout_ref,   # out (1, H) f32 — final hidden state
                       xh_scr):    # scratch (1, 2H) f32 — staged [x | h] dot LHS
    H = h0_ref.shape[1]
    T = logp_ref.shape[0]

    h0 = h0_ref[...]                                   # (1, H) f32
    xh_scr[:, H:] = h0                                 # resident h half of the LHS

    def step(t, h):
        # --- embedding lookup + view(1,1,-1) + F.relu -------------------
        tok = tok_ref[t]
        x = jnp.maximum(emb_ref[pl.ds(tok, 1), :], 0.0)            # (1, H) f32
        xh_scr[:, :H] = x                                          # stage x next to h

        # --- GRU cell (single layer, single step, batch 1) --------------
        # One fused MXU dot:  [x, h] (1,2H) @ W (2H,4H)  ->  (1,4H)
        #   cols [0,2H)  : r,z pre-activations (b_ih+b_hh folded)
        #   cols [2H,3H) : gi_n = W_in x + b_in
        #   cols [3H,4H) : gh_n = W_hn h + b_hn
        xh_bf = xh_scr[...].astype(jnp.bfloat16)                   # (1, 2H) bf16
        gates = jnp.dot(xh_bf, wg_ref[...],
                        preferred_element_type=jnp.float32) + bg_ref[...]
        rz = jax.nn.sigmoid(gates[:, :2 * H])
        r = rz[:, :H]
        z = rz[:, H:]
        n = jnp.tanh(gates[:, 2 * H:3 * H] + r * gates[:, 3 * H:])
        h_new = (1.0 - z) * n + z * h                              # (1, H) f32
        xh_scr[:, H:] = h_new                                      # h half for next step

        # --- Linear + LogSoftmax(dim=1), numerically stable -------------
        logits = jnp.dot(h_new.astype(jnp.bfloat16), wout_ref[...],
                         preferred_element_type=jnp.float32) + bout_ref[...]
        m = jnp.max(logits, axis=1, keepdims=True)
        s = logits - m
        logp = s - jnp.log(jnp.sum(jnp.exp(s), axis=1, keepdims=True))
        logp_ref[pl.ds(t, 1), :] = logp                            # row t of the block
        return h_new

    # Fully unroll short decodes so the LLO scheduler can overlap step t's
    # softmax/store with step t+1's GRU push; cap unrolling for long T.
    unroll = True if T <= 32 else 8
    h_fin = lax.fori_loop(0, T, step, h0, unroll=unroll)
    hout_ref[...] = h_fin                                          # written once


@jax.jit
def decoder_rnn_forward(tokens, hidden0, params):
    """Run T teacher-forced decoder steps in one kernel invocation.

    tokens: int32 (T,); hidden0: (1, 1, H).
    Returns (log_probs (T, OUTPUT), final hidden (1, 1, H)).
    With T == 1 this is exactly the original module's forward(input, hidden).
    """
    T = tokens.shape[0]
    H, O = HIDDEN, OUTPUT
    emb, w_gru, b_gru, w_out, b_out = params
    h0 = hidden0.reshape(1, H).astype(jnp.float32)

    # Advisory cost hint: the kernel is latency-bound, not flop/byte-bound.
    cost = pl.CostEstimate(
        flops=T * (2 * (2 * H) * (4 * H) + 2 * H * O),
        transcendentals=T * (3 * H + O),
        bytes_accessed=(emb.size * 4 + w_gru.size * 2 + b_gru.size * 4
                        + w_out.size * 2 + b_out.size * 4
                        + T * 4 + 2 * H * 4 + T * O * 4),
    )

    # NOTE: for very long decodes (T in the tens of thousands) the (T, O)
    # resident output block should be chunked to respect v7x's 64 MiB VMEM;
    # at these sizes (< 1 MiB total) a single chunk is optimal everywhere.
    grid_spec = pltpu.PrefetchScalarGridSpec(
        num_scalar_prefetch=1,
        grid=(1,),
        in_specs=[
            pl.BlockSpec((O, H),         lambda i, tok: (0, 0)),   # embedding table
            pl.BlockSpec((1, H),         lambda i, tok: (0, 0)),   # h0
            pl.BlockSpec((2 * H, 4 * H), lambda i, tok: (0, 0)),   # fused GRU weight
            pl.BlockSpec((1, 4 * H),     lambda i, tok: (0, 0)),   # fused GRU bias
            pl.BlockSpec((H, O),         lambda i, tok: (0, 0)),   # W_out^T
            pl.BlockSpec((1, O),         lambda i, tok: (0, 0)),   # b_out
        ],
        out_specs=[
            pl.BlockSpec((T, O), lambda i, tok: (0, 0)),           # all log-prob rows
            pl.BlockSpec((1, H), lambda i, tok: (0, 0)),           # final hidden
        ],
        scratch_shapes=[pltpu.VMEM((1, 2 * H), jnp.float32)],
    )

    logp, h_fin = pl.pallas_call(
        decoder_rnn_kernel,
        grid_spec=grid_spec,
        out_shape=(jax.ShapeDtypeStruct((T, O), jnp.float32),
                   jax.ShapeDtypeStruct((1, H), jnp.float32)),
        compiler_params=pltpu.CompilerParams(
            dimension_semantics=("arbitrary",)),   # single sequential grid step
        cost_estimate=cost,
    )(tokens, emb, h0, w_gru, b_gru, w_out, b_out)

    return logp, h_fin.reshape(1, 1, H)


def init_torch_params(key):
    """PyTorch-layout parameters (rows = out_features), f32."""
    H, O = HIDDEN, OUTPUT
    ks = jax.random.split(key, 7)
    s = 0.05
    emb   = s * jax.random.normal(ks[0], (O, H), jnp.float32)       # nn.Embedding
    w_ih  = s * jax.random.normal(ks[1], (3 * H, H), jnp.float32)   # GRU weight_ih [r;z;n]
    w_hh  = s * jax.random.normal(ks[2], (3 * H, H), jnp.float32)   # GRU weight_hh
    b_ih  = s * jax.random.normal(ks[3], (3 * H,), jnp.float32)
    b_hh  = s * jax.random.normal(ks[4], (3 * H,), jnp.float32)
    w_out = s * jax.random.normal(ks[5], (O, H), jnp.float32)       # nn.Linear
    b_out = s * jax.random.normal(ks[6], (O,), jnp.float32)
    return (emb, w_ih, w_hh, b_ih, b_hh, w_out, b_out)


def prepare_params(torch_params):
    """Transpose / fuse / cast PyTorch-layout params for the kernel."""
    H = HIDDEN
    emb, w_ih, w_hh, b_ih, b_hh, w_out, b_out = torch_params
    w_ih_t = w_ih.T                       # (H, 3H), gate columns ordered [r, z, n]
    w_hh_t = w_hh.T
    zeros = jnp.zeros((H, H), jnp.float32)
    # Fused block weight (2H, 4H):
    #   [x, h] @ [[W_ir W_iz W_in  0  ],
    #             [W_hr W_hz  0   W_hn]]  -> [r_pre, z_pre, gi_n, gh_n]
    top = jnp.concatenate([w_ih_t[:, :2 * H], w_ih_t[:, 2 * H:], zeros], axis=1)
    bot = jnp.concatenate([w_hh_t[:, :2 * H], zeros, w_hh_t[:, 2 * H:]], axis=1)
    w_gru = jnp.concatenate([top, bot], axis=0).astype(jnp.bfloat16)   # (2H, 4H)
    b_gru = jnp.concatenate([b_ih[:2 * H] + b_hh[:2 * H],              # folded r/z bias
                             b_ih[2 * H:],                             # b_in
                             b_hh[2 * H:]]).reshape(1, 4 * H)          # b_hn
    w_o = w_out.T.astype(jnp.bfloat16)                                 # (H, O)
    b_o = b_out.reshape(1, -1)
    # Embedding kept f32: it is VMEM-resident (128 KiB) and the dynamic
    # in-kernel row gather stays on the 32-bit path.
    return (emb, w_gru, b_gru, w_o, b_o)


def reference_forward(tokens, hidden0, torch_params):
    """Pure-JAX reference mirroring the PyTorch forward, applied T times.

    Uses the same bf16 weights / f32 accumulation as the kernel so the
    comparison isolates kernel correctness from the bf16 precision choice.
    """
    H = HIDDEN
    emb, w_ih, w_hh, b_ih, b_hh, w_out, b_out = torch_params
    wih_bf = w_ih.T.astype(jnp.bfloat16)
    whh_bf = w_hh.T.astype(jnp.bfloat16)
    wout_bf = w_out.T.astype(jnp.bfloat16)
    h = hidden0.reshape(1, H)
    logps = []
    for t in range(tokens.shape[0]):
        x = jnp.maximum(emb[tokens[t]].reshape(1, H), 0.0)
        gi = jnp.dot(x.astype(jnp.bfloat16), wih_bf,
                     preferred_element_type=jnp.float32) + b_ih.reshape(1, -1)
        gh = jnp.dot(h.astype(jnp.bfloat16), whh_bf,
                     preferred_element_type=jnp.float32) + b_hh.reshape(1, -1)
        r = jax.nn.sigmoid(gi[:, :H] + gh[:, :H])
        z = jax.nn.sigmoid(gi[:, H:2 * H] + gh[:, H:2 * H])
        n = jnp.tanh(gi[:, 2 * H:] + r * gh[:, 2 * H:])
        h = (1.0 - z) * n + z * h
        logits = jnp.dot(h.astype(jnp.bfloat16), wout_bf,
                         preferred_element_type=jnp.float32) + b_out.reshape(1, -1)
        logps.append(jax.nn.log_softmax(logits, axis=1))
    return jnp.concatenate(logps, axis=0), h.reshape(1, 1, H)


if __name__ == "__main__":
    key = jax.random.PRNGKey(0)
    pkey, tkey = jax.random.split(key)
    torch_params = init_torch_params(pkey)
    params = prepare_params(torch_params)

    # A short teacher-forced token sequence; initHidden() -> zeros(1, 1, H).
    T = 8
    tokens = jax.random.randint(tkey, (T,), 0, OUTPUT, dtype=jnp.int32)
    hidden0 = jnp.zeros((1, 1, HIDDEN), jnp.float32)

    # Multi-step decode: one kernel launch, loop carried in vregs.
    logp, hidden_T = decoder_rnn_forward(tokens, hidden0, params)
    jax.block_until_ready((logp, hidden_T))

    ref_logp, ref_hidden = reference_forward(tokens, hidden0, torch_params)
    assert logp.shape == (T, OUTPUT) and hidden_T.shape == (1, 1, HIDDEN)
    assert jnp.allclose(logp, ref_logp, atol=1e-4, rtol=1e-4)
    assert jnp.allclose(hidden_T, ref_hidden, atol=1e-4, rtol=1e-4)

    # Single-step call: exactly the original module's forward(input, hidden).
    logp1, hidden1 = decoder_rnn_forward(tokens[:1], hidden0, params)
    jax.block_until_ready((logp1, hidden1))
    ref1, refh1 = reference_forward(tokens[:1], hidden0, torch_params)
    assert jnp.allclose(logp1, ref1, atol=1e-4, rtol=1e-4)
    assert jnp.allclose(hidden1, refh1, atol=1e-4, rtol=1e-4)

    print("KERNEL_OK")
</pallas_src>

<mosaic_0001>
module attributes {stable_mosaic.version = 11 : i64} {
  func.func @decoder_rnn_kernel(%arg0: i32, %arg1: memref<8xi32, #tpu.memory_space<smem>>, %arg2: memref<256x128xf32, #tpu.memory_space<vmem>>, %arg3: memref<1x128xf32, #tpu.memory_space<vmem>>, %arg4: memref<256x512xbf16, #tpu.memory_space<vmem>>, %arg5: memref<1x512xf32, #tpu.memory_space<vmem>>, %arg6: memref<128x256xbf16, #tpu.memory_space<vmem>>, %arg7: memref<1x256xf32, #tpu.memory_space<vmem>>, %arg8: memref<8x256xf32, #tpu.memory_space<vmem>>, %arg9: memref<1x128xf32, #tpu.memory_space<vmem>>, %arg10: memref<1x256xf32, #tpu.memory_space<vmem>>) attributes {dimension_semantics = [#tpu.dimension_semantics<arbitrary>], iteration_bounds = array<i64: 1>, scalar_prefetch = 1 : i64, scratch_operands = 1 : i64, tpu.core_type = #tpu.core_type<tc>, window_params = [{pipeline_mode = #tpu.pipeline_mode<synchronous>, transform_indices = @transform_0, window_bounds = array<i64: 256, 128>}, {pipeline_mode = #tpu.pipeline_mode<synchronous>, transform_indices = @transform_1, window_bounds = array<i64: 1, 128>}, {pipeline_mode = #tpu.pipeline_mode<synchronous>, transform_indices = @transform_2, window_bounds = array<i64: 256, 512>}, {pipeline_mode = #tpu.pipeline_mode<synchronous>, transform_indices = @transform_3, window_bounds = array<i64: 1, 512>}, {pipeline_mode = #tpu.pipeline_mode<synchronous>, transform_indices = @transform_4, window_bounds = array<i64: 128, 256>}, {pipeline_mode = #tpu.pipeline_mode<synchronous>, transform_indices = @transform_5, window_bounds = array<i64: 1, 256>}, {pipeline_mode = #tpu.pipeline_mode<synchronous>, transform_indices = @transform_6, window_bounds = array<i64: 8, 256>}, {pipeline_mode = #tpu.pipeline_mode<synchronous>, transform_indices = @transform_7, window_bounds = array<i64: 1, 128>}]} {
    %c0 = arith.constant 0 : index
    %c0_0 = arith.constant 0 : index
    %0 = vector.load %arg3[%c0, %c0_0] : memref<1x128xf32, #tpu.memory_space<vmem>>, vector<1x128xf32>
    %c0_1 = arith.constant 0 : index
    %c128 = arith.constant 128 : index
    %1 = vector.load %arg10[%c0_1, %c128] : memref<1x256xf32, #tpu.memory_space<vmem>>, vector<1x128xf32>
    tpu.vector_store %arg10[%c0_1, %c128], %0 {strides = array<i32>} : memref<1x256xf32, #tpu.memory_space<vmem>>, vector<1x128xf32>,
    %c0_i32 = arith.constant 0 : i32
    %2 = arith.index_cast %c0_i32 : i32 to index
    %3 = memref.load %arg1[%2] : memref<8xi32, #tpu.memory_space<smem>>
    %4 = arith.index_cast %3 : i32 to index
    %c0_2 = arith.constant 0 : index
    %5 = vector.load %arg2[%4, %c0_2] : memref<256x128xf32, #tpu.memory_space<vmem>>, vector<1x128xf32>
    %cst = arith.constant 0.000000e+00 : f32
    %6 = vector.broadcast %cst : f32 to vector<1x128xf32>
    %7 = arith.maximumf %5, %6 : vector<1x128xf32>
    %c0_3 = arith.constant 0 : index
    %c0_4 = arith.constant 0 : index
    %8 = vector.load %arg10[%c0_3, %c0_4] : memref<1x256xf32, #tpu.memory_space<vmem>>, vector<1x128xf32>
    tpu.vector_store %arg10[%c0_3, %c0_4], %7 {strides = array<i32>} : memref<1x256xf32, #tpu.memory_space<vmem>>, vector<1x128xf32>,
    %c0_5 = arith.constant 0 : index
    %c0_6 = arith.constant 0 : index
    %9 = vector.load %arg10[%c0_5, %c0_6] : memref<1x256xf32, #tpu.memory_space<vmem>>, vector<1x256xf32>
    %10 = arith.truncf %9 : vector<1x256xf32> to vector<1x256xbf16>
    %c0_7 = arith.constant 0 : index
    %c0_8 = arith.constant 0 : index
    %11 = vector.load %arg4[%c0_7, %c0_8] : memref<256x512xbf16, #tpu.memory_space<vmem>>, vector<256x512xbf16>
    %cst_9 = arith.constant dense<0.000000e+00> : vector<1x512xf32>
    %12 = tpu.matmul %10, %11, %cst_9 {dimension_numbers = #tpu.dot_dimension_numbers<[1], [0], [0], [1], [0, 0, 1, 1], [], []>} : vector<1x256xbf16>, vector<256x512xbf16>, vector<1x512xf32> -> vector<1x512xf32>
    %c0_10 = arith.constant 0 : index
    %c0_11 = arith.constant 0 : index
    %13 = vector.load %arg5[%c0_10, %c0_11] : memref<1x512xf32, #tpu.memory_space<vmem>>, vector<1x512xf32>
    %14 = arith.addf %12, %13 : vector<1x512xf32>
    %15 = vector.extract_strided_slice %14 {offsets = [0, 0], sizes = [1, 256], strides = [1, 1]} : vector<1x512xf32> to vector<1x256xf32>
    %16 = arith.negf %15 : vector<1x256xf32>
    %17 = math.exp %16 : vector<1x256xf32>
    %cst_12 = arith.constant 1.000000e+00 : f32
    %18 = vector.broadcast %cst_12 : f32 to vector<1x256xf32>
    %19 = arith.addf %18, %17 : vector<1x256xf32>
    %20 = arith.divf %18, %19 : vector<1x256xf32>
    %21 = vector.extract_strided_slice %20 {offsets = [0, 0], sizes = [1, 128], strides = [1, 1]} : vector<1x256xf32> to vector<1x128xf32>
    %22 = vector.extract_strided_slice %20 {offsets = [0, 128], sizes = [1, 128], strides = [1, 1]} : vector<1x256xf32> to vector<1x128xf32>
    %23 = vector.extract_strided_slice %14 {offsets = [0, 256], sizes = [1, 128], strides = [1, 1]} : vector<1x512xf32> to vector<1x128xf32>
    %24 = vector.extract_strided_slice %14 {offsets = [0, 384], sizes = [1, 128], strides = [1, 1]} : vector<1x512xf32> to vector<1x128xf32>
    %25 = arith.mulf %21, %24 : vector<1x128xf32>
    %26 = arith.addf %23, %25 : vector<1x128xf32>
    %27 = math.tanh %26 : vector<1x128xf32>
    %cst_13 = arith.constant 1.000000e+00 : f32
    %28 = vector.broadcast %cst_13 : f32 to vector<1x128xf32>
    %29 = arith.subf %28, %22 : vector<1x128xf32>
    %30 = arith.mulf %29, %27 : vector<1x128xf32>
    %31 = arith.mulf %22, %0 : vector<1x128xf32>
    %32 = arith.addf %30, %31 : vector<1x128xf32>
    %c0_14 = arith.constant 0 : index
    %c128_15 = arith.constant 128 : index
    %33 = vector.load %arg10[%c0_14, %c128_15] : memref<1x256xf32, #tpu.memory_space<vmem>>, vector<1x128xf32>
    tpu.vector_store %arg10[%c0_14, %c128_15], %32 {strides = array<i32>} : memref<1x256xf32, #tpu.memory_space<vmem>>, vector<1x128xf32>,
    %34 = arith.truncf %32 : vector<1x128xf32> to vector<1x128xbf16>
    %c0_16 = arith.constant 0 : index
    %c0_17 = arith.constant 0 : index
    %35 = vector.load %arg6[%c0_16, %c0_17] : memref<128x256xbf16, #tpu.memory_space<vmem>>, vector<128x256xbf16>
    %cst_18 = arith.constant dense<0.000000e+00> : vector<1x256xf32>
    %36 = tpu.matmul %34, %35, %cst_18 {dimension_numbers = #tpu.dot_dimension_numbers<[1], [0], [0], [1], [0, 0, 1, 1], [], []>} : vector<1x128xbf16>, vector<128x256xbf16>, vector<1x256xf32> -> vector<1x256xf32>
    %c0_19 = arith.constant 0 : index
    %c0_20 = arith.constant 0 : index
    %37 = vector.load %arg7[%c0_19, %c0_20] : memref<1x256xf32, #tpu.memory_space<vmem>>, vector<1x256xf32>
    %38 = arith.addf %36, %37 : vector<1x256xf32>
    %cst_21 = arith.constant dense<0xFF800000> : vector<1xf32>
    %39 = vector.multi_reduction <maximumf>, %38, %cst_21 [1] : vector<1x256xf32> to vector<1xf32>
    %40 = vector.shape_cast %39 : vector<1xf32> to vector<1x1xf32>
    %41 = vector.broadcast %40 : vector<1x1xf32> to vector<1x256xf32>
    %42 = arith.subf %38, %41 : vector<1x256xf32>
    %43 = math.exp %42 : vector<1x256xf32>
    %cst_22 = arith.constant dense<0.000000e+00> : vector<1xf32>
    %44 = vector.multi_reduction <add>, %43, %cst_22 [1] : vector<1x256xf32> to vector<1xf32>
    %45 = vector.shape_cast %44 : vector<1xf32> to vector<1x1xf32>
    %46 = math.log %45 : vector<1x1xf32>
    %47 = vector.broadcast %46 : vector<1x1xf32> to vector<1x256xf32>
    %48 = arith.subf %42, %47 : vector<1x256xf32>
    %49 = arith.index_cast %c0_i32 : i32 to index
    %c0_23 = arith.constant 0 : index
    %50 = vector.load %arg8[%49, %c0_23] : memref<8x256xf32, #tpu.memory_space<vmem>>, vector<1x256xf32>
    tpu.vector_store %arg8[%49, %c0_23], %48 {strides = array<i32>} : memref<8x256xf32, #tpu.memory_space<vmem>>, vector<1x256xf32>,
    %c1_i32 = arith.constant 1 : i32
    %51 = arith.index_cast %c1_i32 : i32 to index
    %52 = memref.load %arg1[%51] : memref<8xi32, #tpu.memory_space<smem>>
    %53 = arith.index_cast %52 : i32 to index
    %c0_24 = arith.constant 0 : index
    %54 = vector.load %arg2[%53, %c0_24] : memref<256x128xf32, #tpu.memory_space<vmem>>, vector<1x128xf32>
    %cst_25 = arith.constant 0.000000e+00 : f32
    %55 = vector.broadcast %cst_25 : f32 to vector<1x128xf32>
    %56 = arith.maximumf %54, %55 : vector<1x128xf32>
    %c0_26 = arith.constant 0 : index
    %c0_27 = arith.constant 0 : index
    %57 = vector.load %arg10[%c0_26, %c0_27] : memref<1x256xf32, #tpu.memory_space<vmem>>, vector<1x128xf32>
    tpu.vector_store %arg10[%c0_26, %c0_27], %56 {strides = array<i32>} : memref<1x256xf32, #tpu.memory_space<vmem>>, vector<1x128xf32>,
    %c0_28 = arith.constant 0 : index
    %c0_29 = arith.constant 0 : index
    %58 = vector.load %arg10[%c0_28, %c0_29] : memref<1x256xf32, #tpu.memory_space<vmem>>, vector<1x256xf32>
    %59 = arith.truncf %58 : vector<1x256xf32> to vector<1x256xbf16>
    %c0_30 = arith.constant 0 : index
    %c0_31 = arith.constant 0 : index
    %60 = vector.load %arg4[%c0_30, %c0_31] : memref<256x512xbf16, #tpu.memory_space<vmem>>, vector<256x512xbf16>
    %cst_32 = arith.constant dense<0.000000e+00> : vector<1x512xf32>
    %61 = tpu.matmul %59, %60, %cst_32 {dimension_numbers = #tpu.dot_dimension_numbers<[1], [0], [0], [1], [0, 0, 1, 1], [], []>} : vector<1x256xbf16>, vector<256x512xbf16>, vector<1x512xf32> -> vector<1x512xf32>
    %c0_33 = arith.constant 0 : index
    %c0_34 = arith.constant 0 : index
    %62 = vector.load %arg5[%c0_33, %c0_34] : memref<1x512xf32, #tpu.memory_space<vmem>>, vector<1x512xf32>
    %63 = arith.addf %61, %62 : vector<1x512xf32>
    %64 = vector.extract_strided_slice %63 {offsets = [0, 0], sizes = [1, 256], strides = [1, 1]} : vector<1x512xf32> to vector<1x256xf32>
    %65 = arith.negf %64 : vector<1x256xf32>
    %66 = math.exp %65 : vector<1x256xf32>
    %cst_35 = arith.constant 1.000000e+00 : f32
    %67 = vector.broadcast %cst_35 : f32 to vector<1x256xf32>
    %68 = arith.addf %67, %66 : vector<1x256xf32>
    %69 = arith.divf %67, %68 : vector<1x256xf32>
    %70 = vector.extract_strided_slice %69 {offsets = [0, 0], sizes = [1, 128], strides = [1, 1]} : vector<1x256xf32> to vector<1x128xf32>
    %71 = vector.extract_strided_slice %69 {offsets = [0, 128], sizes = [1, 128], strides = [1, 1]} : vector<1x256xf32> to vector<1x128xf32>
    %72 = vector.extract_strided_slice %63 {offsets = [0, 256], sizes = [1, 128], strides = [1, 1]} : vector<1x512xf32> to vector<1x128xf32>
    %73 = vector.extract_strided_slice %63 {offsets = [0, 384], sizes = [1, 128], strides = [1, 1]} : vector<1x512xf32> to vector<1x128xf32>
    %74 = arith.mulf %70, %73 : vector<1x128xf32>
    %75 = arith.addf %72, %74 : vector<1x128xf32>
    %76 = math.tanh %75 : vector<1x128xf32>
    %cst_36 = arith.constant 1.000000e+00 : f32
    %77 = vector.broadcast %cst_36 : f32 to vector<1x128xf32>
    %78 = arith.subf %77, %71 : vector<1x128xf32>
    %79 = arith.mulf %78, %76 : vector<1x128xf32>
    %80 = arith.mulf %71, %32 : vector<1x128xf32>
    %81 = arith.addf %79, %80 : vector<1x128xf32>
    %c0_37 = arith.constant 0 : index
    %c128_38 = arith.constant 128 : index
    %82 = vector.load %arg10[%c0_37, %c128_38] : memref<1x256xf32, #tpu.memory_space<vmem>>, vector<1x128xf32>
    tpu.vector_store %arg10[%c0_37, %c128_38], %81 {strides = array<i32>} : memref<1x256xf32, #tpu.memory_space<vmem>>, vector<1x128xf32>,
    %83 = arith.truncf %81 : vector<1x128xf32> to vector<1x128xbf16>
    %c0_39 = arith.constant 0 : index
    %c0_40 = arith.constant 0 : index
    %84 = vector.load %arg6[%c0_39, %c0_40] : memref<128x256xbf16, #tpu.memory_space<vmem>>, vector<128x256xbf16>
    %cst_41 = arith.constant dense<0.000000e+00> : vector<1x256xf32>
    %85 = tpu.matmul %83, %84, %cst_41 {dimension_numbers = #tpu.dot_dimension_numbers<[1], [0], [0], [1], [0, 0, 1, 1], [], []>} : vector<1x128xbf16>, vector<128x256xbf16>, vector<1x256xf32> -> vector<1x256xf32>
    %c0_42 = arith.constant 0 : index
    %c0_43 = arith.constant 0 : index
    %86 = vector.load %arg7[%c0_42, %c0_43] : memref<1x256xf32, #tpu.memory_space<vmem>>, vector<1x256xf32>
    %87 = arith.addf %85, %86 : vector<1x256xf32>
    %cst_44 = arith.constant dense<0xFF800000> : vector<1xf32>
    %88 = vector.multi_reduction <maximumf>, %87, %cst_44 [1] : vector<1x256xf32> to vector<1xf32>
    %89 = vector.shape_cast %88 : vector<1xf32> to vector<1x1xf32>
    %90 = vector.broadcast %89 : vector<1x1xf32> to vector<1x256xf32>
    %91 = arith.subf %87, %90 : vector<1x256xf32>
    %92 = math.exp %91 : vector<1x256xf32>
    %cst_45 = arith.constant dense<0.000000e+00> : vector<1xf32>
    %93 = vector.multi_reduction <add>, %92, %cst_45 [1] : vector<1x256xf32> to vector<1xf32>
    %94 = vector.shape_cast %93 : vector<1xf32> to vector<1x1xf32>
    %95 = math.log %94 : vector<1x1xf32>
    %96 = vector.broadcast %95 : vector<1x1xf32> to vector<1x256xf32>
    %97 = arith.subf %91, %96 : vector<1x256xf32>
    %98 = arith.index_cast %c1_i32 : i32 to index
    %c0_46 = arith.constant 0 : index
    %99 = vector.load %arg8[%98, %c0_46] : memref<8x256xf32, #tpu.memory_space<vmem>>, vector<1x256xf32>
    tpu.vector_store %arg8[%98, %c0_46], %97 {strides = array<i32>} : memref<8x256xf32, #tpu.memory_space<vmem>>, vector<1x256xf32>,
    %c2_i32 = arith.constant 2 : i32
    %100 = arith.index_cast %c2_i32 : i32 to index
    %101 = memref.load %arg1[%100] : memref<8xi32, #tpu.memory_space<smem>>
    %102 = arith.index_cast %101 : i32 to index
    %c0_47 = arith.constant 0 : index
    %103 = vector.load %arg2[%102, %c0_47] : memref<256x128xf32, #tpu.memory_space<vmem>>, vector<1x128xf32>
    %cst_48 = arith.constant 0.000000e+00 : f32
    %104 = vector.broadcast %cst_48 : f32 to vector<1x128xf32>
    %105 = arith.maximumf %103, %104 : vector<1x128xf32>
    %c0_49 = arith.constant 0 : index
    %c0_50 = arith.constant 0 : index
    %106 = vector.load %arg10[%c0_49, %c0_50] : memref<1x256xf32, #tpu.memory_space<vmem>>, vector<1x128xf32>
    tpu.vector_store %arg10[%c0_49, %c0_50], %105 {strides = array<i32>} : memref<1x256xf32, #tpu.memory_space<vmem>>, vector<1x128xf32>,
    %c0_51 = arith.constant 0 : index
    %c0_52 = arith.constant 0 : index
    %107 = vector.load %arg10[%c0_51, %c0_52] : memref<1x256xf32, #tpu.memory_space<vmem>>, vector<1x256xf32>
    %108 = arith.truncf %107 : vector<1x256xf32> to vector<1x256xbf16>
    %c0_53 = arith.constant 0 : index
    %c0_54 = arith.constant 0 : index
    %109 = vector.load %arg4[%c0_53, %c0_54] : memref<256x512xbf16, #tpu.memory_space<vmem>>, vector<256x512xbf16>
    %cst_55 = arith.constant dense<0.000000e+00> : vector<1x512xf32>
    %110 = tpu.matmul %108, %109, %cst_55 {dimension_numbers = #tpu.dot_dimension_numbers<[1], [0], [0], [1], [0, 0, 1, 1], [], []>} : vector<1x256xbf16>, vector<256x512xbf16>, vector<1x512xf32> -> vector<1x512xf32>
    %c0_56 = arith.constant 0 : index
    %c0_57 = arith.constant 0 : index
    %111 = vector.load %arg5[%c0_56, %c0_57] : memref<1x512xf32, #tpu.memory_space<vmem>>, vector<1x512xf32>
    %112 = arith.addf %110, %111 : vector<1x512xf32>
    %113 = vector.extract_strided_slice %112 {offsets = [0, 0], sizes = [1, 256], strides = [1, 1]} : vector<1x512xf32> to vector<1x256xf32>
    %114 = arith.negf %113 : vector<1x256xf32>
    %115 = math.exp %114 : vector<1x256xf32>
    %cst_58 = arith.constant 1.000000e+00 : f32
    %116 = vector.broadcast %cst_58 : f32 to vector<1x256xf32>
    %117 = arith.addf %116, %115 : vector<1x256xf32>
    %118 = arith.divf %116, %117 : vector<1x256xf32>
    %119 = vector.extract_strided_slice %118 {offsets = [0, 0], sizes = [1, 128], strides = [1, 1]} : vector<1x256xf32> to vector<1x128xf32>
    %120 = vector.extract_strided_slice %118 {offsets = [0, 128], sizes = [1, 128], strides = [1, 1]} : vector<1x256xf32> to vector<1x128xf32>
    %121 = vector.extract_strided_slice %112 {offsets = [0, 256], sizes = [1, 128], strides = [1, 1]} : vector<1x512xf32> to vector<1x128xf32>
    %122 = vector.extract_strided_slice %112 {offsets = [0, 384], sizes = [1, 128], strides = [1, 1]} : vector<1x512xf32> to vector<1x128xf32>
    %123 = arith.mulf %119, %122 : vector<1x128xf32>
    %124 = arith.addf %121, %123 : vector<1x128xf32>
    %125 = math.tanh %124 : vector<1x128xf32>
    %cst_59 = arith.constant 1.000000e+00 : f32
    %126 = vector.broadcast %cst_59 : f32 to vector<1x128xf32>
    %127 = arith.subf %126, %120 : vector<1x128xf32>
    %128 = arith.mulf %127, %125 : vector<1x128xf32>
    %129 = arith.mulf %120, %81 : vector<1x128xf32>
    %130 = arith.addf %128, %129 : vector<1x128xf32>
    %c0_60 = arith.constant 0 : index
    %c128_61 = arith.constant 128 : index
    %131 = vector.load %arg10[%c0_60, %c128_61] : memref<1x256xf32, #tpu.memory_space<vmem>>, vector<1x128xf32>
    tpu.vector_store %arg10[%c0_60, %c128_61], %130 {strides = array<i32>} : memref<1x256xf32, #tpu.memory_space<vmem>>, vector<1x128xf32>,
    %132 = arith.truncf %130 : vector<1x128xf32> to vector<1x128xbf16>
    %c0_62 = arith.constant 0 : index
    %c0_63 = arith.constant 0 : index
    %133 = vector.load %arg6[%c0_62, %c0_63] : memref<128x256xbf16, #tpu.memory_space<vmem>>, vector<128x256xbf16>
    %cst_64 = arith.constant dense<0.000000e+00> : vector<1x256xf32>
    %134 = tpu.matmul %132, %133, %cst_64 {dimension_numbers = #tpu.dot_dimension_numbers<[1], [0], [0], [1], [0, 0, 1, 1], [], []>} : vector<1x128xbf16>, vector<128x256xbf16>, vector<1x256xf32> -> vector<1x256xf32>
    %c0_65 = arith.constant 0 : index
    %c0_66 = arith.constant 0 : index
    %135 = vector.load %arg7[%c0_65, %c0_66] : memref<1x256xf32, #tpu.memory_space<vmem>>, vector<1x256xf32>
    %136 = arith.addf %134, %135 : vector<1x256xf32>
    %cst_67 = arith.constant dense<0xFF800000> : vector<1xf32>
    %137 = vector.multi_reduction <maximumf>, %136, %cst_67 [1] : vector<1x256xf32> to vector<1xf32>
    %138 = vector.shape_cast %137 : vector<1xf32> to vector<1x1xf32>
    %139 = vector.broadcast %138 : vector<1x1xf32> to vector<1x256xf32>
    %140 = arith.subf %136, %139 : vector<1x256xf32>
    %141 = math.exp %140 : vector<1x256xf32>
    %cst_68 = arith.constant dense<0.000000e+00> : vector<1xf32>
    %142 = vector.multi_reduction <add>, %141, %cst_68 [1] : vector<1x256xf32> to vector<1xf32>
    %143 = vector.shape_cast %142 : vector<1xf32> to vector<1x1xf32>
    %144 = math.log %143 : vector<1x1xf32>
    %145 = vector.broadcast %144 : vector<1x1xf32> to vector<1x256xf32>
    %146 = arith.subf %140, %145 : vector<1x256xf32>
    %147 = arith.index_cast %c2_i32 : i32 to index
    %c0_69 = arith.constant 0 : index
    %148 = vector.load %arg8[%147, %c0_69] : memref<8x256xf32, #tpu.memory_space<vmem>>, vector<1x256xf32>
    tpu.vector_store %arg8[%147, %c0_69], %146 {strides = array<i32>} : memref<8x256xf32, #tpu.memory_space<vmem>>, vector<1x256xf32>,
    %c3_i32 = arith.constant 3 : i32
    %149 = arith.index_cast %c3_i32 : i32 to index
    %150 = memref.load %arg1[%149] : memref<8xi32, #tpu.memory_space<smem>>
    %151 = arith.index_cast %150 : i32 to index
    %c0_70 = arith.constant 0 : index
    %152 = vector.load %arg2[%151, %c0_70] : memref<256x128xf32, #tpu.memory_space<vmem>>, vector<1x128xf32>
    %cst_71 = arith.constant 0.000000e+00 : f32
    %153 = vector.broadcast %cst_71 : f32 to vector<1x128xf32>
    %154 = arith.maximumf %152, %153 : vector<1x128xf32>
    %c0_72 = arith.constant 0 : index
    %c0_73 = arith.constant 0 : index
    %155 = vector.load %arg10[%c0_72, %c0_73] : memref<1x256xf32, #tpu.memory_space<vmem>>, vector<1x128xf32>
    tpu.vector_store %arg10[%c0_72, %c0_73], %154 {strides = array<i32>} : memref<1x256xf32, #tpu.memory_space<vmem>>, vector<1x128xf32>,
    %c0_74 = arith.constant 0 : index
    %c0_75 = arith.constant 0 : index
    %156 = vector.load %arg10[%c0_74, %c0_75] : memref<1x256xf32, #tpu.memory_space<vmem>>, vector<1x256xf32>
    %157 = arith.truncf %156 : vector<1x256xf32> to vector<1x256xbf16>
    %c0_76 = arith.constant 0 : index
    %c0_77 = arith.constant 0 : index
    %158 = vector.load %arg4[%c0_76, %c0_77] : memref<256x512xbf16, #tpu.memory_space<vmem>>, vector<256x512xbf16>
    %cst_78 = arith.constant dense<0.000000e+00> : vector<1x512xf32>
    %159 = tpu.matmul %157, %158, %cst_78 {dimension_numbers = #tpu.dot_dimension_numbers<[1], [0], [0], [1], [0, 0, 1, 1], [], []>} : vector<1x256xbf16>, vector<256x512xbf16>, vector<1x512xf32> -> vector<1x512xf32>
    %c0_79 = arith.constant 0 : index
    %c0_80 = arith.constant 0 : index
    %160 = vector.load %arg5[%c0_79, %c0_80] : memref<1x512xf32, #tpu.memory_space<vmem>>, vector<1x512xf32>
    %161 = arith.addf %159, %160 : vector<1x512xf32>
    %162 = vector.extract_strided_slice %161 {offsets = [0, 0], sizes = [1, 256], strides = [1, 1]} : vector<1x512xf32> to vector<1x256xf32>
    %163 = arith.negf %162 : vector<1x256xf32>
    %164 = math.exp %163 : vector<1x256xf32>
    %cst_81 = arith.constant 1.000000e+00 : f32
    %165 = vector.broadcast %cst_81 : f32 to vector<1x256xf32>
    %166 = arith.addf %165, %164 : vector<1x256xf32>
    %167 = arith.divf %165, %166 : vector<1x256xf32>
    %168 = vector.extract_strided_slice %167 {offsets = [0, 0], sizes = [1, 128], strides = [1, 1]} : vector<1x256xf32> to vector<1x128xf32>
    %169 = vector.extract_strided_slice %167 {offsets = [0, 128], sizes = [1, 128], strides = [1, 1]} : vector<1x256xf32> to vector<1x128xf32>
    %170 = vector.extract_strided_slice %161 {offsets = [0, 256], sizes = [1, 128], strides = [1, 1]} : vector<1x512xf32> to vector<1x128xf32>
    %171 = vector.extract_strided_slice %161 {offsets = [0, 384], sizes = [1, 128], strides = [1, 1]} : vector<1x512xf32> to vector<1x128xf32>
    %172 = arith.mulf %168, %171 : vector<1x128xf32>
    %173 = arith.addf %170, %172 : vector<1x128xf32>
    %174 = math.tanh %173 : vector<1x128xf32>
    %cst_82 = arith.constant 1.000000e+00 : f32
    %175 = vector.broadcast %cst_82 : f32 to vector<1x128xf32>
    %176 = arith.subf %175, %169 : vector<1x128xf32>
    %177 = arith.mulf %176, %174 : vector<1x128xf32>
    %178 = arith.mulf %169, %130 : vector<1x128xf32>
    %179 = arith.addf %177, %178 : vector<1x128xf32>
    %c0_83 = arith.constant 0 : index
    %c128_84 = arith.constant 128 : index
    %180 = vector.load %arg10[%c0_83, %c128_84] : memref<1x256xf32, #tpu.memory_space<vmem>>, vector<1x128xf32>
    tpu.vector_store %arg10[%c0_83, %c128_84], %179 {strides = array<i32>} : memref<1x256xf32, #tpu.memory_space<vmem>>, vector<1x128xf32>,
    %181 = arith.truncf %179 : vector<1x128xf32> to vector<1x128xbf16>
    %c0_85 = arith.constant 0 : index
    %c0_86 = arith.constant 0 : index
    %182 = vector.load %arg6[%c0_85, %c0_86] : memref<128x256xbf16, #tpu.memory_space<vmem>>, vector<128x256xbf16>
    %cst_87 = arith.constant dense<0.000000e+00> : vector<1x256xf32>
    %183 = tpu.matmul %181, %182, %cst_87 {dimension_numbers = #tpu.dot_dimension_numbers<[1], [0], [0], [1], [0, 0, 1, 1], [], []>} : vector<1x128xbf16>, vector<128x256xbf16>, vector<1x256xf32> -> vector<1x256xf32>
    %c0_88 = arith.constant 0 : index
    %c0_89 = arith.constant 0 : index
    %184 = vector.load %arg7[%c0_88, %c0_89] : memref<1x256xf32, #tpu.memory_space<vmem>>, vector<1x256xf32>
    %185 = arith.addf %183, %184 : vector<1x256xf32>
    %cst_90 = arith.constant dense<0xFF800000> : vector<1xf32>
    %186 = vector.multi_reduction <maximumf>, %185, %cst_90 [1] : vector<1x256xf32> to vector<1xf32>
    %187 = vector.shape_cast %186 : vector<1xf32> to vector<1x1xf32>
    %188 = vector.broadcast %187 : vector<1x1xf32> to vector<1x256xf32>
    %189 = arith.subf %185, %188 : vector<1x256xf32>
    %190 = math.exp %189 : vector<1x256xf32>
    %cst_91 = arith.constant dense<0.000000e+00> : vector<1xf32>
    %191 = vector.multi_reduction <add>, %190, %cst_91 [1] : vector<1x256xf32> to vector<1xf32>
    %192 = vector.shape_cast %191 : vector<1xf32> to vector<1x1xf32>
    %193 = math.log %192 : vector<1x1xf32>
    %194 = vector.broadcast %193 : vector<1x1xf32> to vector<1x256xf32>
    %195 = arith.subf %189, %194 : vector<1x256xf32>
    %196 = arith.index_cast %c3_i32 : i32 to index
    %c0_92 = arith.constant 0 : index
    %197 = vector.load %arg8[%196, %c0_92] : memref<8x256xf32, #tpu.memory_space<vmem>>, vector<1x256xf32>
    tpu.vector_store %arg8[%196, %c0_92], %195 {strides = array<i32>} : memref<8x256xf32, #tpu.memory_space<vmem>>, vector<1x256xf32>,
    %c4_i32 = arith.constant 4 : i32
    %198 = arith.index_cast %c4_i32 : i32 to index
    %199 = memref.load %arg1[%198] : memref<8xi32, #tpu.memory_space<smem>>
    %200 = arith.index_cast %199 : i32 to index
    %c0_93 = arith.constant 0 : index
    %201 = vector.load %arg2[%200, %c0_93] : memref<256x128xf32, #tpu.memory_space<vmem>>, vector<1x128xf32>
    %cst_94 = arith.constant 0.000000e+00 : f32
    %202 = vector.broadcast %cst_94 : f32 to vector<1x128xf32>
    %203 = arith.maximumf %201, %202 : vector<1x128xf32>
    %c0_95 = arith.constant 0 : index
    %c0_96 = arith.constant 0 : index
    %204 = vector.load %arg10[%c0_95, %c0_96] : memref<1x256xf32, #tpu.memory_space<vmem>>, vector<1x128xf32>
    tpu.vector_store %arg10[%c0_95, %c0_96], %203 {strides = array<i32>} : memref<1x256xf32, #tpu.memory_space<vmem>>, vector<1x128xf32>,
    %c0_97 = arith.constant 0 : index
    %c0_98 = arith.constant 0 : index
    %205 = vector.load %arg10[%c0_97, %c0_98] : memref<1x256xf32, #tpu.memory_space<vmem>>, vector<1x256xf32>
    %206 = arith.truncf %205 : vector<1x256xf32> to vector<1x256xbf16>
    %c0_99 = arith.constant 0 : index
    %c0_100 = arith.constant 0 : index
    %207 = vector.load %arg4[%c0_99, %c0_100] : memref<256x512xbf16, #tpu.memory_space<vmem>>, vector<256x512xbf16>
    %cst_101 = arith.constant dense<0.000000e+00> : vector<1x512xf32>
    %208 = tpu.matmul %206, %207, %cst_101 {dimension_numbers = #tpu.dot_dimension_numbers<[1], [0], [0], [1], [0, 0, 1, 1], [], []>} : vector<1x256xbf16>, vector<256x512xbf16>, vector<1x512xf32> -> vector<1x512xf32>
    %c0_102 = arith.constant 0 : index
    %c0_103 = arith.constant 0 : index
    %209 = vector.load %arg5[%c0_102, %c0_103] : memref<1x512xf32, #tpu.memory_space<vmem>>, vector<1x512xf32>
    %210 = arith.addf %208, %209 : vector<1x512xf32>
    %211 = vector.extract_strided_slice %210 {offsets = [0, 0], sizes = [1, 256], strides = [1, 1]} : vector<1x512xf32> to vector<1x256xf32>
    %212 = arith.negf %211 : vector<1x256xf32>
    %213 = math.exp %212 : vector<1x256xf32>
    %cst_104 = arith.constant 1.000000e+00 : f32
    %214 = vector.broadcast %cst_104 : f32 to vector<1x256xf32>
    %215 = arith.addf %214, %213 : vector<1x256xf32>
    %216 = arith.divf %214, %215 : vector<1x256xf32>
    %217 = vector.extract_strided_slice %216 {offsets = [0, 0], sizes = [1, 128], strides = [1, 1]} : vector<1x256xf32> to vector<1x128xf32>
    %218 = vector.extract_strided_slice %216 {offsets = [0, 128], sizes = [1, 128], strides = [1, 1]} : vector<1x256xf32> to vector<1x128xf32>
    %219 = vector.extract_strided_slice %210 {offsets = [0, 256], sizes = [1, 128], strides = [1, 1]} : vector<1x512xf32> to vector<1x128xf32>
    %220 = vector.extract_strided_slice %210 {offsets = [0, 384], sizes = [1, 128], strides = [1, 1]} : vector<1x512xf32> to vector<1x128xf32>
    %221 = arith.mulf %217, %220 : vector<1x128xf32>
    %222 = arith.addf %219, %221 : vector<1x128xf32>
    %223 = math.tanh %222 : vector<1x128xf32>
    %cst_105 = arith.constant 1.000000e+00 : f32
    %224 = vector.broadcast %cst_105 : f32 to vector<1x128xf32>
    %225 = arith.subf %224, %218 : vector<1x128xf32>
    %226 = arith.mulf %225, %223 : vector<1x128xf32>
    %227 = arith.mulf %218, %179 : vector<1x128xf32>
    %228 = arith.addf %226, %227 : vector<1x128xf32>
    %c0_106 = arith.constant 0 : index
    %c128_107 = arith.constant 128 : index
    %229 = vector.load %arg10[%c0_106, %c128_107] : memref<1x256xf32, #tpu.memory_space<vmem>>, vector<1x128xf32>
    tpu.vector_store %arg10[%c0_106, %c128_107], %228 {strides = array<i32>} : memref<1x256xf32, #tpu.memory_space<vmem>>, vector<1x128xf32>,
    %230 = arith.truncf %228 : vector<1x128xf32> to vector<1x128xbf16>
    %c0_108 = arith.constant 0 : index
    %c0_109 = arith.constant 0 : index
    %231 = vector.load %arg6[%c0_108, %c0_109] : memref<128x256xbf16, #tpu.memory_space<vmem>>, vector<128x256xbf16>
    %cst_110 = arith.constant dense<0.000000e+00> : vector<1x256xf32>
    %232 = tpu.matmul %230, %231, %cst_110 {dimension_numbers = #tpu.dot_dimension_numbers<[1], [0], [0], [1], [0, 0, 1, 1], [], []>} : vector<1x128xbf16>, vector<128x256xbf16>, vector<1x256xf32> -> vector<1x256xf32>
    %c0_111 = arith.constant 0 : index
    %c0_112 = arith.constant 0 : index
    %233 = vector.load %arg7[%c0_111, %c0_112] : memref<1x256xf32, #tpu.memory_space<vmem>>, vector<1x256xf32>
    %234 = arith.addf %232, %233 : vector<1x256xf32>
    %cst_113 = arith.constant dense<0xFF800000> : vector<1xf32>
    %235 = vector.multi_reduction <maximumf>, %234, %cst_113 [1] : vector<1x256xf32> to vector<1xf32>
    %236 = vector.shape_cast %235 : vector<1xf32> to vector<1x1xf32>
    %237 = vector.broadcast %236 : vector<1x1xf32> to vector<1x256xf32>
    %238 = arith.subf %234, %237 : vector<1x256xf32>
    %239 = math.exp %238 : vector<1x256xf32>
    %cst_114 = arith.constant dense<0.000000e+00> : vector<1xf32>
    %240 = vector.multi_reduction <add>, %239, %cst_114 [1] : vector<1x256xf32> to vector<1xf32>
    %241 = vector.shape_cast %240 : vector<1xf32> to vector<1x1xf32>
    %242 = math.log %241 : vector<1x1xf32>
    %243 = vector.broadcast %242 : vector<1x1xf32> to vector<1x256xf32>
    %244 = arith.subf %238, %243 : vector<1x256xf32>
    %245 = arith.index_cast %c4_i32 : i32 to index
    %c0_115 = arith.constant 0 : index
    %246 = vector.load %arg8[%245, %c0_115] : memref<8x256xf32, #tpu.memory_space<vmem>>, vector<1x256xf32>
    tpu.vector_store %arg8[%245, %c0_115], %244 {strides = array<i32>} : memref<8x256xf32, #tpu.memory_space<vmem>>, vector<1x256xf32>,
    %c5_i32 = arith.constant 5 : i32
    %247 = arith.index_cast %c5_i32 : i32 to index
    %248 = memref.load %arg1[%247] : memref<8xi32, #tpu.memory_space<smem>>
    %249 = arith.index_cast %248 : i32 to index
    %c0_116 = arith.constant 0 : index
    %250 = vector.load %arg2[%249, %c0_116] : memref<256x128xf32, #tpu.memory_space<vmem>>, vector<1x128xf32>
    %cst_117 = arith.constant 0.000000e+00 : f32
    %251 = vector.broadcast %cst_117 : f32 to vector<1x128xf32>
    %252 = arith.maximumf %250, %251 : vector<1x128xf32>
    %c0_118 = arith.constant 0 : index
    %c0_119 = arith.constant 0 : index
    %253 = vector.load %arg10[%c0_118, %c0_119] : memref<1x256xf32, #tpu.memory_space<vmem>>, vector<1x128xf32>
    tpu.vector_store %arg10[%c0_118, %c0_119], %252 {strides = array<i32>} : memref<1x256xf32, #tpu.memory_space<vmem>>, vector<1x128xf32>,
    %c0_120 = arith.constant 0 : index
    %c0_121 = arith.constant 0 : index
    %254 = vector.load %arg10[%c0_120, %c0_121] : memref<1x256xf32, #tpu.memory_space<vmem>>, vector<1x256xf32>
    %255 = arith.truncf %254 : vector<1x256xf32> to vector<1x256xbf16>
    %c0_122 = arith.constant 0 : index
    %c0_123 = arith.constant 0 : index
    %256 = vector.load %arg4[%c0_122, %c0_123] : memref<256x512xbf16, #tpu.memory_space<vmem>>, vector<256x512xbf16>
    %cst_124 = arith.constant dense<0.000000e+00> : vector<1x512xf32>
    %257 = tpu.matmul %255, %256, %cst_124 {dimension_numbers = #tpu.dot_dimension_numbers<[1], [0], [0], [1], [0, 0, 1, 1], [], []>} : vector<1x256xbf16>, vector<256x512xbf16>, vector<1x512xf32> -> vector<1x512xf32>
    %c0_125 = arith.constant 0 : index
    %c0_126 = arith.constant 0 : index
    %258 = vector.load %arg5[%c0_125, %c0_126] : memref<1x512xf32, #tpu.memory_space<vmem>>, vector<1x512xf32>
    %259 = arith.addf %257, %258 : vector<1x512xf32>
    %260 = vector.extract_strided_slice %259 {offsets = [0, 0], sizes = [1, 256], strides = [1, 1]} : vector<1x512xf32> to vector<1x256xf32>
    %261 = arith.negf %260 : vector<1x256xf32>
    %262 = math.exp %261 : vector<1x256xf32>
    %cst_127 = arith.constant 1.000000e+00 : f32
    %263 = vector.broadcast %cst_127 : f32 to vector<1x256xf32>
    %264 = arith.addf %263, %262 : vector<1x256xf32>
    %265 = arith.divf %263, %264 : vector<1x256xf32>
    %266 = vector.extract_strided_slice %265 {offsets = [0, 0], sizes = [1, 128], strides = [1, 1]} : vector<1x256xf32> to vector<1x128xf32>
    %267 = vector.extract_strided_slice %265 {offsets = [0, 128], sizes = [1, 128], strides = [1, 1]} : vector<1x256xf32> to vector<1x128xf32>
    %268 = vector.extract_strided_slice %259 {offsets = [0, 256], sizes = [1, 128], strides = [1, 1]} : vector<1x512xf32> to vector<1x128xf32>
    %269 = vector.extract_strided_slice %259 {offsets = [0, 384], sizes = [1, 128], strides = [1, 1]} : vector<1x512xf32> to vector<1x128xf32>
    %270 = arith.mulf %266, %269 : vector<1x128xf32>
    %271 = arith.addf %268, %270 : vector<1x128xf32>
    %272 = math.tanh %271 : vector<1x128xf32>
    %cst_128 = arith.constant 1.000000e+00 : f32
    %273 = vector.broadcast %cst_128 : f32 to vector<1x128xf32>
    %274 = arith.subf %273, %267 : vector<1x128xf32>
    %275 = arith.mulf %274, %272 : vector<1x128xf32>
    %276 = arith.mulf %267, %228 : vector<1x128xf32>
    %277 = arith.addf %275, %276 : vector<1x128xf32>
    %c0_129 = arith.constant 0 : index
    %c128_130 = arith.constant 128 : index
    %278 = vector.load %arg10[%c0_129, %c128_130] : memref<1x256xf32, #tpu.memory_space<vmem>>, vector<1x128xf32>
    tpu.vector_store %arg10[%c0_129, %c128_130], %277 {strides = array<i32>} : memref<1x256xf32, #tpu.memory_space<vmem>>, vector<1x128xf32>,
    %279 = arith.truncf %277 : vector<1x128xf32> to vector<1x128xbf16>
    %c0_131 = arith.constant 0 : index
    %c0_132 = arith.constant 0 : index
    %280 = vector.load %arg6[%c0_131, %c0_132] : memref<128x256xbf16, #tpu.memory_space<vmem>>, vector<128x256xbf16>
    %cst_133 = arith.constant dense<0.000000e+00> : vector<1x256xf32>
    %281 = tpu.matmul %279, %280, %cst_133 {dimension_numbers = #tpu.dot_dimension_numbers<[1], [0], [0], [1], [0, 0, 1, 1], [], []>} : vector<1x128xbf16>, vector<128x256xbf16>, vector<1x256xf32> -> vector<1x256xf32>
    %c0_134 = arith.constant 0 : index
    %c0_135 = arith.constant 0 : index
    %282 = vector.load %arg7[%c0_134, %c0_135] : memref<1x256xf32, #tpu.memory_space<vmem>>, vector<1x256xf32>
    %283 = arith.addf %281, %282 : vector<1x256xf32>
    %cst_136 = arith.constant dense<0xFF800000> : vector<1xf32>
    %284 = vector.multi_reduction <maximumf>, %283, %cst_136 [1] : vector<1x256xf32> to vector<1xf32>
    %285 = vector.shape_cast %284 : vector<1xf32> to vector<1x1xf32>
    %286 = vector.broadcast %285 : vector<1x1xf32> to vector<1x256xf32>
    %287 = arith.subf %283, %286 : vector<1x256xf32>
    %288 = math.exp %287 : vector<1x256xf32>
    %cst_137 = arith.constant dense<0.000000e+00> : vector<1xf32>
    %289 = vector.multi_reduction <add>, %288, %cst_137 [1] : vector<1x256xf32> to vector<1xf32>
    %290 = vector.shape_cast %289 : vector<1xf32> to vector<1x1xf32>
    %291 = math.log %290 : vector<1x1xf32>
    %292 = vector.broadcast %291 : vector<1x1xf32> to vector<1x256xf32>
    %293 = arith.subf %287, %292 : vector<1x256xf32>
    %294 = arith.index_cast %c5_i32 : i32 to index
    %c0_138 = arith.constant 0 : index
    %295 = vector.load %arg8[%294, %c0_138] : memref<8x256xf32, #tpu.memory_space<vmem>>, vector<1x256xf32>
    tpu.vector_store %arg8[%294, %c0_138], %293 {strides = array<i32>} : memref<8x256xf32, #tpu.memory_space<vmem>>, vector<1x256xf32>,
    %c6_i32 = arith.constant 6 : i32
    %296 = arith.index_cast %c6_i32 : i32 to index
    %297 = memref.load %arg1[%296] : memref<8xi32, #tpu.memory_space<smem>>
    %298 = arith.index_cast %297 : i32 to index
    %c0_139 = arith.constant 0 : index
    %299 = vector.load %arg2[%298, %c0_139] : memref<256x128xf32, #tpu.memory_space<vmem>>, vector<1x128xf32>
    %cst_140 = arith.constant 0.000000e+00 : f32
    %300 = vector.broadcast %cst_140 : f32 to vector<1x128xf32>
    %301 = arith.maximumf %299, %300 : vector<1x128xf32>
    %c0_141 = arith.constant 0 : index
    %c0_142 = arith.constant 0 : index
    %302 = vector.load %arg10[%c0_141, %c0_142] : memref<1x256xf32, #tpu.memory_space<vmem>>, vector<1x128xf32>
    tpu.vector_store %arg10[%c0_141, %c0_142], %301 {strides = array<i32>} : memref<1x256xf32, #tpu.memory_space<vmem>>, vector<1x128xf32>,
    %c0_143 = arith.constant 0 : index
    %c0_144 = arith.constant 0 : index
    %303 = vector.load %arg10[%c0_143, %c0_144] : memref<1x256xf32, #tpu.memory_space<vmem>>, vector<1x256xf32>
    %304 = arith.truncf %303 : vector<1x256xf32> to vector<1x256xbf16>
    %c0_145 = arith.constant 0 : index
    %c0_146 = arith.constant 0 : index
    %305 = vector.load %arg4[%c0_145, %c0_146] : memref<256x512xbf16, #tpu.memory_space<vmem>>, vector<256x512xbf16>
    %cst_147 = arith.constant dense<0.000000e+00> : vector<1x512xf32>
    %306 = tpu.matmul %304, %305, %cst_147 {dimension_numbers = #tpu.dot_dimension_numbers<[1], [0], [0], [1], [0, 0, 1, 1], [], []>} : vector<1x256xbf16>, vector<256x512xbf16>, vector<1x512xf32> -> vector<1x512xf32>
    %c0_148 = arith.constant 0 : index
    %c0_149 = arith.constant 0 : index
    %307 = vector.load %arg5[%c0_148, %c0_149] : memref<1x512xf32, #tpu.memory_space<vmem>>, vector<1x512xf32>
    %308 = arith.addf %306, %307 : vector<1x512xf32>
    %309 = vector.extract_strided_slice %308 {offsets = [0, 0], sizes = [1, 256], strides = [1, 1]} : vector<1x512xf32> to vector<1x256xf32>
    %310 = arith.negf %309 : vector<1x256xf32>
    %311 = math.exp %310 : vector<1x256xf32>
    %cst_150 = arith.constant 1.000000e+00 : f32
    %312 = vector.broadcast %cst_150 : f32 to vector<1x256xf32>
    %313 = arith.addf %312, %311 : vector<1x256xf32>
    %314 = arith.divf %312, %313 : vector<1x256xf32>
    %315 = vector.extract_strided_slice %314 {offsets = [0, 0], sizes = [1, 128], strides = [1, 1]} : vector<1x256xf32> to vector<1x128xf32>
    %316 = vector.extract_strided_slice %314 {offsets = [0, 128], sizes = [1, 128], strides = [1, 1]} : vector<1x256xf32> to vector<1x128xf32>
    %317 = vector.extract_strided_slice %308 {offsets = [0, 256], sizes = [1, 128], strides = [1, 1]} : vector<1x512xf32> to vector<1x128xf32>
    %318 = vector.extract_strided_slice %308 {offsets = [0, 384], sizes = [1, 128], strides = [1, 1]} : vector<1x512xf32> to vector<1x128xf32>
    %319 = arith.mulf %315, %318 : vector<1x128xf32>
    %320 = arith.addf %317, %319 : vector<1x128xf32>
    %321 = math.tanh %320 : vector<1x128xf32>
    %cst_151 = arith.constant 1.000000e+00 : f32
    %322 = vector.broadcast %cst_151 : f32 to vector<1x128xf32>
    %323 = arith.subf %322, %316 : vector<1x128xf32>
    %324 = arith.mulf %323, %321 : vector<1x128xf32>
    %325 = arith.mulf %316, %277 : vector<1x128xf32>
    %326 = arith.addf %324, %325 : vector<1x128xf32>
    %c0_152 = arith.constant 0 : index
    %c128_153 = arith.constant 128 : index
    %327 = vector.load %arg10[%c0_152, %c128_153] : memref<1x256xf32, #tpu.memory_space<vmem>>, vector<1x128xf32>
    tpu.vector_store %arg10[%c0_152, %c128_153], %326 {strides = array<i32>} : memref<1x256xf32, #tpu.memory_space<vmem>>, vector<1x128xf32>,
    %328 = arith.truncf %326 : vector<1x128xf32> to vector<1x128xbf16>
    %c0_154 = arith.constant 0 : index
    %c0_155 = arith.constant 0 : index
    %329 = vector.load %arg6[%c0_154, %c0_155] : memref<128x256xbf16, #tpu.memory_space<vmem>>, vector<128x256xbf16>
    %cst_156 = arith.constant dense<0.000000e+00> : vector<1x256xf32>
    %330 = tpu.matmul %328, %329, %cst_156 {dimension_numbers = #tpu.dot_dimension_numbers<[1], [0], [0], [1], [0, 0, 1, 1], [], []>} : vector<1x128xbf16>, vector<128x256xbf16>, vector<1x256xf32> -> vector<1x256xf32>
    %c0_157 = arith.constant 0 : index
    %c0_158 = arith.constant 0 : index
    %331 = vector.load %arg7[%c0_157, %c0_158] : memref<1x256xf32, #tpu.memory_space<vmem>>, vector<1x256xf32>
    %332 = arith.addf %330, %331 : vector<1x256xf32>
    %cst_159 = arith.constant dense<0xFF800000> : vector<1xf32>
    %333 = vector.multi_reduction <maximumf>, %332, %cst_159 [1] : vector<1x256xf32> to vector<1xf32>
    %334 = vector.shape_cast %333 : vector<1xf32> to vector<1x1xf32>
    %335 = vector.broadcast %334 : vector<1x1xf32> to vector<1x256xf32>
    %336 = arith.subf %332, %335 : vector<1x256xf32>
    %337 = math.exp %336 : vector<1x256xf32>
    %cst_160 = arith.constant dense<0.000000e+00> : vector<1xf32>
    %338 = vector.multi_reduction <add>, %337, %cst_160 [1] : vector<1x256xf32> to vector<1xf32>
    %339 = vector.shape_cast %338 : vector<1xf32> to vector<1x1xf32>
    %340 = math.log %339 : vector<1x1xf32>
    %341 = vector.broadcast %340 : vector<1x1xf32> to vector<1x256xf32>
    %342 = arith.subf %336, %341 : vector<1x256xf32>
    %343 = arith.index_cast %c6_i32 : i32 to index
    %c0_161 = arith.constant 0 : index
    %344 = vector.load %arg8[%343, %c0_161] : memref<8x256xf32, #tpu.memory_space<vmem>>, vector<1x256xf32>
    tpu.vector_store %arg8[%343, %c0_161], %342 {strides = array<i32>} : memref<8x256xf32, #tpu.memory_space<vmem>>, vector<1x256xf32>,
    %c7_i32 = arith.constant 7 : i32
    %345 = arith.index_cast %c7_i32 : i32 to index
    %346 = memref.load %arg1[%345] : memref<8xi32, #tpu.memory_space<smem>>
    %347 = arith.index_cast %346 : i32 to index
    %c0_162 = arith.constant 0 : index
    %348 = vector.load %arg2[%347, %c0_162] : memref<256x128xf32, #tpu.memory_space<vmem>>, vector<1x128xf32>
    %cst_163 = arith.constant 0.000000e+00 : f32
    %349 = vector.broadcast %cst_163 : f32 to vector<1x128xf32>
    %350 = arith.maximumf %348, %349 : vector<1x128xf32>
    %c0_164 = arith.constant 0 : index
    %c0_165 = arith.constant 0 : index
    %351 = vector.load %arg10[%c0_164, %c0_165] : memref<1x256xf32, #tpu.memory_space<vmem>>, vector<1x128xf32>
    tpu.vector_store %arg10[%c0_164, %c0_165], %350 {strides = array<i32>} : memref<1x256xf32, #tpu.memory_space<vmem>>, vector<1x128xf32>,
    %c0_166 = arith.constant 0 : index
    %c0_167 = arith.constant 0 : index
    %352 = vector.load %arg10[%c0_166, %c0_167] : memref<1x256xf32, #tpu.memory_space<vmem>>, vector<1x256xf32>
    %353 = arith.truncf %352 : vector<1x256xf32> to vector<1x256xbf16>
    %c0_168 = arith.constant 0 : index
    %c0_169 = arith.constant 0 : index
    %354 = vector.load %arg4[%c0_168, %c0_169] : memref<256x512xbf16, #tpu.memory_space<vmem>>, vector<256x512xbf16>
    %cst_170 = arith.constant dense<0.000000e+00> : vector<1x512xf32>
    %355 = tpu.matmul %353, %354, %cst_170 {dimension_numbers = #tpu.dot_dimension_numbers<[1], [0], [0], [1], [0, 0, 1, 1], [], []>} : vector<1x256xbf16>, vector<256x512xbf16>, vector<1x512xf32> -> vector<1x512xf32>
    %c0_171 = arith.constant 0 : index
    %c0_172 = arith.constant 0 : index
    %356 = vector.load %arg5[%c0_171, %c0_172] : memref<1x512xf32, #tpu.memory_space<vmem>>, vector<1x512xf32>
    %357 = arith.addf %355, %356 : vector<1x512xf32>
    %358 = vector.extract_strided_slice %357 {offsets = [0, 0], sizes = [1, 256], strides = [1, 1]} : vector<1x512xf32> to vector<1x256xf32>
    %359 = arith.negf %358 : vector<1x256xf32>
    %360 = math.exp %359 : vector<1x256xf32>
    %cst_173 = arith.constant 1.000000e+00 : f32
    %361 = vector.broadcast %cst_173 : f32 to vector<1x256xf32>
    %362 = arith.addf %361, %360 : vector<1x256xf32>
    %363 = arith.divf %361, %362 : vector<1x256xf32>
    %364 = vector.extract_strided_slice %363 {offsets = [0, 0], sizes = [1, 128], strides = [1, 1]} : vector<1x256xf32> to vector<1x128xf32>
    %365 = vector.extract_strided_slice %363 {offsets = [0, 128], sizes = [1, 128], strides = [1, 1]} : vector<1x256xf32> to vector<1x128xf32>
    %366 = vector.extract_strided_slice %357 {offsets = [0, 256], sizes = [1, 128], strides = [1, 1]} : vector<1x512xf32> to vector<1x128xf32>
    %367 = vector.extract_strided_slice %357 {offsets = [0, 384], sizes = [1, 128], strides = [1, 1]} : vector<1x512xf32> to vector<1x128xf32>
    %368 = arith.mulf %364, %367 : vector<1x128xf32>
    %369 = arith.addf %366, %368 : vector<1x128xf32>
    %370 = math.tanh %369 : vector<1x128xf32>
    %cst_174 = arith.constant 1.000000e+00 : f32
    %371 = vector.broadcast %cst_174 : f32 to vector<1x128xf32>
    %372 = arith.subf %371, %365 : vector<1x128xf32>
    %373 = arith.mulf %372, %370 : vector<1x128xf32>
    %374 = arith.mulf %365, %326 : vector<1x128xf32>
    %375 = arith.addf %373, %374 : vector<1x128xf32>
    %c0_175 = arith.constant 0 : index
    %c128_176 = arith.constant 128 : index
    %376 = vector.load %arg10[%c0_175, %c128_176] : memref<1x256xf32, #tpu.memory_space<vmem>>, vector<1x128xf32>
    tpu.vector_store %arg10[%c0_175, %c128_176], %375 {strides = array<i32>} : memref<1x256xf32, #tpu.memory_space<vmem>>, vector<1x128xf32>,
    %377 = arith.truncf %375 : vector<1x128xf32> to vector<1x128xbf16>
    %c0_177 = arith.constant 0 : index
    %c0_178 = arith.constant 0 : index
    %378 = vector.load %arg6[%c0_177, %c0_178] : memref<128x256xbf16, #tpu.memory_space<vmem>>, vector<128x256xbf16>
    %cst_179 = arith.constant dense<0.000000e+00> : vector<1x256xf32>
    %379 = tpu.matmul %377, %378, %cst_179 {dimension_numbers = #tpu.dot_dimension_numbers<[1], [0], [0], [1], [0, 0, 1, 1], [], []>} : vector<1x128xbf16>, vector<128x256xbf16>, vector<1x256xf32> -> vector<1x256xf32>
    %c0_180 = arith.constant 0 : index
    %c0_181 = arith.constant 0 : index
    %380 = vector.load %arg7[%c0_180, %c0_181] : memref<1x256xf32, #tpu.memory_space<vmem>>, vector<1x256xf32>
    %381 = arith.addf %379, %380 : vector<1x256xf32>
    %cst_182 = arith.constant dense<0xFF800000> : vector<1xf32>
    %382 = vector.multi_reduction <maximumf>, %381, %cst_182 [1] : vector<1x256xf32> to vector<1xf32>
    %383 = vector.shape_cast %382 : vector<1xf32> to vector<1x1xf32>
    %384 = vector.broadcast %383 : vector<1x1xf32> to vector<1x256xf32>
    %385 = arith.subf %381, %384 : vector<1x256xf32>
    %386 = math.exp %385 : vector<1x256xf32>
    %cst_183 = arith.constant dense<0.000000e+00> : vector<1xf32>
    %387 = vector.multi_reduction <add>, %386, %cst_183 [1] : vector<1x256xf32> to vector<1xf32>
    %388 = vector.shape_cast %387 : vector<1xf32> to vector<1x1xf32>
    %389 = math.log %388 : vector<1x1xf32>
    %390 = vector.broadcast %389 : vector<1x1xf32> to vector<1x256xf32>
    %391 = arith.subf %385, %390 : vector<1x256xf32>
    %392 = arith.index_cast %c7_i32 : i32 to index
    %c0_184 = arith.constant 0 : index
    %393 = vector.load %arg8[%392, %c0_184] : memref<8x256xf32, #tpu.memory_space<vmem>>, vector<1x256xf32>
    tpu.vector_store %arg8[%392, %c0_184], %391 {strides = array<i32>} : memref<8x256xf32, #tpu.memory_space<vmem>>, vector<1x256xf32>,
    %c8_i32 = arith.constant 8 : i32
    %c0_185 = arith.constant 0 : index
    %c0_186 = arith.constant 0 : index
    %394 = vector.load %arg9[%c0_185, %c0_186] : memref<1x128xf32, #tpu.memory_space<vmem>>, vector<1x128xf32>
    tpu.vector_store %arg9[%c0_185, %c0_186], %375 {strides = array<i32>} : memref<1x128xf32, #tpu.memory_space<vmem>>, vector<1x128xf32>,
    return
  }
  func.func @transform_0(%arg0: i32, %arg1: memref<8xi32, #tpu.memory_space<smem>>) -> (i32, i32) {
    %c0_i32 = arith.constant 0 : i32
    %c0_i32_0 = arith.constant 0 : i32
    %c0_i32_1 = arith.constant 0 : i32
    return %c0_i32, %c0_i32_0 : i32, i32
  }
  func.func @transform_1(%arg0: i32, %arg1: memref<8xi32, #tpu.memory_space<smem>>) -> (i32, i32) {
    %c0_i32 = arith.constant 0 : i32
    %c0_i32_0 = arith.constant 0 : i32
    %c0_i32_1 = arith.constant 0 : i32
    return %c0_i32, %c0_i32_0 : i32, i32
  }
  func.func @transform_2(%arg0: i32, %arg1: memref<8xi32, #tpu.memory_space<smem>>) -> (i32, i32) {
    %c0_i32 = arith.constant 0 : i32
    %c0_i32_0 = arith.constant 0 : i32
    %c0_i32_1 = arith.constant 0 : i32
    return %c0_i32, %c0_i32_0 : i32, i32
  }
  func.func @transform_3(%arg0: i32, %arg1: memref<8xi32, #tpu.memory_space<smem>>) -> (i32, i32) {
    %c0_i32 = arith.constant 0 : i32
    %c0_i32_0 = arith.constant 0 : i32
    %c0_i32_1 = arith.constant 0 : i32
    return %c0_i32, %c0_i32_0 : i32, i32
  }
  func.func @transform_4(%arg0: i32, %arg1: memref<8xi32, #tpu.memory_space<smem>>) -> (i32, i32) {
    %c0_i32 = arith.constant 0 : i32
    %c0_i32_0 = arith.constant 0 : i32
    %c0_i32_1 = arith.constant 0 : i32
    return %c0_i32, %c0_i32_0 : i32, i32
  }
  func.func @transform_5(%arg0: i32, %arg1: memref<8xi32, #tpu.memory_space<smem>>) -> (i32, i32) {
    %c0_i32 = arith.constant 0 : i32
    %c0_i32_0 = arith.constant 0 : i32
    %c0_i32_1 = arith.constant 0 : i32
    return %c0_i32, %c0_i32_0 : i32, i32
  }
  func.func @transform_6(%arg0: i32, %arg1: memref<8xi32, #tpu.memory_space<smem>>) -> (i32, i32) {
    %c0_i32 = arith.constant 0 : i32
    %c0_i32_0 = arith.constant 0 : i32
    %c0_i32_1 = arith.constant 0 : i32
    return %c0_i32, %c0_i32_0 : i32, i32
  }
  func.func @transform_7(%arg0: i32, %arg1: memref<8xi32, #tpu.memory_space<smem>>) -> (i32, i32) {
    %c0_i32 = arith.constant 0 : i32
    %c0_i32_0 = arith.constant 0 : i32
    %c0_i32_1 = arith.constant 0 : i32
    return %c0_i32, %c0_i32_0 : i32, i32
  }
}

</mosaic_0001>

<bundles_post_ra>
// kernel: decoder_rnn_forward.1
= control target key start
LH: loop header
LB: loop body
LE: loop exit
PB: predicated region body
PF: predicated region fallthrough
CT: control target
= control target key end

     0   :  { %s9097_s0 = inlined_call_operand.vmem [shape: s32[8], index: 0, kind: input, shape index: {}]   ;;  %s9098_s1 = inlined_call_operand.hbm [shape: f32[256,128], index: 1, kind: input, shape index: {}]   ;;  %s9099_s2 = inlined_call_operand.hbm [shape: f32[1,128], index: 2, kind: input, shape index: {}]   ;;  %s9100_s3 = inlined_call_operand.hbm [shape: bf16[256,512], index: 3, kind: input, shape index: {}]   ;;  %s9101_s4 = inlined_call_operand.vmem [shape: f32[1,512], index: 4, kind: input, shape index: {}]   ;;  %s9102_s5 = inlined_call_operand.hbm [shape: bf16[128,256], index: 5, kind: input, shape index: {}]   ;;  %s9103_s6 = inlined_call_operand.vmem [shape: f32[1,256], index: 6, kind: input, shape index: {}]   ;;  %s9104_s7 = inlined_call_operand.hbm [shape: f32[8,256], index: 7, kind: output, shape index: {0}]   ;;  %s9105_s8 = inlined_call_operand.hbm [shape: f32[1,128], index: 8, kind: output, shape index: {1}]  }
   0x1   :  { %s14_s29 = sshll.u32 %s9097_s0, 4  ;;  %s15_s29 = int_to_ptr.vmem [resolvable:$true] %s14_s29 }
   0x2   :  { %s7176_s30 = scalar_lea.vmem %s15_s29, 16  ;;  %p7181_p1 = scmp.lt.s32.totalorder %s15_s29, %s15_s29 }
   0x3   :  { %p7177_p0 = scmp.ne.s32.totalorder %s15_s29, %s7176_s30  ;;  %p7182_p2 = scmp.lt.s32.totalorder %s7176_s30, %s7176_s30 }
   0x5   :  { %p7183_p3 = por %p7182_p2, %p7181_p1 }
   0x7   :  { %p7184_p4 = pnand %p7183_p3, %p7177_p0 }
   0x9   :  { %7187 = shalt.err (!%p7184_p4)  }
   0xa   :  { %s7332_s9 = smov [#allocation4]  }
   0xb   :  { %17 = dma.vmem_to_smem %s15_s29, 16, %s7332_s9, [#allocation3] }
   0xc   :  { %7320 = dma.done.wait [#allocation3], 16 }
   0xd   :  { %7321 = vsyncadd [#allocation3], 4294967280 }
   0xe   :  { %19 = sfence }
   0xf   :  { %20 = vsyncpa [#allocation6], 0 }
  0x10   :  { %21 = vsyncpa [#allocation9], 0 }
  0x11   :  { %22 = vsyncpa [#allocation12], 0 }
  0x12   :  { %23 = vsyncpa [#allocation7], 0 }
  0x13   :  { %24 = vsyncpa [#allocation15], 0  ;;  %s7333_s10 = smov [#allocation8]   ;;  %s7334_s11 = smov [#allocation5]  }
  0x14   :  { %s43_s0 = sshll.u32 %s7333_s10, 4  ;;  %s30_s12 = sshll.u32 %s7334_s11, 4  ;;  %s44_s0 = int_to_ptr.vmem [resolvable:$true] %s43_s0  ;;  %s7393_s12 = int_to_ptr.vmem [resolvable:$true] %s30_s12 }
  0x15   :  { %s7188_s15 = scalar_lea.hbm %s9099_s2, 16 }
  0x16   :  { %p7189_p5 = scmp.ne.s32.totalorder %s9099_s2, %s7188_s15  ;;  %p7192_p6 = scmp.lt.u32.totalorder %s7188_s15, %s9099_s2 }
  0x18   :  { %p7194_p7 = pnand %p7192_p6, %p7189_p5 }
  0x1a   :  { %7197 = shalt.err (!%p7194_p7)
}
  0x1b   :  { %s7198_s20 = scalar_lea.vmem %s44_s0, 16  ;;  %s7202_s21 = scalar_lea.vmem %s44_s0, 32 }
  0x1c   :  { %p7199_p8 = scmp.ne.s32.totalorder %s44_s0, %s7198_s20  ;;  %p7203_p9 = scmp.lt.s32.totalorder %s44_s0, %s44_s0 }
  0x1d   :  { %p7204_p10 = scmp.lt.s32.totalorder %s7202_s21, %s7198_s20 }
  0x1f   :  { %p7205_p11 = por %p7204_p10, %p7203_p9 }
  0x21   :  { %p7206_p12 = pnand %p7205_p11, %p7199_p8 }
  0x23   :  { %7209 = shalt.err (!%p7206_p12)
}
  0x24   :  { %46 = dma.hbm_to_vmem [thread:$0]  %s9099_s2, 16, %s44_s0, [#allocation9]  }
  0x25   :  { %s7210_s26 = scalar_lea.hbm %s9098_s1, 4096 }
  0x26   :  { %p7211_p13 = scmp.ne.s32.totalorder %s9098_s1, %s7210_s26  ;;  %p7214_p0 = scmp.lt.u32.totalorder %s7210_s26, %s9098_s1 }
  0x28   :  { %p7216_p1 = pnand %p7214_p0, %p7211_p13 }
  0x2a   :  { %7219 = shalt.err (!%p7216_p1)
}
  0x2b   :  { %s7220_s9 = scalar_lea.vmem %s7393_s12, 4096  ;;  %p7225_p3 = scmp.lt.s32.totalorder %s7393_s12, %s7393_s12 }
  0x2c   :  { %p7221_p2 = scmp.ne.s32.totalorder %s7393_s12, %s7220_s9  ;;  %p7226_p4 = scmp.lt.s32.totalorder %s7220_s9, %s7220_s9 }
  0x2e   :  { %p7227_p5 = por %p7226_p4, %p7225_p3 }
  0x30   :  { %p7228_p6 = pnand %p7227_p5, %p7221_p2 }
  0x32   :  { %7231 = shalt.err (!%p7228_p6)
}
  0x33   :  { %s7335_s2 = smov 128   ;;  %s7336_s10 = smov 8  }
  0x34   :  { %36 = dma.hbm_to_vmem [thread:$0]  %s9098_s1, 4096, %s7393_s12, [#allocation6], %s7335_s2, %s7335_s2, %s7336_s10  }
  0x35   :  { %s7337_s13 = smov [#allocation10]   ;;  %s7232_s17 = scalar_lea.hbm %s9100_s3, 8192 }
  0x36   :  { %s52_s14 = sshll.u32 %s7337_s13, 4  ;;  %p7233_p7 = scmp.ne.s32.totalorder %s9100_s3, %s7232_s17  ;;  %s53_s14 = int_to_ptr.vmem [resolvable:$true] %s52_s14 }
  0x37   :  { %p7236_p8 = scmp.lt.u32.totalorder %s7232_s17, %s9100_s3 }
  0x39   :  { %p7238_p9 = pnand %p7236_p8, %p7233_p7 }
  0x3b   :  { %7241 = shalt.err (!%p7238_p9)
}
  0x3c   :  { %s7242_s22 = scalar_lea.vmem %s53_s14, 8192  ;;  %p7247_p11 = scmp.lt.s32.totalorder %s53_s14, %s53_s14 }
  0x3d   :  { %p7243_p10 = scmp.ne.s32.totalorder %s53_s14, %s7242_s22  ;;  %p7248_p12 = scmp.lt.s32.totalorder %s7242_s22, %s7242_s22 }
  0x3f   :  { %p7249_p13 = por %p7248_p12, %p7247_p11 }
  0x41   :  { %p7250_p0 = pnand %p7249_p13, %p7243_p10 }
  0x43   :  { %7253 = shalt.err (!%p7250_p0)
}
  0x44   :  { %s7338_s1 = smov 256   ;;  %s7339_s12 = smov 16  }
  0x45   :  { %58 = dma.hbm_to_vmem [thread:$0]  %s9100_s3, 8192, %s53_s14, [#allocation9], %s7338_s1, %s7338_s1, %s7339_s12  }
  0x46   :  { %s7340_s25 = smov [#allocation11]   ;;  %s7254_s29 = scalar_lea.hbm %s9102_s5, 2048 }
  0x47   :  { %s66_s26 = sshll.u32 %s7340_s25, 4  ;;  %p7255_p1 = scmp.ne.s32.totalorder %s9102_s5, %s7254_s29  ;;  %s67_s26 = int_to_ptr.vmem [resolvable:$true] %s66_s26 }
  0x48   :  { %p7258_p2 = scmp.lt.u32.totalorder %s7254_s29, %s9102_s5 }
  0x4a   :  { %p7260_p3 = pnand %p7258_p2, %p7255_p1 }
  0x4c   :  { %7263 = shalt.err (!%p7260_p3)
}
  0x4d   :  { %s7264_s13 = scalar_lea.vmem %s67_s26, 2048  ;;  %p7269_p5 = scmp.lt.s32.totalorder %s67_s26, %s67_s26 }
  0x4e   :  { %p7265_p4 = scmp.ne.s32.totalorder %s67_s26, %s7264_s13  ;;  %p7270_p6 = scmp.lt.s32.totalorder %s7264_s13, %s7264_s13 }
  0x50   :  { %p7271_p7 = por %p7270_p6, %p7269_p5 }
  0x52   :  { %p7272_p8 = pnand %p7271_p7, %p7265_p4 }
  0x54   :  { %7275 = shalt.err (!%p7272_p8)
}
  0x55   :  { %72 = dma.hbm_to_vmem [thread:$0]  %s9102_s5, 2048, %s67_s26, [#allocation12], %s7335_s2, %s7335_s2, %s7336_s10  }
  0x56   :  { %7322 = dma.done.wait [#allocation6], 4096  }
  0x57   :  { %7323 = vsyncadd [#allocation6], 4294963200 }
  0x58   :  { %7324 = dma.done.wait [#allocation9], 8208  }
  0x59   :  { %7325 = vsyncadd [#allocation9], 4294959088 }
  0x5a   :  { %7326 = dma.done.wait [#allocation12], 2048  }
  0x5b   :  { %7327 = vsyncadd [#allocation12], 4294965248  ;;  %v7454_v0 = vld [vmem:[#allocation10 + $0x4] ss:$16 sps:$4 sm:$0xff]   ;;  %v7456_v1 = vld [vmem:[#allocation10] ss:$16 sps:$4 sm:$0xff]   ;;  %v9106_v30 = vlaneseq }
  0x5c   :  { %519 = vmatprep.subr.bf16.mxu0 %v7454_v0  ;;  %v7459_v2 = vld [vmem:[#allocation10 + $0x24] ss:$16 sps:$4 sm:$0xff]   ;;  %v7462_v3 = vld [vmem:[#allocation10 + $0x20] ss:$16 sps:$4 sm:$0xff]   ;;  %v6574_v7 = vld [vmem:[#allocation10 + $0xc] ss:$16 sps:$4 sm:$0xff]  }
  0x5d   :  { %520 = vmatpush1.bf16.msra.mxu0 %v7456_v1  ;;  %v7465_v4 = vld [vmem:[#allocation10 + $0x44] ss:$16 sps:$4 sm:$0xff]   ;;  %v7468_v5 = vld [vmem:[#allocation10 + $0x40] ss:$16 sps:$4 sm:$0xff]   ;;  %v6576_v8 = vld [vmem:[#allocation10 + $0x8] ss:$16 sps:$4 sm:$0xff]   ;;  %560 = vmatprep.subr.bf16.mxu1 %v6574_v7 }
  0x5e   :  { %521 = vmatprep.subr.bf16.mxu0 %v7459_v2  ;;  %v7470_v6 = vld [vmem:[#allocation10 + $0x64] ss:$16 sps:$4 sm:$0xff]   ;;  %v7473_v9 = vld [vmem:[#allocation10 + $0x60] ss:$16 sps:$4 sm:$0xff]   ;;  %561 = vmatpush1.bf16.msra.mxu1 %v6576_v8  ;;  %v6580_v10 = vld [vmem:[#allocation10 + $0x2c] ss:$16 sps:$4 sm:$0xff]  }
  0x5f   :  { %v6582_v11 = vld [vmem:[#allocation10 + $0x28] ss:$16 sps:$4 sm:$0xff]   ;;  %v7477_v12 = vld [vmem:[#allocation10 + $0x84] ss:$16 sps:$4 sm:$0xff]   ;;  %562 = vmatprep.subr.bf16.mxu1 %v6580_v10  ;;  %v7479_v13 = vld [vmem:[#allocation10 + $0x80] ss:$16 sps:$4 sm:$0xff]  }
  0x60   :  { %v6586_v14 = vld [vmem:[#allocation10 + $0x4c] ss:$16 sps:$4 sm:$0xff]   ;;  %v7482_v15 = vld [vmem:[#allocation10 + $0xa4] ss:$16 sps:$4 sm:$0xff]   ;;  %v6588_v16 = vld [vmem:[#allocation10 + $0x48] ss:$16 sps:$4 sm:$0xff]  }
  0x61   :  { %522 = vmatpush1.bf16.msra.mxu0 %v7462_v3  ;;  %v6592_v17 = vld [vmem:[#allocation10 + $0x6c] ss:$16 sps:$4 sm:$0xff]   ;;  %v7485_v18 = vld [vmem:[#allocation10 + $0xa0] ss:$16 sps:$4 sm:$0xff]   ;;  %v7488_v19 = vld [vmem:[#allocation10 + $0xc4] ss:$16 sps:$4 sm:$0xff]  }
  0x62   :  { %523 = vmatprep.subr.bf16.mxu0 %v7465_v4  ;;  %563 = vmatpush1.bf16.msra.mxu1 %v6582_v11  ;;  %v6594_v20 = vld [vmem:[#allocation10 + $0x68] ss:$16 sps:$4 sm:$0xff]   ;;  %v6598_v21 = vld [vmem:[#allocation10 + $0x8c] ss:$16 sps:$4 sm:$0xff]   ;;  %v7491_v22 = vld [vmem:[#allocation10 + $0xc0] ss:$16 sps:$4 sm:$0xff]  }
  0x63   :  { %564 = vmatprep.subr.bf16.mxu1 %v6586_v14  ;;  %v7494_v23 = vld [vmem:[#allocation10 + $0xe4] ss:$16 sps:$4 sm:$0xff]   ;;  %v6600_v24 = vld [vmem:[#allocation10 + $0x88] ss:$16 sps:$4 sm:$0xff]   ;;  %v6604_v25 = vld [vmem:[#allocation10 + $0xac] ss:$16 sps:$4 sm:$0xff]  }
  0x64   :  { %s7497_s5 = sld [smem:[#allocation4]]  ;;  %v7499_v26 = vld [vmem:[#allocation10 + $0xe0] ss:$16 sps:$4 sm:$0xff]   ;;  %v7502_v27 = vld [vmem:[#allocation10 + $0x104] ss:$16 sps:$4 sm:$0xff]   ;;  %vm7516_vm0 = vcmp.lt.s32.totalorder %v9106_v30, 128 }
  0x65   :  { %524 = vmatpush1.bf16.msra.mxu0 %v7468_v5  ;;  %v6606_v28 = vld [vmem:[#allocation10 + $0xa8] ss:$16 sps:$4 sm:$0xff]   ;;  %v6610_v29 = vld [vmem:[#allocation10 + $0xcc] ss:$16 sps:$4 sm:$0xff]   ;;  %v7505_v31 = vld [vmem:[#allocation10 + $0x100] ss:$16 sps:$4 sm:$0xff]  }
  0x66   :  { %525 = vmatprep.subr.bf16.mxu0 %v7470_v6  ;;  %565 = vmatpush1.bf16.msra.mxu1 %v6588_v16  ;;  %v7508_v32 = vld [vmem:[#allocation10 + $0x124] ss:$16 sps:$4 sm:$0xff]   ;;  %v7510_v33 = vld [vmem:[#allocation10 + $0xc8] ss:$16 sps:$4 sm:$0xff]   ;;  %v7513_v34 = vld [vmem:[#allocation10 + $0xec] ss:$16 sps:$4 sm:$0xff]  }
  0x67   :  { %566 = vmatprep.subr.bf16.mxu1 %v6592_v17  ;;  %v7520_v36 = vld [vmem:[#allocation10 + $0x120] ss:$16 sps:$4 sm:$0xff]   ;;  %v7522_v37 = vld [vmem:[#allocation10 + $0x144] ss:$16 sps:$4 sm:$0xff]   ;;  %v7526_v38 = vld [vmem:[#allocation10 + $0xe8] ss:$16 sps:$4 sm:$0xff]  }
  0x68   :  { %v7528_v39 = vld [vmem:[#allocation10 + $0x10c] ss:$16 sps:$4 sm:$0xff]   ;;  %v7538_v43 = vld [vmem:[#allocation10 + $0x140] ss:$16 sps:$4 sm:$0xff]   ;;  %v7540_v44 = vld [vmem:[#allocation10 + $0x164] ss:$16 sps:$4 sm:$0xff]  }
  0x69   :  { %526 = vmatpush1.bf16.msra.mxu0 %v7473_v9  ;;  %v7530_v40 = vld [vmem:[#allocation8] sm:$0x1]  ;;  %v7544_v45 = vld [vmem:[#allocation10 + $0x108] ss:$16 sps:$4 sm:$0xff]   ;;  %v7549_v46 = vshrl.u32 %v9106_v30, 7  ;;  %s5962_s10 = sld [smem:[#allocation4 + $0x1]] }
  0x6a   :  { %527 = vmatprep.subr.bf16.mxu0 %v7477_v12  ;;  %567 = vmatpush1.bf16.msra.mxu1 %v6594_v20  ;;  %93 = vst.msk [vmem:[#allocation2 + $0x1] sm:$0x1] %vm7516_vm0, %v7530_v40  ;;  %s95_s2 = scalar_lea.vmem [#allocation5], %s7497_s5  ;;  %v7553_v47 = vld [vmem:[#allocation10 + $0x12c] ss:$16 sps:$4 sm:$0xff]   ;;  %s6045_s18 = sld [smem:[#allocation4 + $0x2]] }
  0x6b   :  { %568 = vmatprep.subr.bf16.mxu1 %v6598_v21  ;;  %v96_v41 = vld [vmem:[%s95_s2] sm:$0x1]  ;;  %9147 = vst [vmem:[#allocation22_spill] sm:$0xff] %v7549_v46  ;;  %v7555_v48 = vld [vmem:[#allocation10 + $0x160] ss:$16 sps:$4 sm:$0xff]   ;;  %v154_v51 = vld [vmem:[#allocation10 + $0x148] sm:$0xff] }
  0x6c   :  { %v97_v42 = vmax.f32 %v96_v41, 0.0  ;;  %v7557_v49 = vld [vmem:[#allocation10 + $0x184] ss:$16 sps:$4 sm:$0xff]   ;;  %v7559_v50 = vld [vmem:[#allocation10 + $0x128] ss:$16 sps:$4 sm:$0xff]   ;;  %v7566_v54 = vsub.s32 1, %v7549_v46 }
  0x6d   :  { %528 = vmatpush1.bf16.msra.mxu0 %v7479_v13  ;;  %v156_v52 = vld [vmem:[#allocation10 + $0x158] sm:$0xff]  ;;  %v7570_v55 = vld [vmem:[#allocation10 + $0x180] ss:$16 sps:$4 sm:$0xff]   ;;  %v7572_v56 = vld [vmem:[#allocation10 + $0x1a4] ss:$16 sps:$4 sm:$0xff]   ;;  %v7596_v14 = vsub.s32 0, %v7549_v46 }
  0x6e   :  { %529 = vmatprep.subr.bf16.mxu0 %v7482_v15  ;;  %569 = vmatpush1.bf16.msra.mxu1 %v6600_v24  ;;  %98 = vst.msk [vmem:[#allocation2] sm:$0x1] %vm7516_vm0, %v97_v42  ;;  %v7563_v53 = vld [vmem:[#allocation10 + $0x14c] ss:$16 sps:$4 sm:$0xff]   ;;  %v7581_v60 = vcombine.low %v154_v51, %v156_v52  ;;  %v7583_v61 = vld [vmem:[#allocation10 + $0x1a0] ss:$16 sps:$4 sm:$0xff]  }
  0x6f   :  { %570 = vmatprep.subr.bf16.mxu1 %v6604_v25  ;;  %v7577_v59 = vld [vmem:[#allocation10 + $0x16c] ss:$16 sps:$4 sm:$0xff]   ;;  %v7585_v63 = vld [vmem:[#allocation10 + $0x1c4] ss:$16 sps:$4 sm:$0xff]   ;;  %v7587_v7 = vld [vmem:[#allocation10 + $0x168] ss:$16 sps:$4 sm:$0xff]  }
  0x70   :  { %v7590_v8 = vld [vmem:[#allocation10 + $0x18c] ss:$16 sps:$4 sm:$0xff]   ;;  %v6627_v10 = vld [vmem:[#allocation10 + $0x1c0] ss:$16 sps:$4 sm:$0xff]   ;;  %v6631_v11 = vld [vmem:[#allocation10 + $0x1e4] ss:$16 sps:$4 sm:$0xff]  }
  0x71   :  { %530 = vmatpush1.bf16.msra.mxu0 %v7485_v18  ;;  %v7598_v16 = vld [vmem:[#allocation10 + $0x188] ss:$16 sps:$4 sm:$0xff]   ;;  %v7601_v17 = vld [vmem:[#allocation10 + $0x1ac] ss:$16 sps:$4 sm:$0xff]   ;;  %v6633_v20 = vld [vmem:[#allocation10 + $0x1e0] ss:$16 sps:$4 sm:$0xff]  }
  0x72   :  { %531 = vmatprep.subr.bf16.mxu0 %v7488_v19  ;;  %571 = vmatpush1.bf16.msra.mxu1 %v6606_v28  ;;  %v7607_v24 = vld [vmem:[#allocation10 + $0x1a8] ss:$16 sps:$4 sm:$0xff]   ;;  %v7609_v25 = vld [vmem:[#allocation10 + $0x1cc] ss:$16 sps:$4 sm:$0xff]   ;;  %s815_s15 = scalar_lea.vmem [#allocation5], %s5962_s10  ;;  %s1533_s19 = scalar_lea.vmem [#allocation5], %s6045_s18 }
  0x73   :  { %572 = vmatprep.subr.bf16.mxu1 %v6610_v29  ;;  %v7613_v29 = vld [vmem:[#allocation10 + $0x1c8] ss:$16 sps:$4 sm:$0xff]   ;;  %v7615_v41 = vld [vmem:[#allocation10 + $0x1ec] ss:$16 sps:$4 sm:$0xff]   ;;  %vm771_vm1 = vcmask 1040384   ;;  %s6128_s12 = sld [smem:[#allocation4 + $0x3]] }
  0x74   :  { %v7619_v42 = vld [vmem:[#allocation10 + $0x1e8] ss:$16 sps:$4 sm:$0xff]   ;;  %v7947_v30 = vld [vmem:[#allocation10 + $0x14c] ss:$16 sps:$4 sm:$0xff]   ;;  %s6211_s28 = sld [smem:[#allocation4 + $0x4]]  ;;  %s6294_s13 = sld [smem:[#allocation4 + $0x5]] }
  0x75   :  { %532 = vmatpush1.bf16.msra.mxu0 %v7491_v22  ;;  %v99_v57 = vld [vmem:[#allocation2] sm:$0x3]  ;;  %9152 = vst [vmem:[#allocation27_spill] sm:$0xff] %v7947_v30  ;;  %s6460_s21 = sld [smem:[#allocation4 + $0x7]] }
  0x76   :  { %533 = vmatprep.subr.bf16.mxu0 %v7494_v23  ;;  %573 = vmatpush1.bf16.msra.mxu1 %v7510_v33  ;;  %v108_v58 = vrot.slane %v99_v57, %v7566_v54  ;;  %v104_v21 = vrot.slane %v99_v57, %v7596_v14 }
  0x77   :  { %574 = vmatprep.subr.bf16.mxu1 %v7513_v34 }
  0x78   :  { %v112_v62 = vpack.c.bf16 %v108_v58, %v108_v58  ;;  %v111_v28 = vpack.c.bf16 %v104_v21, %v104_v21  ;;  %v7707_v21 = vsub.s32 3, %v7549_v46 }
  0x79   :  { %534 = vmatpush1.bf16.msra.mxu0 %v7499_v26  ;;  %s2251_s23 = scalar_lea.vmem [#allocation5], %s6128_s12 }
  0x7a   :  { %535 = vmatprep.subr.bf16.mxu0 %v7502_v27  ;;  %575 = vmatpush1.bf16.msra.mxu1 %v7526_v38  ;;  %s2969_s29 = scalar_lea.vmem [#allocation5], %s6211_s28  ;;  %s3687_s3 = scalar_lea.vmem [#allocation5], %s6294_s13 }
  0x7b   :  { %576 = vmatprep.subr.bf16.mxu1 %v7528_v39  ;;  %551 = vmatprep.mubr.bf16.mxu0 %v112_v62  ;;  %s5123_s22 = scalar_lea.vmem [#allocation5], %s6460_s21 }
  0x7c   :  { %592 = vmatprep.mubr.bf16.mxu1 %v112_v62 }
  0x7d   :  { %536 = vmatpush1.bf16.msra.mxu0 %v7505_v31 }
  0x7e   :  { %537 = vmatprep.subr.bf16.mxu0 %v7508_v32  ;;  %577 = vmatpush1.bf16.msra.mxu1 %v7544_v45 }
  0x7f   :  { %578 = vmatprep.subr.bf16.mxu1 %v7553_v47 }
  0x81   :  { %538 = vmatpush1.bf16.msra.mxu0 %v7520_v36 }
  0x82   :  { %539 = vmatprep.subr.bf16.mxu0 %v7522_v37  ;;  %579 = vmatpush1.bf16.msra.mxu1 %v7559_v50 }
  0x83   :  { %580 = vmatprep.subr.bf16.mxu1 %v7563_v53 }
  0x85   :  { %540 = vmatpush1.bf16.msra.mxu0 %v7538_v43 }
  0x86   :  { %541 = vmatprep.subr.bf16.mxu0 %v7540_v44  ;;  %581 = vmatpush1.bf16.msra.mxu1 %v7581_v60 }
  0x87   :  { %582 = vmatprep.subr.bf16.mxu1 %v7577_v59 }
  0x89   :  { %542 = vmatpush1.bf16.msra.mxu0 %v7555_v48 }
  0x8a   :  { %543 = vmatprep.subr.bf16.mxu0 %v7557_v49  ;;  %583 = vmatpush1.bf16.msra.mxu1 %v7587_v7 }
  0x8b   :  { %584 = vmatprep.subr.bf16.mxu1 %v7590_v8 }
  0x8d   :  { %544 = vmatpush1.bf16.msra.mxu0 %v7570_v55 }
  0x8e   :  { %545 = vmatprep.subr.bf16.mxu0 %v7572_v56  ;;  %585 = vmatpush1.bf16.msra.mxu1 %v7598_v16 }
  0x8f   :  { %586 = vmatprep.subr.bf16.mxu1 %v7601_v17 }
  0x91   :  { %546 = vmatpush1.bf16.msra.mxu0 %v7583_v61 }
  0x92   :  { %547 = vmatprep.subr.bf16.mxu0 %v7585_v63  ;;  %587 = vmatpush1.bf16.msra.mxu1 %v7607_v24 }
  0x93   :  { %588 = vmatprep.subr.bf16.mxu1 %v7609_v25 }
  0x95   :  { %548 = vmatpush1.bf16.msra.mxu0 %v6627_v10 }
  0x96   :  { %549 = vmatprep.subr.bf16.mxu0 %v6631_v11  ;;  %589 = vmatpush1.bf16.msra.mxu1 %v7613_v29 }
  0x97   :  { %590 = vmatprep.subr.bf16.mxu1 %v7615_v41 }
  0x99   :  { %550 = vmatpush1.bf16.msra.mxu0 %v6633_v20 }
  0x9a   :  { %591 = vmatpush1.bf16.msra.mxu1 %v7619_v42 }
  0x9b   :  { %1239 = vmatprep.subr.bf16.mxu1 %v7454_v0  ;;  %v6653_v0 = vld [vmem:[#allocation11 + $0x4] ss:$8 sps:$4 sm:$0xff]  }
  0x9c   :  { %552 = vmatmul.mubr.bf16.vlgmr.msra.gmra.mrb[0].mxu0 %v111_v28  ;;  %730 = vmatprep.subr.bf16.mxu0 %v6653_v0 }
  0x9d   :  { %593 = vmatmul.mubr.bf16.vlgmr.msra.gmra.mrb[0].mxu1 %v111_v28  ;;  %v7710_v28 = vsub.s32 2, %v7549_v46  ;;  %v7953_v46 = vld [vmem:[#allocation10 + $0x16c] ss:$16 sps:$4 sm:$0xff]  }
  0x9e   :  { %1240 = vmatpush1.bf16.msra.mxu1 %v7456_v1  ;;  %v7653_v1 = vld [vmem:[#allocation11] ss:$8 sps:$4 sm:$0xff]   ;;  %9154 = vst [vmem:[#allocation29_spill] sm:$0xff] %v7953_v46 }
  0x9f   :  { %1241 = vmatprep.subr.bf16.mxu1 %v7459_v2  ;;  %731 = vmatpush1.bf16.msra.mxu0 %v7653_v1  ;;  %v7656_v2 = vld [vmem:[#allocation11 + $0x14] ss:$8 sps:$4 sm:$0xff]  }
  0xa0   :  { %732 = vmatprep.subr.bf16.mxu0 %v7656_v2 }
  0xa2   :  { %1242 = vmatpush1.bf16.msra.mxu1 %v7462_v3  ;;  %v7658_v3 = vld [vmem:[#allocation11 + $0x10] ss:$8 sps:$4 sm:$0xff]  }
  0xa3   :  { %1243 = vmatprep.subr.bf16.mxu1 %v7465_v4  ;;  %733 = vmatpush1.bf16.msra.mxu0 %v7658_v3  ;;  %v7662_v4 = vld [vmem:[#allocation11 + $0x24] ss:$8 sps:$4 sm:$0xff]  }
  0xa4   :  { %734 = vmatprep.subr.bf16.mxu0 %v7662_v4 }
  0xa6   :  { %1244 = vmatpush1.bf16.msra.mxu1 %v7468_v5  ;;  %v7664_v5 = vld [vmem:[#allocation11 + $0x20] ss:$8 sps:$4 sm:$0xff]  }
  0xa7   :  { %1245 = vmatprep.subr.bf16.mxu1 %v7470_v6  ;;  %735 = vmatpush1.bf16.msra.mxu0 %v7664_v5  ;;  %v7668_v6 = vld [vmem:[#allocation11 + $0x34] ss:$8 sps:$4 sm:$0xff]  }
  0xa8   :  { %736 = vmatprep.subr.bf16.mxu0 %v7668_v6 }
  0xaa   :  { %1246 = vmatpush1.bf16.msra.mxu1 %v7473_v9  ;;  %v7670_v9 = vld [vmem:[#allocation11 + $0x30] ss:$8 sps:$4 sm:$0xff]  }
  0xab   :  { %1247 = vmatprep.subr.bf16.mxu1 %v7477_v12  ;;  %737 = vmatpush1.bf16.msra.mxu0 %v7670_v9  ;;  %v7674_v12 = vld [vmem:[#allocation11 + $0x44] ss:$8 sps:$4 sm:$0xff]  }
  0xac   :  { %738 = vmatprep.subr.bf16.mxu0 %v7674_v12 }
  0xae   :  { %1248 = vmatpush1.bf16.msra.mxu1 %v7479_v13  ;;  %v7676_v13 = vld [vmem:[#allocation11 + $0x40] ss:$8 sps:$4 sm:$0xff]  }
  0xaf   :  { %1249 = vmatprep.subr.bf16.mxu1 %v7482_v15  ;;  %v7679_v15 = vld [vmem:[#allocation11 + $0x54] ss:$8 sps:$4 sm:$0xff]   ;;  %739 = vmatpush1.bf16.msra.mxu0 %v7676_v13 }
  0xb0   :  { %740 = vmatprep.subr.bf16.mxu0 %v7679_v15 }
  0xb2   :  { %1250 = vmatpush1.bf16.msra.mxu1 %v7485_v18  ;;  %v7682_v18 = vld [vmem:[#allocation11 + $0x50] ss:$8 sps:$4 sm:$0xff]  }
  0xb3   :  { %1251 = vmatprep.subr.bf16.mxu1 %v7488_v19  ;;  %v7685_v19 = vld [vmem:[#allocation11 + $0x64] ss:$8 sps:$4 sm:$0xff]   ;;  %741 = vmatpush1.bf16.msra.mxu0 %v7682_v18 }
  0xb4   :  { %742 = vmatprep.subr.bf16.mxu0 %v7685_v19 }
  0xb6   :  { %1252 = vmatpush1.bf16.msra.mxu1 %v7491_v22  ;;  %v9107_v22 = vmov 0  }
  0xb7   :  { %1253 = vmatprep.subr.bf16.mxu1 %v7494_v23  ;;  %762 = vmatprep.mubr.bf16.mxu0 %v9107_v22  ;;  %v7689_v23 = vld [vmem:[#allocation11 + $0x60] ss:$8 sps:$4 sm:$0xff]  }
  0xb8   :  { %743 = vmatpush1.bf16.msra.mxu0 %v7689_v23 }
  0xba   :  { %1254 = vmatpush1.bf16.msra.mxu1 %v7499_v26  ;;  %v7692_v26 = vld [vmem:[#allocation11 + $0x74] ss:$8 sps:$4 sm:$0xff]  }
  0xbb   :  { %1255 = vmatprep.subr.bf16.mxu1 %v7502_v27  ;;  %v7695_v27 = vld [vmem:[#allocation11 + $0x70] ss:$8 sps:$4 sm:$0xff]   ;;  %744 = vmatprep.subr.bf16.mxu0 %v7692_v26 }
  0xbc   :  { %745 = vmatpush1.bf16.msra.mxu0 %v7695_v27 }
  0xbe   :  { %1256 = vmatpush1.bf16.msra.mxu1 %v7505_v31  ;;  %v816_v31 = vld [vmem:[%s815_s15] sm:$0x1]  ;;  %s6377_s15 = sld [smem:[#allocation4 + $0x6]] }
  0xbf   :  { %1257 = vmatprep.subr.bf16.mxu1 %v7508_v32  ;;  %v817_v32 = vmax.f32 %v816_v31, 0.0 }
  0xc1   :  { %818 = vst.msk [vmem:[#allocation2] sm:$0x1] %vm7516_vm0, %v817_v32 }
  0xc2   :  { %1258 = vmatpush1.bf16.msra.mxu1 %v7520_v36  ;;  %v7163_v36 = vld [vmem:[#allocation10 + $0xc] ss:$16 sps:$4 sm:$0xff]  }
  0xc3   :  { %1259 = vmatprep.subr.bf16.mxu1 %v7522_v37  ;;  %1280 = vmatprep.subr.bf16.mxu0 %v7163_v36  ;;  %v177_v37 = vld [vmem:[%s9101_s4] sm:$0xf] }
  0xc4   :  { %v510_v36 = vrot.slane %v177_v37, %v7710_v28  ;;  %s4405_s16 = scalar_lea.vmem [#allocation5], %s6377_s15 }
  0xc6   :  { %1260 = vmatpush1.bf16.msra.mxu1 %v7538_v43  ;;  %v502_v43 = vrot.slane %v177_v37, %v7596_v14 }
  0xc7   :  { %1261 = vmatprep.subr.bf16.mxu1 %v7540_v44 }
  0xca   :  { %1262 = vmatpush1.bf16.msra.mxu1 %v7555_v48  ;;  %v506_v48 = vrot.slane %v177_v37, %v7566_v54 }
  0xcb   :  { %1263 = vmatprep.subr.bf16.mxu1 %v7557_v49 }
  0xce   :  { %1264 = vmatpush1.bf16.msra.mxu1 %v7570_v55 }
  0xcf   :  { %1265 = vmatprep.subr.bf16.mxu1 %v7572_v56 }
  0xd2   :  { %1266 = vmatpush1.bf16.msra.mxu1 %v7583_v61 }
  0xd3   :  { %1267 = vmatprep.subr.bf16.mxu1 %v7585_v63 }
  0xd6   :  { %1268 = vmatpush1.bf16.msra.mxu1 %v6627_v10 }
  0xd7   :  { %1269 = vmatprep.subr.bf16.mxu1 %v6631_v11 }
  0xda   :  { %1270 = vmatpush1.bf16.msra.mxu1 %v6633_v20 }
  0xdb   :  { %1450 = vmatprep.subr.bf16.mxu1 %v6653_v0  ;;  %v514_v0 = vrot.slane %v177_v37, %v7707_v21 }
 0x16f   :  { %v553_v44 = vpop.f32.mrb[0].mxu0 }
 0x170   :  { %v554_v49 = vadd.f32 %v553_v44, %v502_v43  ;;  %v555_v51 = vpop.f32.mrb[1].mxu0  ;;  %v594_v61 = vpop.f32.mrb[0].mxu1 }
 0x171   :  { %v557_v52 = vpop.f32.mrb[2].mxu0  ;;  %v556_v57 = vadd.f32 %v555_v51, %v506_v48  ;;  %v596_v62 = vpop.f32.mrb[1].mxu1  ;;  %v595_v48 = vadd.f32 %v594_v61, %v510_v36  ;;  %v7164_v61 = vld [vmem:[#allocation10 + $0x8] ss:$16 sps:$4 sm:$0xff]  }
 0x172   :  { %v5944_v55 = vmul.f32 -1.442695, %v554_v49  ;;  %v558_v56 = vpop.f32.mrb[3].mxu0  ;;  %v598_v63 = vpop.f32.mrb[2].mxu1  ;;  %v597_v43 = vadd.f32 %v596_v62, %v514_v0  ;;  %v7165_v62 = vld [vmem:[#allocation10 + $0x2c] ss:$16 sps:$4 sm:$0xff]  }
 0x173   :  { %v5945_v58 = vmul.f32 -1.442695, %v556_v57  ;;  %v599_v10 = vpop.f32.mrb[3].mxu1  ;;  %v7168_v36 = vld [vmem:[#allocation10 + $0x48] ss:$16 sps:$4 sm:$0xff]  }
 0x174   :  { %7035 = vpow2.f32 %v5944_v55 }
 0x175   :  { %7037 = vpow2.f32 %v5945_v58 }
 0x17e   :  { %v7036_v11 = vpop.eup %7035 }
 0x17f   :  { %v607_v20 = vadd.f32 1.0, %v7036_v11  ;;  %v7038_v31 = vpop.eup %7037  ;;  %v7166_v11 = vld [vmem:[#allocation10 + $0x28] ss:$16 sps:$4 sm:$0xff]  }
 0x180   :  { %v608_v32 = vadd.f32 1.0, %v7038_v31 }
 0x181   :  { %7039 = vrcp.f32 %v607_v20  ;;  %v7167_v20 = vld [vmem:[#allocation10 + $0x4c] ss:$16 sps:$4 sm:$0xff]  }
 0x182   :  { %7041 = vrcp.f32 %v608_v32 }
 0x18b   :  { %v7040_v44 = vpop.eup %7039 }
 0x18c   :  { %v613_v49 = vmul.f32 %v7040_v44, %v597_v43  ;;  %v7042_v52 = vpop.eup %7041  ;;  %v7169_v43 = vld [vmem:[#allocation10 + $0x6c] ss:$16 sps:$4 sm:$0xff]   ;;  %v7170_v44 = vld [vmem:[#allocation10 + $0x68] ss:$16 sps:$4 sm:$0xff]  }
 0x18d   :  { %v616_v55 = vsub.f32 1.0, %v7042_v52  ;;  %v618_v58 = vmul.f32 %v7042_v52, %v7530_v40  ;;  %v7174_v52 = vld [vmem:[#allocation10 + $0xa8] ss:$16 sps:$4 sm:$0xff]  }
 0x18e   :  { %v614_v51 = vadd.f32 %v613_v49, %v595_v48  ;;  %v7171_v48 = vld [vmem:[#allocation10 + $0x8c] ss:$16 sps:$4 sm:$0xff]   ;;  %v7172_v49 = vld [vmem:[#allocation10 + $0x88] ss:$16 sps:$4 sm:$0xff]  }
 0x190   :  { %7043 = vtanh.f32 %v614_v51  ;;  %v7173_v51 = vld [vmem:[#allocation10 + $0xac] ss:$16 sps:$4 sm:$0xff]  }
 0x19a   :  { %v7044_v56 = vpop.eup %7043 }
 0x19b   :  { %v617_v57 = vmul.f32 %v7044_v56, %v616_v55  ;;  %v7854_v55 = vld [vmem:[#allocation10 + $0x1e0] ss:$16 sps:$4 sm:$0xff]   ;;  %v7856_v56 = vld [vmem:[#allocation10 + $0x1e4] ss:$16 sps:$4 sm:$0xff]  }
 0x19d   :  { %v7715_v63 = vadd.f32 %v618_v58, %v617_v57  ;;  %v638_v57 = vld [vmem:[%s9103_s6] sm:$0x3] }
 0x19e   :  { %v723_v58 = vrot.slane %v638_v57, %v7596_v14 }
 0x19f   :  { %620 = vst.msk [vmem:[#allocation2 + $0x1] sm:$0x1] %vm7516_vm0, %v7715_v63  ;;  %v621_v37 = vpack.c.bf16 %v7715_v63, %v7715_v63 }
 0x1a1   :  { %763 = vmatmul.mubr.bf16.vlgmr.msra.gmra.mrb[4].mxu0 %v621_v37  ;;  %v727_v37 = vrot.slane %v638_v57, %v7566_v54 }
 0x1a2   :  { %1281 = vmatpush1.bf16.msra.mxu0 %v7164_v61 }
 0x1a3   :  { %1282 = vmatprep.subr.bf16.mxu0 %v7165_v62 }
 0x1a6   :  { %v819_v10 = vld [vmem:[#allocation2] sm:$0x3]  ;;  %1283 = vmatpush1.bf16.msra.mxu0 %v7166_v11 }
 0x1a7   :  { %1284 = vmatprep.subr.bf16.mxu0 %v7167_v20  ;;  %v828_v40 = vrot.slane %v819_v10, %v7566_v54  ;;  %v824_v0 = vrot.slane %v819_v10, %v7596_v14 }
 0x1a9   :  { %v832_v31 = vpack.c.bf16 %v828_v40, %v828_v40  ;;  %v831_v32 = vpack.c.bf16 %v824_v0, %v824_v0 }
 0x1aa   :  { %1285 = vmatpush1.bf16.msra.mxu0 %v7168_v36 }
 0x1ab   :  { %1271 = vmatprep.mubr.bf16.mxu1 %v832_v31  ;;  %1312 = vmatprep.mubr.bf16.mxu0 %v832_v31 }
 0x1ac   :  { %1272 = vmatmul.mubr.bf16.vlgmr.msra.gmra.mrb[4].mxu1 %v831_v32  ;;  %1286 = vmatprep.subr.bf16.mxu0 %v7169_v43 }
 0x1ad   :  { %1451 = vmatpush1.bf16.msra.mxu1 %v7653_v1  ;;  %1482 = vmatprep.mubr.bf16.mxu1 %v9107_v22  ;;  %v7175_v1 = vld [vmem:[#allocation10 + $0xcc] ss:$16 sps:$4 sm:$0xff]  }
 0x1ae   :  { %1287 = vmatpush1.bf16.msra.mxu0 %v7170_v44  ;;  %1452 = vmatprep.subr.bf16.mxu1 %v7656_v2  ;;  %v7815_v2 = vld [vmem:[#allocation10 + $0x120] ss:$16 sps:$4 sm:$0xff]  }
 0x1af   :  { %1288 = vmatprep.subr.bf16.mxu0 %v7171_v48 }
 0x1b1   :  { %1453 = vmatpush1.bf16.msra.mxu1 %v7658_v3  ;;  %v7818_v3 = vld [vmem:[#allocation10 + $0x144] ss:$16 sps:$4 sm:$0xff]  }
 0x1b2   :  { %1289 = vmatpush1.bf16.msra.mxu0 %v7172_v49  ;;  %1454 = vmatprep.subr.bf16.mxu1 %v7662_v4  ;;  %v7821_v4 = vld [vmem:[#allocation10 + $0x140] ss:$16 sps:$4 sm:$0xff]   ;;  %v897_v49 = vld [vmem:[%s9101_s4] sm:$0xf] }
 0x1b3   :  { %1290 = vmatprep.subr.bf16.mxu0 %v7173_v51  ;;  %v1222_v51 = vrot.slane %v897_v49, %v7596_v14 }
 0x1b5   :  { %1455 = vmatpush1.bf16.msra.mxu1 %v7664_v5  ;;  %v7824_v5 = vld [vmem:[#allocation10 + $0x164] ss:$16 sps:$4 sm:$0xff]  }
 0x1b6   :  { %1291 = vmatpush1.bf16.msra.mxu0 %v7174_v52  ;;  %1456 = vmatprep.subr.bf16.mxu1 %v7668_v6  ;;  %v7826_v6 = vld [vmem:[#allocation10 + $0xc] ss:$16 sps:$4 sm:$0xff]  }
 0x1b7   :  { %1292 = vmatprep.subr.bf16.mxu0 %v7175_v1 }
 0x1b9   :  { %1457 = vmatpush1.bf16.msra.mxu1 %v7670_v9  ;;  %v7829_v9 = vld [vmem:[#allocation10 + $0x160] ss:$16 sps:$4 sm:$0xff]  }
 0x1ba   :  { %1293 = vmatpush1.bf16.msra.mxu0 %v7510_v33  ;;  %1458 = vmatprep.subr.bf16.mxu1 %v7674_v12  ;;  %v7759_v33 = vld [vmem:[#allocation10 + $0x4] ss:$16 sps:$4 sm:$0xff]  }
 0x1bb   :  { %1294 = vmatprep.subr.bf16.mxu0 %v7513_v34  ;;  %v7761_v34 = vld [vmem:[#allocation10] ss:$16 sps:$4 sm:$0xff]   ;;  %v7833_v12 = vld [vmem:[#allocation10 + $0x184] ss:$16 sps:$4 sm:$0xff]  }
 0x1bd   :  { %1459 = vmatpush1.bf16.msra.mxu1 %v7676_v13  ;;  %v7836_v13 = vld [vmem:[#allocation10 + $0x180] ss:$16 sps:$4 sm:$0xff]  }
 0x1be   :  { %1295 = vmatpush1.bf16.msra.mxu0 %v7526_v38  ;;  %1460 = vmatprep.subr.bf16.mxu1 %v7679_v15  ;;  %v7765_v38 = vld [vmem:[#allocation10 + $0x24] ss:$16 sps:$4 sm:$0xff]  }
 0x1bf   :  { %1296 = vmatprep.subr.bf16.mxu0 %v7528_v39  ;;  %v7767_v39 = vld [vmem:[#allocation10 + $0x20] ss:$16 sps:$4 sm:$0xff]   ;;  %v7839_v15 = vld [vmem:[#allocation10 + $0x1a4] ss:$16 sps:$4 sm:$0xff]  }
 0x1c1   :  { %1461 = vmatpush1.bf16.msra.mxu1 %v7682_v18  ;;  %v7842_v18 = vld [vmem:[#allocation10 + $0x1a0] ss:$16 sps:$4 sm:$0xff]  }
 0x1c2   :  { %1297 = vmatpush1.bf16.msra.mxu0 %v7544_v45  ;;  %1462 = vmatprep.subr.bf16.mxu1 %v7685_v19  ;;  %v7771_v45 = vld [vmem:[#allocation10 + $0x40] ss:$16 sps:$4 sm:$0xff]   ;;  %v1534_v19 = vld [vmem:[%s1533_s19] sm:$0x1] }
 0x1c3   :  { %1298 = vmatprep.subr.bf16.mxu0 %v7553_v47  ;;  %v7773_v47 = vld [vmem:[#allocation10 + $0x44] ss:$16 sps:$4 sm:$0xff]  }
 0x1c5   :  { %1463 = vmatpush1.bf16.msra.mxu1 %v7689_v23  ;;  %v1535_v23 = vmax.f32 %v1534_v19, 0.0  ;;  %v1226_v19 = vrot.slane %v897_v49, %v7566_v54 }
 0x1c6   :  { %1299 = vmatpush1.bf16.msra.mxu0 %v7559_v50  ;;  %1464 = vmatprep.subr.bf16.mxu1 %v7692_v26  ;;  %v7775_v50 = vld [vmem:[#allocation10 + $0x64] ss:$16 sps:$4 sm:$0xff]   ;;  %v7848_v26 = vld [vmem:[#allocation10 + $0x1c0] ss:$16 sps:$4 sm:$0xff]  }
 0x1c7   :  { %1300 = vmatprep.subr.bf16.mxu0 %v7563_v53  ;;  %v7779_v53 = vld [vmem:[#allocation10 + $0x60] ss:$16 sps:$4 sm:$0xff]   ;;  %1536 = vst.msk [vmem:[#allocation2] sm:$0x1] %vm7516_vm0, %v1535_v23 }
 0x1c9   :  { %1465 = vmatpush1.bf16.msra.mxu1 %v7695_v27  ;;  %v7850_v27 = vld [vmem:[#allocation10 + $0x1c4] ss:$16 sps:$4 sm:$0xff]  }
 0x1ca   :  { %1301 = vmatpush1.bf16.msra.mxu0 %v7581_v60  ;;  %v7785_v60 = vld [vmem:[#allocation10 + $0x80] ss:$16 sps:$4 sm:$0xff]   ;;  %1998 = vmatprep.subr.bf16.mxu1 %v7826_v6 }
 0x1cb   :  { %1302 = vmatprep.subr.bf16.mxu0 %v7577_v59  ;;  %v7782_v59 = vld [vmem:[#allocation10 + $0x84] ss:$16 sps:$4 sm:$0xff]  }
 0x1ce   :  { %1303 = vmatpush1.bf16.msra.mxu0 %v7587_v7  ;;  %v7788_v7 = vld [vmem:[#allocation10 + $0xa4] ss:$16 sps:$4 sm:$0xff]  }
 0x1cf   :  { %1304 = vmatprep.subr.bf16.mxu0 %v7590_v8  ;;  %v7791_v8 = vld [vmem:[#allocation10 + $0xa0] ss:$16 sps:$4 sm:$0xff]  }
 0x1d2   :  { %1305 = vmatpush1.bf16.msra.mxu0 %v7598_v16  ;;  %v7794_v16 = vld [vmem:[#allocation10 + $0xc4] ss:$16 sps:$4 sm:$0xff]  }
 0x1d3   :  { %1306 = vmatprep.subr.bf16.mxu0 %v7601_v17  ;;  %v7797_v17 = vld [vmem:[#allocation10 + $0xc0] ss:$16 sps:$4 sm:$0xff]  }
 0x1d6   :  { %1307 = vmatpush1.bf16.msra.mxu0 %v7607_v24  ;;  %v7801_v24 = vld [vmem:[#allocation10 + $0xe4] ss:$16 sps:$4 sm:$0xff]  }
 0x1d7   :  { %1308 = vmatprep.subr.bf16.mxu0 %v7609_v25  ;;  %v7803_v25 = vld [vmem:[#allocation10 + $0xe0] ss:$16 sps:$4 sm:$0xff]  }
 0x1da   :  { %1309 = vmatpush1.bf16.msra.mxu0 %v7613_v29  ;;  %v7807_v29 = vld [vmem:[#allocation10 + $0x104] ss:$16 sps:$4 sm:$0xff]  }
 0x1db   :  { %1310 = vmatprep.subr.bf16.mxu0 %v7615_v41  ;;  %v7809_v41 = vld [vmem:[#allocation10 + $0x100] ss:$16 sps:$4 sm:$0xff]  }
 0x1de   :  { %1311 = vmatpush1.bf16.msra.mxu0 %v7619_v42  ;;  %v7813_v42 = vld [vmem:[#allocation10 + $0x124] ss:$16 sps:$4 sm:$0xff]  }
 0x1df   :  { %1957 = vmatprep.subr.bf16.mxu0 %v7759_v33 }
 0x1e1   :  { %1313 = vmatmul.mubr.bf16.vlgmr.msra.gmra.mrb[8].mxu0 %v831_v32 }
 0x1e2   :  { %1958 = vmatpush1.bf16.msra.mxu0 %v7761_v34 }
 0x1e3   :  { %1959 = vmatprep.subr.bf16.mxu0 %v7765_v38 }
 0x1e6   :  { %1960 = vmatpush1.bf16.msra.mxu0 %v7767_v39 }
 0x1e7   :  { %1961 = vmatprep.subr.bf16.mxu0 %v7773_v47 }
 0x1ea   :  { %1962 = vmatpush1.bf16.msra.mxu0 %v7771_v45 }
 0x1eb   :  { %1963 = vmatprep.subr.bf16.mxu0 %v7775_v50 }
 0x1ee   :  { %1964 = vmatpush1.bf16.msra.mxu0 %v7779_v53 }
 0x1ef   :  { %1965 = vmatprep.subr.bf16.mxu0 %v7782_v59 }
 0x1f2   :  { %1966 = vmatpush1.bf16.msra.mxu0 %v7785_v60 }
 0x1f3   :  { %1967 = vmatprep.subr.bf16.mxu0 %v7788_v7 }
 0x1f6   :  { %1968 = vmatpush1.bf16.msra.mxu0 %v7791_v8 }
 0x1f7   :  { %1969 = vmatprep.subr.bf16.mxu0 %v7794_v16 }
 0x1fa   :  { %1970 = vmatpush1.bf16.msra.mxu0 %v7797_v17 }
 0x1fb   :  { %1971 = vmatprep.subr.bf16.mxu0 %v7801_v24 }
 0x1fe   :  { %1972 = vmatpush1.bf16.msra.mxu0 %v7803_v25 }
 0x1ff   :  { %1973 = vmatprep.subr.bf16.mxu0 %v7807_v29 }
 0x202   :  { %1974 = vmatpush1.bf16.msra.mxu0 %v7809_v41 }
 0x203   :  { %1975 = vmatprep.subr.bf16.mxu0 %v7813_v42 }
 0x206   :  { %1976 = vmatpush1.bf16.msra.mxu0 %v7815_v2 }
 0x207   :  { %1977 = vmatprep.subr.bf16.mxu0 %v7818_v3 }
 0x20a   :  { %1978 = vmatpush1.bf16.msra.mxu0 %v7821_v4 }
 0x20b   :  { %1979 = vmatprep.subr.bf16.mxu0 %v7824_v5 }
 0x20e   :  { %1980 = vmatpush1.bf16.msra.mxu0 %v7829_v9 }
 0x20f   :  { %1981 = vmatprep.subr.bf16.mxu0 %v7833_v12 }
 0x212   :  { %1982 = vmatpush1.bf16.msra.mxu0 %v7836_v13 }
 0x213   :  { %1983 = vmatprep.subr.bf16.mxu0 %v7839_v15 }
 0x216   :  { %1984 = vmatpush1.bf16.msra.mxu0 %v7842_v18 }
 0x217   :  { %1985 = vmatprep.subr.bf16.mxu0 %v7850_v27 }
 0x21a   :  { %1986 = vmatpush1.bf16.msra.mxu0 %v7848_v26 }
 0x21b   :  { %1987 = vmatprep.subr.bf16.mxu0 %v7856_v56 }
 0x21e   :  { %1988 = vmatpush1.bf16.msra.mxu0 %v7854_v55 }
 0x274   :  { %v764_v61 = vpop.f32.mrb[4].mxu0 }
 0x275   :  { %v7865_v62 = vadd.f32 %v764_v61, %v723_v58  ;;  %v766_v10 = vpop.f32.mrb[5].mxu0 }
 0x276   :  { %v7867_v11 = vadd.f32 %v766_v10, %v727_v37  ;;  %v768_v20 = vpop.f32.mrb[6].mxu0  ;;  %v1234_v10 = vrot.slane %v897_v49, %v7707_v21 }
 0x277   :  { %9148 = vst [vmem:[#allocation23_spill] sm:$0xff] %v7865_v62  ;;  %v769_v40 = vpop.f32.mrb[7].mxu0  ;;  %v772_v0 = vsel %vm771_vm1, %v7865_v62, -inf  ;;  %v7959_v62 = vld [vmem:[#allocation10 + $0x18c] ss:$16 sps:$4 sm:$0xff]  }
 0x278   :  { %9149 = vst [vmem:[#allocation24_spill] sm:$0xff] %v7867_v11  ;;  %v773_v31 = vsel %vm771_vm1, %v7867_v11, -inf  ;;  %v1230_v40 = vrot.slane %v897_v49, %v7710_v28  ;;  %v7883_v49 = vld [vmem:[#allocation10 + $0x8] ss:$16 sps:$4 sm:$0xff]   ;;  %9156 = vst [vmem:[#allocation31_spill] sm:$0xff] %v7959_v62 }
 0x279   :  { %v774_v32 = vmax.f32 %v772_v0, %v773_v31  ;;  %v7956_v11 = vld [vmem:[#allocation10 + $0x168] ss:$16 sps:$4 sm:$0xff]  }
 0x27a   :  { %9155 = vst [vmem:[#allocation30_spill] sm:$0xff] %v7956_v11 }
 0x27b   :  { %775 = vmax.xlane.f32.xlu0 %v774_v32 }
 0x27f   :  { %v1273_v36 = vpop.f32.mrb[4].mxu1 }
 0x280   :  { %v1275_v43 = vpop.f32.mrb[5].mxu1  ;;  %v1274_v52 = vadd.f32 %v1273_v36, %v1222_v51 }
 0x281   :  { %v1277_v44 = vpop.f32.mrb[6].mxu1  ;;  %v1276_v23 = vadd.f32 %v1275_v43, %v1226_v19 }
 0x282   :  { %v1278_v48 = vpop.f32.mrb[7].mxu1  ;;  %v6027_v1 = vmul.f32 -1.442695, %v1274_v52 }
 0x283   :  { %v6028_v57 = vmul.f32 -1.442695, %v1276_v23 }
 0x284   :  { %7045 = vpow2.f32 %v6027_v1 }
 0x285   :  { %7047 = vpow2.f32 %v6028_v57 }
 0x28e   :  { %v7046_v58 = vpop.eup %7045 }
 0x28f   :  { %v1327_v37 = vadd.f32 1.0, %v7046_v58  ;;  %v7048_v61 = vpop.eup %7047 }
 0x290   :  { %v1328_v20 = vadd.f32 1.0, %v7048_v61 }
 0x291   :  { %7049 = vrcp.f32 %v1327_v37 }
 0x292   :  { %7051 = vrcp.f32 %v1328_v20  ;;  %v7893_v20 = vld [vmem:[#allocation10 + $0x28] ss:$16 sps:$4 sm:$0xff]  }
 0x29b   :  { %v7050_v44 = vpop.eup %7049 }
 0x29c   :  { %v7052_v1 = vpop.eup %7051 }
 0x29d   :  { %v1336_v19 = vsub.f32 1.0, %v7052_v1  ;;  %v1338_v58 = vmul.f32 %v7052_v1, %v7715_v63  ;;  %v7896_v63 = vld [vmem:[#allocation10 + $0x4c] ss:$16 sps:$4 sm:$0xff]  }
 0x29e   :  { %v7917_v1 = vld [vmem:[#allocation10 + $0xac] ss:$16 sps:$4 sm:$0xff]  }
 0x2b4   :  { %v1314_v0 = vpop.f32.mrb[8].mxu0 }
 0x2b5   :  { %v1316_v31 = vpop.f32.mrb[9].mxu0  ;;  %v1315_v51 = vadd.f32 %v1314_v0, %v1230_v40  ;;  %v7899_v40 = vld [vmem:[#allocation10 + $0x48] ss:$16 sps:$4 sm:$0xff]  }
 0x2b6   :  { %v1317_v32 = vadd.f32 %v1316_v31, %v1234_v10  ;;  %v1318_v36 = vpop.f32.mrb[10].mxu0  ;;  %v7890_v10 = vld [vmem:[#allocation10 + $0x2c] ss:$16 sps:$4 sm:$0xff]  }
 0x2b7   :  { %v1319_v48 = vpop.f32.mrb[11].mxu0  ;;  %v7904_v36 = vld [vmem:[#allocation10 + $0x6c] ss:$16 sps:$4 sm:$0xff]  }
 0x2b8   :  { %v1333_v43 = vmul.f32 %v7050_v44, %v1317_v32 }
 0x2ba   :  { %v1334_v52 = vadd.f32 %v1333_v43, %v1315_v51  ;;  %v7907_v51 = vld [vmem:[#allocation10 + $0x68] ss:$16 sps:$4 sm:$0xff]   ;;  %v7909_v43 = vld [vmem:[#allocation10 + $0x8c] ss:$16 sps:$4 sm:$0xff]  }
 0x2bc   :  { %7053 = vtanh.f32 %v1334_v52  ;;  %v7914_v52 = vld [vmem:[#allocation10 + $0x88] ss:$16 sps:$4 sm:$0xff]  }
 0x2c6   :  { %v7054_v23 = vpop.eup %7053 }
 0x2c7   :  { %v1337_v57 = vmul.f32 %v7054_v23, %v1336_v19  ;;  %v7920_v19 = vld [vmem:[#allocation10 + $0xa8] ss:$16 sps:$4 sm:$0xff]   ;;  %v7923_v23 = vld [vmem:[#allocation10 + $0xcc] ss:$16 sps:$4 sm:$0xff]  }
 0x2c9   :  { %v7881_v37 = vadd.f32 %v1338_v58, %v1337_v57  ;;  %v7926_v57 = vld [vmem:[#allocation10 + $0xc8] ss:$16 sps:$4 sm:$0xff]   ;;  %v7929_v58 = vld [vmem:[#allocation10 + $0xec] ss:$16 sps:$4 sm:$0xff]  }
 0x2cb   :  { %1340 = vst.msk [vmem:[#allocation2 + $0x1] sm:$0x1] %vm7516_vm0, %v7881_v37  ;;  %v1341_v61 = vpack.c.bf16 %v7881_v37, %v7881_v37 }
 0x2cd   :  { %1483 = vmatmul.mubr.bf16.vlgmr.msra.gmra.mrb[8].mxu1 %v1341_v61  ;;  %v7932_v61 = vld [vmem:[#allocation10 + $0xe8] ss:$16 sps:$4 sm:$0xff]  }
 0x2ce   :  { %1999 = vmatpush1.bf16.msra.mxu1 %v7883_v49 }
 0x2cf   :  { %2000 = vmatprep.subr.bf16.mxu1 %v7890_v10 }
 0x2d2   :  { %2001 = vmatpush1.bf16.msra.mxu1 %v7893_v20  ;;  %v1537_v0 = vld [vmem:[#allocation2] sm:$0x3] }
 0x2d3   :  { %2002 = vmatprep.subr.bf16.mxu1 %v7896_v63  ;;  %v1546_v31 = vrot.slane %v1537_v0, %v7566_v54  ;;  %v1542_v32 = vrot.slane %v1537_v0, %v7596_v14  ;;  %v7935_v0 = vld [vmem:[#allocation10 + $0x10c] ss:$16 sps:$4 sm:$0xff]  }
 0x2d5   :  { %v1550_v44 = vpack.c.bf16 %v1546_v31, %v1546_v31  ;;  %v1549_v48 = vpack.c.bf16 %v1542_v32, %v1542_v32  ;;  %v7938_v31 = vld [vmem:[#allocation10 + $0x108] ss:$16 sps:$4 sm:$0xff]   ;;  %v7941_v32 = vld [vmem:[#allocation10 + $0x12c] ss:$16 sps:$4 sm:$0xff]  }
 0x2d6   :  { %2003 = vmatpush1.bf16.msra.mxu1 %v7899_v40  ;;  %9150 = vst [vmem:[#allocation25_spill] sm:$0xff] %v7941_v32 }
 0x2d7   :  { %1989 = vmatprep.mubr.bf16.mxu0 %v1550_v44  ;;  %2030 = vmatprep.mubr.bf16.mxu1 %v1550_v44  ;;  %v7944_v44 = vld [vmem:[#allocation10 + $0x128] ss:$16 sps:$4 sm:$0xff]  }
 0x2d8   :  { %1990 = vmatmul.mubr.bf16.vlgmr.msra.gmra.mrb[12].mxu0 %v1549_v48  ;;  %2004 = vmatprep.subr.bf16.mxu1 %v7904_v36  ;;  %9151 = vst [vmem:[#allocation26_spill] sm:$0xff] %v7944_v44 }
 0x2d9   :  { %2200 = vmatprep.mubr.bf16.mxu0 %v9107_v22  ;;  %v7950_v22 = vld [vmem:[#allocation10 + $0x148] ss:$16 sps:$4 sm:$0xff]  }
 0x2da   :  { %2005 = vmatpush1.bf16.msra.mxu1 %v7907_v51  ;;  %9153 = vst [vmem:[#allocation28_spill] sm:$0xff] %v7950_v22 }
 0x2db   :  { %2006 = vmatprep.subr.bf16.mxu1 %v7909_v43 }
 0x2de   :  { %2007 = vmatpush1.bf16.msra.mxu1 %v7914_v52 }
 0x2df   :  { %2008 = vmatprep.subr.bf16.mxu1 %v7917_v1 }
 0x2e2   :  { %2009 = vmatpush1.bf16.msra.mxu1 %v7920_v19 }
 0x2e3   :  { %2010 = vmatprep.subr.bf16.mxu1 %v7923_v23 }
 0x2e6   :  { %2011 = vmatpush1.bf16.msra.mxu1 %v7926_v57 }
 0x2e7   :  { %2012 = vmatprep.subr.bf16.mxu1 %v7929_v58 }
 0x2ea   :  { %2013 = vmatpush1.bf16.msra.mxu1 %v7932_v61 }
 0x2eb   :  { %2014 = vmatprep.subr.bf16.mxu1 %v7935_v0 }
 0x2ee   :  { %2015 = vmatpush1.bf16.msra.mxu1 %v7938_v31 }
 0x2ef   :  { %2016 = vmatprep.subr.bf16.mxu1 %v7941_v32  ;;  %v7962_v32 = vld [vmem:[#allocation10 + $0x188] ss:$16 sps:$4 sm:$0xff]  }
 0x2f2   :  { %2017 = vmatpush1.bf16.msra.mxu1 %v7944_v44  ;;  %v7965_v44 = vld [vmem:[#allocation10 + $0x1ac] ss:$16 sps:$4 sm:$0xff]  }
 0x2f3   :  { %2018 = vmatprep.subr.bf16.mxu1 %v7947_v30  ;;  %v7968_v30 = vld [vmem:[#allocation10 + $0x1a8] ss:$16 sps:$4 sm:$0xff]  }
 0x2f6   :  { %2019 = vmatpush1.bf16.msra.mxu1 %v7950_v22  ;;  %v7971_v22 = vld [vmem:[#allocation10 + $0x1cc] ss:$16 sps:$4 sm:$0xff]  }
 0x2f7   :  { %2020 = vmatprep.subr.bf16.mxu1 %v7953_v46  ;;  %v7974_v46 = vld [vmem:[#allocation10 + $0x1c8] ss:$16 sps:$4 sm:$0xff]  }
 0x2fa   :  { %2021 = vmatpush1.bf16.msra.mxu1 %v7956_v11  ;;  %v7977_v11 = vld [vmem:[#allocation10 + $0x1ec] ss:$16 sps:$4 sm:$0xff]  }
 0x2fb   :  { %2022 = vmatprep.subr.bf16.mxu1 %v7959_v62  ;;  %v7980_v62 = vld [vmem:[#allocation10 + $0x1e8] ss:$16 sps:$4 sm:$0xff]  }
 0x2fe   :  { %2023 = vmatpush1.bf16.msra.mxu1 %v7962_v32 }
 0x2ff   :  { %2024 = vmatprep.subr.bf16.mxu1 %v7965_v44 }
 0x302   :  { %2025 = vmatpush1.bf16.msra.mxu1 %v7968_v30 }
 0x303   :  { %2026 = vmatprep.subr.bf16.mxu1 %v7971_v22 }
 0x306   :  { %2027 = vmatpush1.bf16.msra.mxu1 %v7974_v46 }
 0x307   :  { %2028 = vmatprep.subr.bf16.mxu1 %v7977_v11 }
 0x30a   :  { %2029 = vmatpush1.bf16.msra.mxu1 %v7980_v62 }
 0x30b   :  { %2675 = vmatprep.subr.bf16.mxu1 %v7759_v33  ;;  %v8015_v33 = vld [vmem:[#allocation11] ss:$8 sps:$4 sm:$0xff]  }
 0x30d   :  { %2031 = vmatmul.mubr.bf16.vlgmr.msra.gmra.mrb[12].mxu1 %v1549_v48 }
 0x30e   :  { %2676 = vmatpush1.bf16.msra.mxu1 %v7761_v34  ;;  %v6773_v34 = vld [vmem:[#allocation11 + $0x4] ss:$8 sps:$4 sm:$0xff]  }
 0x30f   :  { %2677 = vmatprep.subr.bf16.mxu1 %v7765_v38  ;;  %v8017_v38 = vld [vmem:[#allocation11 + $0x14] ss:$8 sps:$4 sm:$0xff]   ;;  %2168 = vmatprep.subr.bf16.mxu0 %v6773_v34 }
 0x310   :  { %2169 = vmatpush1.bf16.msra.mxu0 %v8015_v33 }
 0x311   :  { %2170 = vmatprep.subr.bf16.mxu0 %v8017_v38 }
 0x312   :  { %2678 = vmatpush1.bf16.msra.mxu1 %v7767_v39  ;;  %v8021_v39 = vld [vmem:[#allocation11 + $0x10] ss:$8 sps:$4 sm:$0xff]  }
 0x313   :  { %2679 = vmatprep.subr.bf16.mxu1 %v7773_v47  ;;  %v8027_v47 = vld [vmem:[#allocation11 + $0x20] ss:$8 sps:$4 sm:$0xff]  }
 0x314   :  { %2171 = vmatpush1.bf16.msra.mxu0 %v8021_v39 }
 0x316   :  { %2680 = vmatpush1.bf16.msra.mxu1 %v7771_v45  ;;  %v8025_v45 = vld [vmem:[#allocation11 + $0x24] ss:$8 sps:$4 sm:$0xff]  }
 0x317   :  { %2681 = vmatprep.subr.bf16.mxu1 %v7775_v50  ;;  %2172 = vmatprep.subr.bf16.mxu0 %v8025_v45  ;;  %v8031_v50 = vld [vmem:[#allocation11 + $0x34] ss:$8 sps:$4 sm:$0xff]  }
 0x318   :  { %2173 = vmatpush1.bf16.msra.mxu0 %v8027_v47 }
 0x319   :  { %2174 = vmatprep.subr.bf16.mxu0 %v8031_v50 }
 0x31a   :  { %2682 = vmatpush1.bf16.msra.mxu1 %v7779_v53  ;;  %v8033_v53 = vld [vmem:[#allocation11 + $0x30] ss:$8 sps:$4 sm:$0xff]  }
 0x31b   :  { %2683 = vmatprep.subr.bf16.mxu1 %v7782_v59  ;;  %v8037_v59 = vld [vmem:[#allocation11 + $0x44] ss:$8 sps:$4 sm:$0xff]  }
 0x31c   :  { %2175 = vmatpush1.bf16.msra.mxu0 %v8033_v53 }
 0x31d   :  { %2176 = vmatprep.subr.bf16.mxu0 %v8037_v59 }
 0x31e   :  { %2684 = vmatpush1.bf16.msra.mxu1 %v7785_v60  ;;  %v8039_v60 = vld [vmem:[#allocation11 + $0x40] ss:$8 sps:$4 sm:$0xff]  }
 0x31f   :  { %2685 = vmatprep.subr.bf16.mxu1 %v7788_v7  ;;  %v8042_v7 = vld [vmem:[#allocation11 + $0x54] ss:$8 sps:$4 sm:$0xff]  }
 0x320   :  { %2177 = vmatpush1.bf16.msra.mxu0 %v8039_v60 }
 0x321   :  { %2178 = vmatprep.subr.bf16.mxu0 %v8042_v7 }
 0x322   :  { %2686 = vmatpush1.bf16.msra.mxu1 %v7791_v8  ;;  %v8045_v8 = vld [vmem:[#allocation11 + $0x50] ss:$8 sps:$4 sm:$0xff]  }
 0x323   :  { %2687 = vmatprep.subr.bf16.mxu1 %v7794_v16  ;;  %v8048_v16 = vld [vmem:[#allocation11 + $0x64] ss:$8 sps:$4 sm:$0xff]  }
 0x324   :  { %2179 = vmatpush1.bf16.msra.mxu0 %v8045_v8 }
 0x325   :  { %2180 = vmatprep.subr.bf16.mxu0 %v8048_v16 }
 0x326   :  { %2688 = vmatpush1.bf16.msra.mxu1 %v7797_v17  ;;  %v8051_v17 = vld [vmem:[#allocation11 + $0x60] ss:$8 sps:$4 sm:$0xff]  }
 0x327   :  { %2689 = vmatprep.subr.bf16.mxu1 %v7801_v24  ;;  %v8054_v24 = vld [vmem:[#allocation11 + $0x74] ss:$8 sps:$4 sm:$0xff]  }
 0x328   :  { %2181 = vmatpush1.bf16.msra.mxu0 %v8051_v17 }
 0x329   :  { %2182 = vmatprep.subr.bf16.mxu0 %v8054_v24 }
 0x32a   :  { %2690 = vmatpush1.bf16.msra.mxu1 %v7803_v25  ;;  %v8057_v25 = vld [vmem:[#allocation11 + $0x70] ss:$8 sps:$4 sm:$0xff]  }
 0x32b   :  { %2691 = vmatprep.subr.bf16.mxu1 %v7807_v29  ;;  %v2252_v29 = vld [vmem:[%s2251_s23] sm:$0x1] }
 0x32c   :  { %2183 = vmatpush1.bf16.msra.mxu0 %v8057_v25 }
 0x32d   :  { %2716 = vmatprep.subr.bf16.mxu0 %v7826_v6 }
 0x32e   :  { %2692 = vmatpush1.bf16.msra.mxu1 %v7809_v41  ;;  %v2253_v41 = vmax.f32 %v2252_v29, 0.0 }
 0x32f   :  { %2693 = vmatprep.subr.bf16.mxu1 %v7813_v42  ;;  %v1358_v42 = vld [vmem:[%s9103_s6] sm:$0x3] }
 0x330   :  { %2254 = vst.msk [vmem:[#allocation2] sm:$0x1] %vm7516_vm0, %v2253_v41 }
 0x332   :  { %2694 = vmatpush1.bf16.msra.mxu1 %v7815_v2  ;;  %v1443_v2 = vrot.slane %v1358_v42, %v7596_v14 }
 0x333   :  { %2695 = vmatprep.subr.bf16.mxu1 %v7818_v3  ;;  %v1447_v3 = vrot.slane %v1358_v42, %v7566_v54 }
 0x336   :  { %2696 = vmatpush1.bf16.msra.mxu1 %v7821_v4 }
 0x337   :  { %2697 = vmatprep.subr.bf16.mxu1 %v7824_v5 }
 0x33a   :  { %2698 = vmatpush1.bf16.msra.mxu1 %v7829_v9 }
 0x33b   :  { %2699 = vmatprep.subr.bf16.mxu1 %v7833_v12 }
 0x33e   :  { %2700 = vmatpush1.bf16.msra.mxu1 %v7836_v13 }
 0x33f   :  { %2701 = vmatprep.subr.bf16.mxu1 %v7839_v15 }
 0x342   :  { %2702 = vmatpush1.bf16.msra.mxu1 %v7842_v18 }
 0x343   :  { %2703 = vmatprep.subr.bf16.mxu1 %v7850_v27 }
 0x346   :  { %2704 = vmatpush1.bf16.msra.mxu1 %v7848_v26 }
 0x347   :  { %2705 = vmatprep.subr.bf16.mxu1 %v7856_v56 }
 0x34a   :  { %2706 = vmatpush1.bf16.msra.mxu1 %v7854_v55 }
 0x34b   :  { %2886 = vmatprep.subr.bf16.mxu1 %v6773_v34  ;;  %v1615_v34 = vld [vmem:[%s9101_s4] sm:$0xf] }
 0x34c   :  { %v1940_v29 = vrot.slane %v1615_v34, %v7596_v14 }
 0x3a0   :  { %v1484_v4 = vpop.f32.mrb[8].mxu1 }
 0x3a1   :  { %v8069_v5 = vadd.f32 %v1484_v4, %v1443_v2  ;;  %v1486_v9 = vpop.f32.mrb[9].mxu1  ;;  %v1944_v2 = vrot.slane %v1615_v34, %v7566_v54 }
 0x3a2   :  { %v8071_v12 = vadd.f32 %v1486_v9, %v1447_v3  ;;  %v1488_v13 = vpop.f32.mrb[10].mxu1 }
 0x3a3   :  { %9157 = vst [vmem:[#allocation32_spill] sm:$0xff] %v8069_v5  ;;  %v1489_v6 = vpop.f32.mrb[11].mxu1  ;;  %v1491_v15 = vsel %vm771_vm1, %v8069_v5, -inf }
 0x3a4   :  { %9158 = vst [vmem:[#allocation33_spill] sm:$0xff] %v8071_v12  ;;  %v1492_v18 = vsel %vm771_vm1, %v8071_v12, -inf }
 0x3a5   :  { %v1493_v26 = vmax.f32 %v1491_v15, %v1492_v18  ;;  %v1952_v15 = vrot.slane %v1615_v34, %v7707_v21 }
 0x3a7   :  { %1494 = vmax.xlane.f32.xlu0 %v1493_v26  ;;  %v1948_v26 = vrot.slane %v1615_v34, %v7710_v28 }
 0x3ab   :  { %v1991_v27 = vpop.f32.mrb[12].mxu0 }
 0x3ac   :  { %v1993_v55 = vpop.f32.mrb[13].mxu0  ;;  %v1992_v41 = vadd.f32 %v1991_v27, %v1940_v29 }
 0x3ad   :  { %v1995_v56 = vpop.f32.mrb[14].mxu0  ;;  %v1994_v3 = vadd.f32 %v1993_v55, %v1944_v2 }
 0x3ae   :  { %v1996_v48 = vpop.f32.mrb[15].mxu0  ;;  %v6110_v42 = vmul.f32 -1.442695, %v1992_v41 }
 0x3af   :  { %v6111_v4 = vmul.f32 -1.442695, %v1994_v3 }
 0x3b0   :  { %7055 = vpow2.f32 %v6110_v42 }
 0x3b1   :  { %7057 = vpow2.f32 %v6111_v4 }
 0x3ba   :  { %v7056_v9 = vpop.eup %7055 }
 0x3bb   :  { %v2045_v13 = vadd.f32 1.0, %v7056_v9  ;;  %v7058_v6 = vpop.eup %7057 }
 0x3bc   :  { %v2046_v18 = vadd.f32 1.0, %v7058_v6 }
 0x3bd   :  { %7059 = vrcp.f32 %v2045_v13 }
 0x3be   :  { %7061 = vrcp.f32 %v2046_v18 }
 0x3c7   :  { %v7060_v29 = vpop.eup %7059 }
 0x3c8   :  { %v7062_v3 = vpop.eup %7061 }
 0x3c9   :  { %v2054_v4 = vsub.f32 1.0, %v7062_v3  ;;  %v2056_v5 = vmul.f32 %v7062_v3, %v7881_v37 }
 0x3e0   :  { %v2032_v56 = vpop.f32.mrb[12].mxu1 }
 0x3e1   :  { %v2034_v48 = vpop.f32.mrb[13].mxu1  ;;  %v2033_v42 = vadd.f32 %v2032_v56, %v1948_v26  ;;  %v8230_v26 = vld [vmem:[#allocation10 + $0x1c0] ss:$16 sps:$4 sm:$0xff]   ;;  %v8232_v56 = vld [vmem:[#allocation10 + $0x1c4] ss:$16 sps:$4 sm:$0xff]  }
 0x3e2   :  { %v2035_v12 = vadd.f32 %v2034_v48, %v1952_v15  ;;  %v2036_v27 = vpop.f32.mrb[14].mxu1  ;;  %v8236_v48 = vld [vmem:[#allocation10 + $0x1e0] ss:$16 sps:$4 sm:$0xff]  }
 0x3e3   :  { %v2037_v41 = vpop.f32.mrb[15].mxu1  ;;  %v8238_v27 = vld [vmem:[#allocation10 + $0x1e4] ss:$16 sps:$4 sm:$0xff]  }
 0x3e4   :  { %v2051_v55 = vmul.f32 %v7060_v29, %v2035_v12  ;;  %v2076_v29 = vld [vmem:[%s9103_s6] sm:$0x3] }
 0x3e5   :  { %v2161_v41 = vrot.slane %v2076_v29, %v7596_v14 }
 0x3e6   :  { %v2052_v2 = vadd.f32 %v2051_v55, %v2033_v42  ;;  %v2165_v42 = vrot.slane %v2076_v29, %v7566_v54 }
 0x3e8   :  { %7063 = vtanh.f32 %v2052_v2 }
 0x3f2   :  { %v7064_v9 = vpop.eup %7063 }
 0x3f3   :  { %v2055_v13 = vmul.f32 %v7064_v9, %v2054_v4 }
 0x3f5   :  { %v8085_v6 = vadd.f32 %v2056_v5, %v2055_v13 }
 0x3f7   :  { %2058 = vst.msk [vmem:[#allocation2 + $0x1] sm:$0x1] %vm7516_vm0, %v8085_v6  ;;  %v2059_v34 = vpack.c.bf16 %v8085_v6, %v8085_v6 }
 0x3f9   :  { %2201 = vmatmul.mubr.bf16.vlgmr.msra.gmra.mrb[16].mxu0 %v2059_v34 }
 0x3fa   :  { %2717 = vmatpush1.bf16.msra.mxu0 %v7883_v49  ;;  %v9159_v49 = vmov 0  }
 0x3fb   :  { %2718 = vmatprep.subr.bf16.mxu0 %v7890_v10  ;;  %v9160_v10 = vld [vmem:[#allocation25_spill] sm:$0xff] }
 0x3fe   :  { %2719 = vmatpush1.bf16.msra.mxu0 %v7893_v20  ;;  %v2255_v12 = vld [vmem:[#allocation2] sm:$0x3]  ;;  %v9161_v20 = vld [vmem:[#allocation26_spill] sm:$0xff] }
 0x3ff   :  { %2720 = vmatprep.subr.bf16.mxu0 %v7896_v63  ;;  %v2264_v37 = vrot.slane %v2255_v12, %v7566_v54  ;;  %v2260_v5 = vrot.slane %v2255_v12, %v7596_v14  ;;  %v9162_v63 = vld [vmem:[#allocation27_spill] sm:$0xff] }
 0x401   :  { %v2268_v15 = vpack.c.bf16 %v2264_v37, %v2264_v37  ;;  %v2267_v18 = vpack.c.bf16 %v2260_v5, %v2260_v5 }
 0x402   :  { %2721 = vmatpush1.bf16.msra.mxu0 %v7899_v40  ;;  %v9163_v40 = vld [vmem:[#allocation28_spill] sm:$0xff] }
 0x403   :  { %2707 = vmatprep.mubr.bf16.mxu1 %v2268_v15  ;;  %2748 = vmatprep.mubr.bf16.mxu0 %v2268_v15 }
 0x404   :  { %2708 = vmatmul.mubr.bf16.vlgmr.msra.gmra.mrb[16].mxu1 %v2267_v18  ;;  %2722 = vmatprep.subr.bf16.mxu0 %v7904_v36  ;;  %v9164_v36 = vld [vmem:[#allocation29_spill] sm:$0xff] }
 0x405   :  { %2887 = vmatpush1.bf16.msra.mxu1 %v8015_v33  ;;  %2918 = vmatprep.mubr.bf16.mxu1 %v9159_v49  ;;  %v8189_v33 = vld [vmem:[#allocation10 + $0x104] ss:$16 sps:$4 sm:$0xff]  }
 0x406   :  { %2723 = vmatpush1.bf16.msra.mxu0 %v7907_v51  ;;  %2888 = vmatprep.subr.bf16.mxu1 %v8017_v38  ;;  %v9165_v51 = vld [vmem:[#allocation30_spill] sm:$0xff] }
 0x407   :  { %2724 = vmatprep.subr.bf16.mxu0 %v7909_v43  ;;  %v9166_v43 = vld [vmem:[#allocation31_spill] sm:$0xff] }
 0x408   :  { %v8191_v38 = vld [vmem:[#allocation10 + $0x100] ss:$16 sps:$4 sm:$0xff]  }
 0x409   :  { %2889 = vmatpush1.bf16.msra.mxu1 %v8021_v39  ;;  %v8195_v39 = vld [vmem:[#allocation10 + $0x124] ss:$16 sps:$4 sm:$0xff]  }
 0x40a   :  { %2725 = vmatpush1.bf16.msra.mxu0 %v7914_v52  ;;  %2890 = vmatprep.subr.bf16.mxu1 %v8025_v45  ;;  %v8141_v52 = vld [vmem:[#allocation10 + $0x4] ss:$16 sps:$4 sm:$0xff]   ;;  %v8197_v45 = vld [vmem:[#allocation10 + $0x120] ss:$16 sps:$4 sm:$0xff]  }
 0x40b   :  { %2726 = vmatprep.subr.bf16.mxu0 %v7917_v1  ;;  %v8143_v1 = vld [vmem:[#allocation10] ss:$16 sps:$4 sm:$0xff]  }
 0x40d   :  { %2891 = vmatpush1.bf16.msra.mxu1 %v8027_v47  ;;  %v8200_v47 = vld [vmem:[#allocation10 + $0x144] ss:$16 sps:$4 sm:$0xff]  }
 0x40e   :  { %2727 = vmatpush1.bf16.msra.mxu0 %v7920_v19  ;;  %2892 = vmatprep.subr.bf16.mxu1 %v8031_v50  ;;  %v8147_v19 = vld [vmem:[#allocation10 + $0x24] ss:$16 sps:$4 sm:$0xff]   ;;  %v8203_v50 = vld [vmem:[#allocation10 + $0x140] ss:$16 sps:$4 sm:$0xff]  }
 0x40f   :  { %2728 = vmatprep.subr.bf16.mxu0 %v7923_v23  ;;  %v8164_v23 = vld [vmem:[#allocation10 + $0x84] ss:$16 sps:$4 sm:$0xff]  }
 0x411   :  { %2893 = vmatpush1.bf16.msra.mxu1 %v8033_v53  ;;  %v8206_v53 = vld [vmem:[#allocation10 + $0x164] ss:$16 sps:$4 sm:$0xff]  }
 0x412   :  { %2729 = vmatpush1.bf16.msra.mxu0 %v7926_v57  ;;  %2894 = vmatprep.subr.bf16.mxu1 %v8037_v59  ;;  %v8167_v57 = vld [vmem:[#allocation10 + $0x80] ss:$16 sps:$4 sm:$0xff]   ;;  %v8208_v59 = vld [vmem:[#allocation10 + $0xc] ss:$16 sps:$4 sm:$0xff]  }
 0x413   :  { %2730 = vmatprep.subr.bf16.mxu0 %v7929_v58  ;;  %v8170_v58 = vld [vmem:[#allocation10 + $0xa4] ss:$16 sps:$4 sm:$0xff]  }
 0x415   :  { %2895 = vmatpush1.bf16.msra.mxu1 %v8039_v60  ;;  %v8211_v60 = vld [vmem:[#allocation10 + $0x160] ss:$16 sps:$4 sm:$0xff]  }
 0x416   :  { %2731 = vmatpush1.bf16.msra.mxu0 %v7932_v61  ;;  %2896 = vmatprep.subr.bf16.mxu1 %v8042_v7  ;;  %v8173_v61 = vld [vmem:[#allocation10 + $0xa0] ss:$16 sps:$4 sm:$0xff]   ;;  %v8215_v7 = vld [vmem:[#allocation10 + $0x184] ss:$16 sps:$4 sm:$0xff]  }
 0x417   :  { %2732 = vmatprep.subr.bf16.mxu0 %v7935_v0  ;;  %v8176_v0 = vld [vmem:[#allocation10 + $0xc4] ss:$16 sps:$4 sm:$0xff]  }
 0x419   :  { %2897 = vmatpush1.bf16.msra.mxu1 %v8045_v8  ;;  %v8218_v8 = vld [vmem:[#allocation10 + $0x180] ss:$16 sps:$4 sm:$0xff]  }
 0x41a   :  { %2733 = vmatpush1.bf16.msra.mxu0 %v7938_v31  ;;  %2898 = vmatprep.subr.bf16.mxu1 %v8048_v16  ;;  %v8179_v31 = vld [vmem:[#allocation10 + $0xc0] ss:$16 sps:$4 sm:$0xff]   ;;  %v8221_v16 = vld [vmem:[#allocation10 + $0x1a4] ss:$16 sps:$4 sm:$0xff]  }
 0x41b   :  { %2734 = vmatprep.subr.bf16.mxu0 %v9160_v10 }
 0x41d   :  { %2899 = vmatpush1.bf16.msra.mxu1 %v8051_v17  ;;  %v8224_v17 = vld [vmem:[#allocation10 + $0x1a0] ss:$16 sps:$4 sm:$0xff]  }
 0x41e   :  { %2735 = vmatpush1.bf16.msra.mxu0 %v9161_v20  ;;  %2900 = vmatprep.subr.bf16.mxu1 %v8054_v24  ;;  %v2970_v24 = vld [vmem:[%s2969_s29] sm:$0x1] }
 0x41f   :  { %2736 = vmatprep.subr.bf16.mxu0 %v9162_v63  ;;  %v2333_v20 = vld [vmem:[%s9101_s4] sm:$0xf] }
 0x420   :  { %v2658_v63 = vrot.slane %v2333_v20, %v7596_v14 }
 0x421   :  { %2901 = vmatpush1.bf16.msra.mxu1 %v8057_v25  ;;  %v2971_v25 = vmax.f32 %v2970_v24, 0.0 }
 0x422   :  { %2737 = vmatpush1.bf16.msra.mxu0 %v9163_v40  ;;  %3434 = vmatprep.subr.bf16.mxu1 %v8208_v59 }
 0x423   :  { %2738 = vmatprep.subr.bf16.mxu0 %v9164_v36  ;;  %2972 = vst.msk [vmem:[#allocation2] sm:$0x1] %vm7516_vm0, %v2971_v25 }
 0x426   :  { %2739 = vmatpush1.bf16.msra.mxu0 %v9165_v51  ;;  %v2662_v51 = vrot.slane %v2333_v20, %v7566_v54 }
 0x427   :  { %2740 = vmatprep.subr.bf16.mxu0 %v9166_v43 }
 0x42a   :  { %2741 = vmatpush1.bf16.msra.mxu0 %v7962_v32  ;;  %v8183_v32 = vld [vmem:[#allocation10 + $0xe4] ss:$16 sps:$4 sm:$0xff]  }
 0x42b   :  { %2742 = vmatprep.subr.bf16.mxu0 %v7965_v44  ;;  %v8185_v44 = vld [vmem:[#allocation10 + $0xe0] ss:$16 sps:$4 sm:$0xff]  }
 0x42e   :  { %2743 = vmatpush1.bf16.msra.mxu0 %v7968_v30  ;;  %v8149_v30 = vld [vmem:[#allocation10 + $0x20] ss:$16 sps:$4 sm:$0xff]  }
 0x42f   :  { %2744 = vmatprep.subr.bf16.mxu0 %v7971_v22  ;;  %v8155_v22 = vld [vmem:[#allocation10 + $0x44] ss:$16 sps:$4 sm:$0xff]  }
 0x432   :  { %2745 = vmatpush1.bf16.msra.mxu0 %v7974_v46  ;;  %v8153_v46 = vld [vmem:[#allocation10 + $0x40] ss:$16 sps:$4 sm:$0xff]  }
 0x433   :  { %2746 = vmatprep.subr.bf16.mxu0 %v7977_v11  ;;  %v8161_v11 = vld [vmem:[#allocation10 + $0x60] ss:$16 sps:$4 sm:$0xff]  }
 0x436   :  { %2747 = vmatpush1.bf16.msra.mxu0 %v7980_v62  ;;  %v8157_v62 = vld [vmem:[#allocation10 + $0x64] ss:$16 sps:$4 sm:$0xff]  }
 0x437   :  { %3393 = vmatprep.subr.bf16.mxu0 %v8141_v52 }
 0x439   :  { %2749 = vmatmul.mubr.bf16.vlgmr.msra.gmra.mrb[20].mxu0 %v2267_v18 }
 0x43a   :  { %3394 = vmatpush1.bf16.msra.mxu0 %v8143_v1 }
 0x43b   :  { %3395 = vmatprep.subr.bf16.mxu0 %v8147_v19 }
 0x43e   :  { %3396 = vmatpush1.bf16.msra.mxu0 %v8149_v30 }
 0x43f   :  { %3397 = vmatprep.subr.bf16.mxu0 %v8155_v22 }
 0x442   :  { %3398 = vmatpush1.bf16.msra.mxu0 %v8153_v46 }
 0x443   :  { %3399 = vmatprep.subr.bf16.mxu0 %v8157_v62 }
 0x446   :  { %3400 = vmatpush1.bf16.msra.mxu0 %v8161_v11 }
 0x447   :  { %3401 = vmatprep.subr.bf16.mxu0 %v8164_v23 }
 0x44a   :  { %3402 = vmatpush1.bf16.msra.mxu0 %v8167_v57 }
 0x44b   :  { %3403 = vmatprep.subr.bf16.mxu0 %v8170_v58 }
 0x44e   :  { %3404 = vmatpush1.bf16.msra.mxu0 %v8173_v61 }
 0x44f   :  { %3405 = vmatprep.subr.bf16.mxu0 %v8176_v0 }
 0x452   :  { %3406 = vmatpush1.bf16.msra.mxu0 %v8179_v31 }
 0x453   :  { %3407 = vmatprep.subr.bf16.mxu0 %v8183_v32 }
 0x456   :  { %3408 = vmatpush1.bf16.msra.mxu0 %v8185_v44 }
 0x457   :  { %3409 = vmatprep.subr.bf16.mxu0 %v8189_v33 }
 0x45a   :  { %3410 = vmatpush1.bf16.msra.mxu0 %v8191_v38 }
 0x45b   :  { %3411 = vmatprep.subr.bf16.mxu0 %v8195_v39 }
 0x45e   :  { %3412 = vmatpush1.bf16.msra.mxu0 %v8197_v45 }
 0x45f   :  { %3413 = vmatprep.subr.bf16.mxu0 %v8200_v47 }
 0x462   :  { %3414 = vmatpush1.bf16.msra.mxu0 %v8203_v50 }
 0x463   :  { %3415 = vmatprep.subr.bf16.mxu0 %v8206_v53 }
 0x466   :  { %3416 = vmatpush1.bf16.msra.mxu0 %v8211_v60 }
 0x467   :  { %3417 = vmatprep.subr.bf16.mxu0 %v8215_v7 }
 0x46a   :  { %3418 = vmatpush1.bf16.msra.mxu0 %v8218_v8 }
 0x46b   :  { %3419 = vmatprep.subr.bf16.mxu0 %v8221_v16 }
 0x46e   :  { %3420 = vmatpush1.bf16.msra.mxu0 %v8224_v17 }
 0x46f   :  { %3421 = vmatprep.subr.bf16.mxu0 %v8232_v56 }
 0x472   :  { %3422 = vmatpush1.bf16.msra.mxu0 %v8230_v26 }
 0x473   :  { %3423 = vmatprep.subr.bf16.mxu0 %v8238_v27 }
 0x476   :  { %3424 = vmatpush1.bf16.msra.mxu0 %v8236_v48 }
 0x4cc   :  { %v2202_v55 = vpop.f32.mrb[16].mxu0 }
 0x4cd   :  { %v8247_v2 = vadd.f32 %v2202_v55, %v2161_v41  ;;  %v2204_v3 = vpop.f32.mrb[17].mxu0 }
 0x4ce   :  { %v8249_v4 = vadd.f32 %v2204_v3, %v2165_v42  ;;  %v2206_v9 = vpop.f32.mrb[18].mxu0  ;;  %v2670_v42 = vrot.slane %v2333_v20, %v7707_v21  ;;  %v2666_v3 = vrot.slane %v2333_v20, %v7710_v28  ;;  %v8265_v20 = vld [vmem:[#allocation10 + $0x8] ss:$16 sps:$4 sm:$0xff]  }
 0x4cf   :  { %9167 = vst [vmem:[#allocation25_spill] sm:$0xff] %v8247_v2  ;;  %v2207_v13 = vpop.f32.mrb[19].mxu0  ;;  %v2209_v34 = vsel %vm771_vm1, %v8247_v2, -inf  ;;  %v8340_v2 = vld [vmem:[#allocation10 + $0x168] ss:$16 sps:$4 sm:$0xff]  }
 0x4d0   :  { %9168 = vst [vmem:[#allocation26_spill] sm:$0xff] %v8249_v4  ;;  %v2210_v12 = vsel %vm771_vm1, %v8249_v4, -inf  ;;  %v8337_v4 = vld [vmem:[#allocation10 + $0x16c] ss:$16 sps:$4 sm:$0xff]   ;;  %9175 = vst [vmem:[#allocation35_spill] sm:$0xff] %v8340_v2 }
 0x4d1   :  { %v2211_v37 = vmax.f32 %v2209_v34, %v2210_v12  ;;  %9174 = vst [vmem:[#allocation34_spill] sm:$0xff] %v8337_v4 }
 0x4d3   :  { %2212 = vmax.xlane.f32.xlu1 %v2211_v37 }
 0x4d7   :  { %v2709_v5 = vpop.f32.mrb[16].mxu1 }
 0x4d8   :  { %v2711_v15 = vpop.f32.mrb[17].mxu1  ;;  %v2710_v40 = vadd.f32 %v2709_v5, %v2658_v63 }
 0x4d9   :  { %v2713_v18 = vpop.f32.mrb[18].mxu1  ;;  %v2712_v43 = vadd.f32 %v2711_v15, %v2662_v51 }
 0x4da   :  { %v2714_v10 = vpop.f32.mrb[19].mxu1  ;;  %v6193_v36 = vmul.f32 -1.442695, %v2710_v40 }
 0x4db   :  { %v6194_v24 = vmul.f32 -1.442695, %v2712_v43 }
 0x4dc   :  { %7065 = vpow2.f32 %v6193_v36 }
 0x4dd   :  { %7067 = vpow2.f32 %v6194_v24 }
 0x4e6   :  { %v7066_v25 = vpop.eup %7065 }
 0x4e7   :  { %v2763_v29 = vadd.f32 1.0, %v7066_v25  ;;  %v7068_v41 = vpop.eup %7067 }
 0x4e8   :  { %v2764_v55 = vadd.f32 1.0, %v7068_v41  ;;  %v3688_v41 = vld [vmem:[%s3687_s3] sm:$0x1] }
 0x4e9   :  { %7069 = vrcp.f32 %v2763_v29  ;;  %v8272_v29 = vld [vmem:[#allocation10 + $0x2c] ss:$16 sps:$4 sm:$0xff]  }
 0x4ea   :  { %7071 = vrcp.f32 %v2764_v55  ;;  %v3689_v55 = vmax.f32 %v3688_v41, 0.0  ;;  %v8319_v41 = vld [vmem:[#allocation10 + $0x10c] ss:$16 sps:$4 sm:$0xff]  }
 0x4f3   :  { %v7070_v37 = vpop.eup %7069 }
 0x4f4   :  { %v7072_v63 = vpop.eup %7071 }
 0x4f5   :  { %v2772_v40 = vsub.f32 1.0, %v7072_v63  ;;  %v2774_v43 = vmul.f32 %v7072_v63, %v8085_v6  ;;  %v8278_v6 = vld [vmem:[#allocation10 + $0x4c] ss:$16 sps:$4 sm:$0xff]  }
 0x4f6   :  { %v8301_v63 = vld [vmem:[#allocation10 + $0xac] ss:$16 sps:$4 sm:$0xff]  }
 0x50c   :  { %v2750_v9 = vpop.f32.mrb[20].mxu0 }
 0x50d   :  { %v2752_v13 = vpop.f32.mrb[21].mxu0  ;;  %v2751_v18 = vadd.f32 %v2750_v9, %v2666_v3  ;;  %v8281_v3 = vld [vmem:[#allocation10 + $0x48] ss:$16 sps:$4 sm:$0xff]  }
 0x50e   :  { %v2753_v34 = vadd.f32 %v2752_v13, %v2670_v42  ;;  %v2754_v12 = vpop.f32.mrb[22].mxu0  ;;  %v8275_v42 = vld [vmem:[#allocation10 + $0x28] ss:$16 sps:$4 sm:$0xff]  }
 0x50f   :  { %v2755_v5 = vpop.f32.mrb[23].mxu0  ;;  %v8288_v12 = vld [vmem:[#allocation10 + $0x6c] ss:$16 sps:$4 sm:$0xff]  }
 0x510   :  { %v2769_v15 = vmul.f32 %v7070_v37, %v2753_v34 }
 0x512   :  { %v2770_v10 = vadd.f32 %v2769_v15, %v2751_v18  ;;  %v8291_v18 = vld [vmem:[#allocation10 + $0x68] ss:$16 sps:$4 sm:$0xff]   ;;  %v8293_v15 = vld [vmem:[#allocation10 + $0x8c] ss:$16 sps:$4 sm:$0xff]  }
 0x514   :  { %7073 = vtanh.f32 %v2770_v10  ;;  %v8298_v10 = vld [vmem:[#allocation10 + $0x88] ss:$16 sps:$4 sm:$0xff]  }
 0x51e   :  { %v7074_v36 = vpop.eup %7073 }
 0x51f   :  { %v2773_v51 = vmul.f32 %v7074_v36, %v2772_v40  ;;  %v8304_v40 = vld [vmem:[#allocation10 + $0xa8] ss:$16 sps:$4 sm:$0xff]   ;;  %v8307_v36 = vld [vmem:[#allocation10 + $0xcc] ss:$16 sps:$4 sm:$0xff]  }
 0x521   :  { %v8263_v24 = vadd.f32 %v2774_v43, %v2773_v51  ;;  %v8310_v51 = vld [vmem:[#allocation10 + $0xc8] ss:$16 sps:$4 sm:$0xff]   ;;  %v8313_v43 = vld [vmem:[#allocation10 + $0xec] ss:$16 sps:$4 sm:$0xff]  }
 0x523   :  { %2776 = vst.msk [vmem:[#allocation2 + $0x1] sm:$0x1] %vm7516_vm0, %v8263_v24  ;;  %v2777_v25 = vpack.c.bf16 %v8263_v24, %v8263_v24 }
 0x525   :  { %2919 = vmatmul.mubr.bf16.vlgmr.msra.gmra.mrb[20].mxu1 %v2777_v25  ;;  %v8316_v25 = vld [vmem:[#allocation10 + $0xe8] ss:$16 sps:$4 sm:$0xff]  }
 0x526   :  { %3435 = vmatpush1.bf16.msra.mxu1 %v8265_v20 }
 0x527   :  { %3436 = vmatprep.subr.bf16.mxu1 %v8272_v29 }
 0x52a   :  { %3437 = vmatpush1.bf16.msra.mxu1 %v8275_v42  ;;  %v2973_v9 = vld [vmem:[#allocation2] sm:$0x3] }
 0x52b   :  { %3438 = vmatprep.subr.bf16.mxu1 %v8278_v6  ;;  %v2982_v13 = vrot.slane %v2973_v9, %v7566_v54  ;;  %3690 = vst.msk [vmem:[#allocation2] sm:$0x1] %vm7516_vm0, %v3689_v55  ;;  %v2978_v34 = vrot.slane %v2973_v9, %v7596_v14  ;;  %v8322_v55 = vld [vmem:[#allocation10 + $0x108] ss:$16 sps:$4 sm:$0xff]   ;;  %v8325_v9 = vld [vmem:[#allocation10 + $0x12c] ss:$16 sps:$4 sm:$0xff]  }
 0x52c   :  { %9169 = vst [vmem:[#allocation27_spill] sm:$0xff] %v8322_v55  ;;  %9170 = vst [vmem:[#allocation28_spill] sm:$0xff] %v8325_v9 }
 0x52d   :  { %v2986_v37 = vpack.c.bf16 %v2982_v13, %v2982_v13  ;;  %v2985_v5 = vpack.c.bf16 %v2978_v34, %v2978_v34  ;;  %v8328_v13 = vld [vmem:[#allocation10 + $0x128] ss:$16 sps:$4 sm:$0xff]   ;;  %v8331_v34 = vld [vmem:[#allocation10 + $0x14c] ss:$16 sps:$4 sm:$0xff]  }
 0x52e   :  { %3439 = vmatpush1.bf16.msra.mxu1 %v8281_v3  ;;  %9171 = vst [vmem:[#allocation29_spill] sm:$0xff] %v8328_v13  ;;  %9172 = vst [vmem:[#allocation30_spill] sm:$0xff] %v8331_v34 }
 0x52f   :  { %3425 = vmatprep.mubr.bf16.mxu0 %v2986_v37  ;;  %3466 = vmatprep.mubr.bf16.mxu1 %v2986_v37  ;;  %v8334_v37 = vld [vmem:[#allocation10 + $0x148] ss:$16 sps:$4 sm:$0xff]  }
 0x530   :  { %3426 = vmatmul.mubr.bf16.vlgmr.msra.gmra.mrb[24].mxu0 %v2985_v5  ;;  %3440 = vmatprep.subr.bf16.mxu1 %v8288_v12  ;;  %9173 = vst [vmem:[#allocation31_spill] sm:$0xff] %v8334_v37 }
 0x531   :  { %3636 = vmatprep.mubr.bf16.mxu0 %v9159_v49 }
 0x532   :  { %3441 = vmatpush1.bf16.msra.mxu1 %v8291_v18 }
 0x533   :  { %3442 = vmatprep.subr.bf16.mxu1 %v8293_v15 }
 0x536   :  { %3443 = vmatpush1.bf16.msra.mxu1 %v8298_v10 }
 0x537   :  { %3444 = vmatprep.subr.bf16.mxu1 %v8301_v63 }
 0x53a   :  { %3445 = vmatpush1.bf16.msra.mxu1 %v8304_v40 }
 0x53b   :  { %3446 = vmatprep.subr.bf16.mxu1 %v8307_v36 }
 0x53e   :  { %3447 = vmatpush1.bf16.msra.mxu1 %v8310_v51 }
 0x53f   :  { %3448 = vmatprep.subr.bf16.mxu1 %v8313_v43 }
 0x542   :  { %3449 = vmatpush1.bf16.msra.mxu1 %v8316_v25 }
 0x543   :  { %3450 = vmatprep.subr.bf16.mxu1 %v8319_v41 }
 0x546   :  { %3451 = vmatpush1.bf16.msra.mxu1 %v8322_v55  ;;  %v8343_v55 = vld [vmem:[#allocation10 + $0x18c] ss:$16 sps:$4 sm:$0xff]  }
 0x547   :  { %3452 = vmatprep.subr.bf16.mxu1 %v8325_v9  ;;  %9176 = vst [vmem:[#allocation36_spill] sm:$0xff] %v8343_v55  ;;  %v8346_v9 = vld [vmem:[#allocation10 + $0x188] ss:$16 sps:$4 sm:$0xff]  }
 0x54a   :  { %3453 = vmatpush1.bf16.msra.mxu1 %v8328_v13  ;;  %v8349_v13 = vld [vmem:[#allocation10 + $0x1ac] ss:$16 sps:$4 sm:$0xff]  }
 0x54b   :  { %3454 = vmatprep.subr.bf16.mxu1 %v8331_v34  ;;  %v8352_v34 = vld [vmem:[#allocation10 + $0x1a8] ss:$16 sps:$4 sm:$0xff]  }
 0x54e   :  { %3455 = vmatpush1.bf16.msra.mxu1 %v8334_v37  ;;  %v8355_v37 = vld [vmem:[#allocation10 + $0x1cc] ss:$16 sps:$4 sm:$0xff]  }
 0x54f   :  { %3456 = vmatprep.subr.bf16.mxu1 %v8337_v4  ;;  %v8358_v4 = vld [vmem:[#allocation10 + $0x1c8] ss:$16 sps:$4 sm:$0xff]  }
 0x552   :  { %3457 = vmatpush1.bf16.msra.mxu1 %v8340_v2  ;;  %v8361_v2 = vld [vmem:[#allocation10 + $0x1ec] ss:$16 sps:$4 sm:$0xff]  }
 0x553   :  { %3458 = vmatprep.subr.bf16.mxu1 %v8343_v55  ;;  %v8364_v55 = vld [vmem:[#allocation10 + $0x1e8] ss:$16 sps:$4 sm:$0xff]  }
 0x556   :  { %3459 = vmatpush1.bf16.msra.mxu1 %v8346_v9 }
 0x557   :  { %3460 = vmatprep.subr.bf16.mxu1 %v8349_v13 }
 0x55a   :  { %3461 = vmatpush1.bf16.msra.mxu1 %v8352_v34 }
 0x55b   :  { %3462 = vmatprep.subr.bf16.mxu1 %v8355_v37 }
 0x55e   :  { %3463 = vmatpush1.bf16.msra.mxu1 %v8358_v4 }
 0x55f   :  { %3464 = vmatprep.subr.bf16.mxu1 %v8361_v2 }
 0x562   :  { %3465 = vmatpush1.bf16.msra.mxu1 %v8364_v55 }
 0x563   :  { %4111 = vmatprep.subr.bf16.mxu1 %v8141_v52  ;;  %v8399_v52 = vld [vmem:[#allocation11] ss:$8 sps:$4 sm:$0xff]  }
 0x565   :  { %3467 = vmatmul.mubr.bf16.vlgmr.msra.gmra.mrb[24].mxu1 %v2985_v5 }
 0x566   :  { %4112 = vmatpush1.bf16.msra.mxu1 %v8143_v1  ;;  %v6893_v1 = vld [vmem:[#allocation11 + $0x4] ss:$8 sps:$4 sm:$0xff]  }
 0x567   :  { %4113 = vmatprep.subr.bf16.mxu1 %v8147_v19  ;;  %v8401_v19 = vld [vmem:[#allocation11 + $0x14] ss:$8 sps:$4 sm:$0xff]   ;;  %3604 = vmatprep.subr.bf16.mxu0 %v6893_v1 }
 0x568   :  { %3605 = vmatpush1.bf16.msra.mxu0 %v8399_v52 }
 0x569   :  { %3606 = vmatprep.subr.bf16.mxu0 %v8401_v19 }
 0x56a   :  { %4114 = vmatpush1.bf16.msra.mxu1 %v8149_v30  ;;  %v8405_v30 = vld [vmem:[#allocation11 + $0x10] ss:$8 sps:$4 sm:$0xff]  }
 0x56b   :  { %4115 = vmatprep.subr.bf16.mxu1 %v8155_v22  ;;  %v8411_v22 = vld [vmem:[#allocation11 + $0x20] ss:$8 sps:$4 sm:$0xff]  }
 0x56c   :  { %3607 = vmatpush1.bf16.msra.mxu0 %v8405_v30 }
 0x56e   :  { %4116 = vmatpush1.bf16.msra.mxu1 %v8153_v46  ;;  %v8409_v46 = vld [vmem:[#allocation11 + $0x24] ss:$8 sps:$4 sm:$0xff]  }
 0x56f   :  { %4117 = vmatprep.subr.bf16.mxu1 %v8157_v62  ;;  %3608 = vmatprep.subr.bf16.mxu0 %v8409_v46  ;;  %v8415_v62 = vld [vmem:[#allocation11 + $0x34] ss:$8 sps:$4 sm:$0xff]  }
 0x570   :  { %3609 = vmatpush1.bf16.msra.mxu0 %v8411_v22 }
 0x571   :  { %3610 = vmatprep.subr.bf16.mxu0 %v8415_v62 }
 0x572   :  { %4118 = vmatpush1.bf16.msra.mxu1 %v8161_v11  ;;  %v8417_v11 = vld [vmem:[#allocation11 + $0x30] ss:$8 sps:$4 sm:$0xff]  }
 0x573   :  { %4119 = vmatprep.subr.bf16.mxu1 %v8164_v23  ;;  %v8421_v23 = vld [vmem:[#allocation11 + $0x44] ss:$8 sps:$4 sm:$0xff]  }
 0x574   :  { %3611 = vmatpush1.bf16.msra.mxu0 %v8417_v11 }
 0x575   :  { %3612 = vmatprep.subr.bf16.mxu0 %v8421_v23 }
 0x576   :  { %4120 = vmatpush1.bf16.msra.mxu1 %v8167_v57  ;;  %v8423_v57 = vld [vmem:[#allocation11 + $0x40] ss:$8 sps:$4 sm:$0xff]  }
 0x577   :  { %4121 = vmatprep.subr.bf16.mxu1 %v8170_v58  ;;  %v8426_v58 = vld [vmem:[#allocation11 + $0x54] ss:$8 sps:$4 sm:$0xff]  }
 0x578   :  { %3613 = vmatpush1.bf16.msra.mxu0 %v8423_v57 }
 0x579   :  { %3614 = vmatprep.subr.bf16.mxu0 %v8426_v58 }
 0x57a   :  { %4122 = vmatpush1.bf16.msra.mxu1 %v8173_v61  ;;  %v8429_v61 = vld [vmem:[#allocation11 + $0x50] ss:$8 sps:$4 sm:$0xff]  }
 0x57b   :  { %4123 = vmatprep.subr.bf16.mxu1 %v8176_v0  ;;  %v8432_v0 = vld [vmem:[#allocation11 + $0x64] ss:$8 sps:$4 sm:$0xff]  }
 0x57c   :  { %3615 = vmatpush1.bf16.msra.mxu0 %v8429_v61 }
 0x57d   :  { %3616 = vmatprep.subr.bf16.mxu0 %v8432_v0 }
 0x57e   :  { %4124 = vmatpush1.bf16.msra.mxu1 %v8179_v31  ;;  %v8435_v31 = vld [vmem:[#allocation11 + $0x60] ss:$8 sps:$4 sm:$0xff]  }
 0x57f   :  { %4125 = vmatprep.subr.bf16.mxu1 %v8183_v32  ;;  %v8438_v32 = vld [vmem:[#allocation11 + $0x74] ss:$8 sps:$4 sm:$0xff]  }
 0x580   :  { %3617 = vmatpush1.bf16.msra.mxu0 %v8435_v31 }
 0x581   :  { %3618 = vmatprep.subr.bf16.mxu0 %v8438_v32 }
 0x582   :  { %4126 = vmatpush1.bf16.msra.mxu1 %v8185_v44  ;;  %v8441_v44 = vld [vmem:[#allocation11 + $0x70] ss:$8 sps:$4 sm:$0xff]  }
 0x583   :  { %4127 = vmatprep.subr.bf16.mxu1 %v8189_v33  ;;  %v2794_v33 = vld [vmem:[%s9103_s6] sm:$0x3] }
 0x584   :  { %3619 = vmatpush1.bf16.msra.mxu0 %v8441_v44 }
 0x585   :  { %4152 = vmatprep.subr.bf16.mxu0 %v8208_v59 }
 0x586   :  { %4128 = vmatpush1.bf16.msra.mxu1 %v8191_v38  ;;  %v2879_v38 = vrot.slane %v2794_v33, %v7596_v14 }
 0x587   :  { %4129 = vmatprep.subr.bf16.mxu1 %v8195_v39  ;;  %v2883_v39 = vrot.slane %v2794_v33, %v7566_v54 }
 0x58a   :  { %4130 = vmatpush1.bf16.msra.mxu1 %v8197_v45 }
 0x58b   :  { %4131 = vmatprep.subr.bf16.mxu1 %v8200_v47 }
 0x58e   :  { %4132 = vmatpush1.bf16.msra.mxu1 %v8203_v50 }
 0x58f   :  { %4133 = vmatprep.subr.bf16.mxu1 %v8206_v53 }
 0x592   :  { %4134 = vmatpush1.bf16.msra.mxu1 %v8211_v60 }
 0x593   :  { %4135 = vmatprep.subr.bf16.mxu1 %v8215_v7 }
 0x596   :  { %4136 = vmatpush1.bf16.msra.mxu1 %v8218_v8 }
 0x597   :  { %4137 = vmatprep.subr.bf16.mxu1 %v8221_v16 }
 0x59a   :  { %4138 = vmatpush1.bf16.msra.mxu1 %v8224_v17 }
 0x59b   :  { %4139 = vmatprep.subr.bf16.mxu1 %v8232_v56 }
 0x59e   :  { %4140 = vmatpush1.bf16.msra.mxu1 %v8230_v26 }
 0x59f   :  { %4141 = vmatprep.subr.bf16.mxu1 %v8238_v27  ;;  %v3051_v27 = vld [vmem:[%s9101_s4] sm:$0xf] }
 0x5a0   :  { %v3376_v5 = vrot.slane %v3051_v27, %v7596_v14 }
 0x5a2   :  { %4142 = vmatpush1.bf16.msra.mxu1 %v8236_v48 }
 0x5a3   :  { %4322 = vmatprep.subr.bf16.mxu1 %v6893_v1 }
 0x5f8   :  { %v2920_v45 = vpop.f32.mrb[20].mxu1 }
 0x5f9   :  { %v8451_v47 = vadd.f32 %v2920_v45, %v2879_v38  ;;  %v2922_v50 = vpop.f32.mrb[21].mxu1  ;;  %v3380_v38 = vrot.slane %v3051_v27, %v7566_v54 }
 0x5fa   :  { %v8453_v53 = vadd.f32 %v2922_v50, %v2883_v39  ;;  %v2924_v60 = vpop.f32.mrb[22].mxu1 }
 0x5fb   :  { %9177 = vst [vmem:[#allocation37_spill] sm:$0xff] %v8451_v47  ;;  %v2925_v7 = vpop.f32.mrb[23].mxu1  ;;  %v2927_v8 = vsel %vm771_vm1, %v8451_v47, -inf }
 0x5fc   :  { %9178 = vst [vmem:[#allocation38_spill] sm:$0xff] %v8453_v53  ;;  %v2928_v59 = vsel %vm771_vm1, %v8453_v53, -inf }
 0x5fd   :  { %v2929_v16 = vmax.f32 %v2927_v8, %v2928_v59  ;;  %v3388_v8 = vrot.slane %v3051_v27, %v7707_v21 }
 0x5ff   :  { %2930 = vmax.xlane.f32.xlu1 %v2929_v16  ;;  %v3384_v16 = vrot.slane %v3051_v27, %v7710_v28 }
 0x603   :  { %v3427_v17 = vpop.f32.mrb[24].mxu0 }
 0x604   :  { %v3429_v26 = vpop.f32.mrb[25].mxu0  ;;  %v3428_v1 = vadd.f32 %v3427_v17, %v3376_v5 }
 0x605   :  { %v3431_v56 = vpop.f32.mrb[26].mxu0  ;;  %v3430_v39 = vadd.f32 %v3429_v26, %v3380_v38 }
 0x606   :  { %v3432_v48 = vpop.f32.mrb[27].mxu0  ;;  %v6276_v33 = vmul.f32 -1.442695, %v3428_v1 }
 0x607   :  { %v6277_v45 = vmul.f32 -1.442695, %v3430_v39 }
 0x608   :  { %7075 = vpow2.f32 %v6276_v33 }
 0x609   :  { %7077 = vpow2.f32 %v6277_v45 }
 0x612   :  { %v7076_v50 = vpop.eup %7075 }
 0x613   :  { %v3481_v60 = vadd.f32 1.0, %v7076_v50  ;;  %v7078_v7 = vpop.eup %7077 }
 0x614   :  { %v3482_v59 = vadd.f32 1.0, %v7078_v7 }
 0x615   :  { %7079 = vrcp.f32 %v3481_v60 }
 0x616   :  { %7081 = vrcp.f32 %v3482_v59 }
 0x61f   :  { %v7080_v5 = vpop.eup %7079 }
 0x620   :  { %v7082_v39 = vpop.eup %7081 }
 0x621   :  { %v3490_v45 = vsub.f32 1.0, %v7082_v39  ;;  %v3492_v7 = vmul.f32 %v7082_v39, %v8263_v24 }
 0x638   :  { %v3468_v56 = vpop.f32.mrb[24].mxu1 }
 0x639   :  { %v3470_v48 = vpop.f32.mrb[25].mxu1  ;;  %v3469_v33 = vadd.f32 %v3468_v56, %v3384_v16 }
 0x63a   :  { %v3471_v53 = vadd.f32 %v3470_v48, %v3388_v8  ;;  %v3472_v17 = vpop.f32.mrb[26].mxu1 }
 0x63b   :  { %v3473_v1 = vpop.f32.mrb[27].mxu1  ;;  %v8614_v17 = vld [vmem:[#allocation10 + $0x1c4] ss:$16 sps:$4 sm:$0xff]  }
 0x63c   :  { %v3487_v26 = vmul.f32 %v7080_v5, %v3471_v53  ;;  %v4406_v53 = vld [vmem:[%s4405_s16] sm:$0x1]  ;;  %v8618_v5 = vld [vmem:[#allocation10 + $0x1e0] ss:$16 sps:$4 sm:$0xff]   ;;  %v8620_v1 = vld [vmem:[#allocation10 + $0x1e4] ss:$16 sps:$4 sm:$0xff]  }
 0x63d   :  { %v4407_v8 = vmax.f32 %v4406_v53, 0.0 }
 0x63e   :  { %v3488_v38 = vadd.f32 %v3487_v26, %v3469_v33  ;;  %v3512_v33 = vld [vmem:[%s9103_s6] sm:$0x3] }
 0x63f   :  { %v3597_v26 = vrot.slane %v3512_v33, %v7596_v14 }
 0x640   :  { %7083 = vtanh.f32 %v3488_v38  ;;  %v3601_v38 = vrot.slane %v3512_v33, %v7566_v54 }
 0x64a   :  { %v7084_v50 = vpop.eup %7083 }
 0x64b   :  { %v3491_v60 = vmul.f32 %v7084_v50, %v3490_v45 }
 0x64d   :  { %v8467_v47 = vadd.f32 %v3492_v7, %v3491_v60 }
 0x64f   :  { %v3495_v27 = vpack.c.bf16 %v8467_v47, %v8467_v47  ;;  %3494 = vst.msk [vmem:[#allocation2 + $0x1] sm:$0x1] %vm7516_vm0, %v8467_v47 }
 0x651   :  { %3637 = vmatmul.mubr.bf16.vlgmr.msra.gmra.mrb[28].mxu0 %v3495_v27 }
 0x652   :  { %4153 = vmatpush1.bf16.msra.mxu0 %v8265_v20  ;;  %v9179_v20 = vld [vmem:[#allocation27_spill] sm:$0xff] }
 0x653   :  { %4154 = vmatprep.subr.bf16.mxu0 %v8272_v29  ;;  %v9180_v29 = vld [vmem:[#allocation28_spill] sm:$0xff] }
 0x656   :  { %4155 = vmatpush1.bf16.msra.mxu0 %v8275_v42  ;;  %v3691_v24 = vld [vmem:[#allocation2] sm:$0x3]  ;;  %v9181_v42 = vld [vmem:[#allocation29_spill] sm:$0xff] }
 0x657   :  { %4156 = vmatprep.subr.bf16.mxu0 %v8278_v6  ;;  %v3700_v59 = vrot.slane %v3691_v24, %v7566_v54  ;;  %4408 = vst.msk [vmem:[#allocation2] sm:$0x1] %vm7516_vm0, %v4407_v8  ;;  %v3696_v16 = vrot.slane %v3691_v24, %v7596_v14  ;;  %v9182_v6 = vld [vmem:[#allocation30_spill] sm:$0xff] }
 0x659   :  { %v3704_v56 = vpack.c.bf16 %v3700_v59, %v3700_v59  ;;  %v3703_v48 = vpack.c.bf16 %v3696_v16, %v3696_v16 }
 0x65a   :  { %4157 = vmatpush1.bf16.msra.mxu0 %v8281_v3  ;;  %v9183_v3 = vld [vmem:[#allocation31_spill] sm:$0xff] }
 0x65b   :  { %4143 = vmatprep.mubr.bf16.mxu1 %v3704_v56  ;;  %4184 = vmatprep.mubr.bf16.mxu0 %v3704_v56 }
 0x65c   :  { %4144 = vmatmul.mubr.bf16.vlgmr.msra.gmra.mrb[28].mxu1 %v3703_v48  ;;  %4158 = vmatprep.subr.bf16.mxu0 %v8288_v12  ;;  %v9184_v12 = vld [vmem:[#allocation34_spill] sm:$0xff] }
 0x65d   :  { %4323 = vmatpush1.bf16.msra.mxu1 %v8399_v52  ;;  %4354 = vmatprep.mubr.bf16.mxu1 %v9159_v49  ;;  %v8569_v52 = vld [vmem:[#allocation10 + $0xe0] ss:$16 sps:$4 sm:$0xff]  }
 0x65e   :  { %4159 = vmatpush1.bf16.msra.mxu0 %v8291_v18  ;;  %4324 = vmatprep.subr.bf16.mxu1 %v8401_v19  ;;  %v9185_v18 = vld [vmem:[#allocation35_spill] sm:$0xff]  ;;  %v8573_v19 = vld [vmem:[#allocation10 + $0x104] ss:$16 sps:$4 sm:$0xff]  }
 0x65f   :  { %4160 = vmatprep.subr.bf16.mxu0 %v8293_v15  ;;  %v9186_v15 = vld [vmem:[#allocation36_spill] sm:$0xff] }
 0x661   :  { %4325 = vmatpush1.bf16.msra.mxu1 %v8405_v30  ;;  %v8575_v30 = vld [vmem:[#allocation10 + $0x100] ss:$16 sps:$4 sm:$0xff]  }
 0x662   :  { %4161 = vmatpush1.bf16.msra.mxu0 %v8298_v10  ;;  %4326 = vmatprep.subr.bf16.mxu1 %v8409_v46  ;;  %v8525_v10 = vld [vmem:[#allocation10 + $0x4] ss:$16 sps:$4 sm:$0xff]  }
 0x663   :  { %4162 = vmatprep.subr.bf16.mxu0 %v8301_v63  ;;  %v8527_v63 = vld [vmem:[#allocation10] ss:$16 sps:$4 sm:$0xff]   ;;  %v8579_v46 = vld [vmem:[#allocation10 + $0x124] ss:$16 sps:$4 sm:$0xff]  }
 0x665   :  { %4327 = vmatpush1.bf16.msra.mxu1 %v8411_v22  ;;  %v8581_v22 = vld [vmem:[#allocation10 + $0x120] ss:$16 sps:$4 sm:$0xff]  }
 0x666   :  { %4163 = vmatpush1.bf16.msra.mxu0 %v8304_v40  ;;  %4328 = vmatprep.subr.bf16.mxu1 %v8415_v62  ;;  %v8531_v40 = vld [vmem:[#allocation10 + $0x24] ss:$16 sps:$4 sm:$0xff]  }
 0x667   :  { %4164 = vmatprep.subr.bf16.mxu0 %v8307_v36  ;;  %v8533_v36 = vld [vmem:[#allocation10 + $0x20] ss:$16 sps:$4 sm:$0xff]   ;;  %v8584_v62 = vld [vmem:[#allocation10 + $0x144] ss:$16 sps:$4 sm:$0xff]  }
 0x669   :  { %4329 = vmatpush1.bf16.msra.mxu1 %v8417_v11  ;;  %v8587_v11 = vld [vmem:[#allocation10 + $0x140] ss:$16 sps:$4 sm:$0xff]  }
 0x66a   :  { %4165 = vmatpush1.bf16.msra.mxu0 %v8310_v51  ;;  %4330 = vmatprep.subr.bf16.mxu1 %v8421_v23  ;;  %v8541_v51 = vld [vmem:[#allocation10 + $0x64] ss:$16 sps:$4 sm:$0xff]  }
 0x66b   :  { %4166 = vmatprep.subr.bf16.mxu0 %v8313_v43  ;;  %v8545_v43 = vld [vmem:[#allocation10 + $0x60] ss:$16 sps:$4 sm:$0xff]   ;;  %v8590_v23 = vld [vmem:[#allocation10 + $0x164] ss:$16 sps:$4 sm:$0xff]  }
 0x66d   :  { %4331 = vmatpush1.bf16.msra.mxu1 %v8423_v57  ;;  %v8592_v57 = vld [vmem:[#allocation10 + $0xc] ss:$16 sps:$4 sm:$0xff]  }
 0x66e   :  { %4167 = vmatpush1.bf16.msra.mxu0 %v8316_v25  ;;  %4332 = vmatprep.subr.bf16.mxu1 %v8426_v58  ;;  %v8548_v25 = vld [vmem:[#allocation10 + $0x84] ss:$16 sps:$4 sm:$0xff]   ;;  %v8595_v58 = vld [vmem:[#allocation10 + $0x160] ss:$16 sps:$4 sm:$0xff]  }
 0x66f   :  { %4168 = vmatprep.subr.bf16.mxu0 %v8319_v41  ;;  %v8551_v41 = vld [vmem:[#allocation10 + $0x80] ss:$16 sps:$4 sm:$0xff]  }
 0x671   :  { %4333 = vmatpush1.bf16.msra.mxu1 %v8429_v61  ;;  %v8599_v61 = vld [vmem:[#allocation10 + $0x184] ss:$16 sps:$4 sm:$0xff]  }
 0x672   :  { %4169 = vmatpush1.bf16.msra.mxu0 %v9179_v20  ;;  %4334 = vmatprep.subr.bf16.mxu1 %v8432_v0  ;;  %v8602_v0 = vld [vmem:[#allocation10 + $0x180] ss:$16 sps:$4 sm:$0xff]   ;;  %v3769_v20 = vld [vmem:[%s9101_s4] sm:$0xf] }
 0x673   :  { %4170 = vmatprep.subr.bf16.mxu0 %v9180_v29  ;;  %v4094_v29 = vrot.slane %v3769_v20, %v7596_v14 }
 0x675   :  { %4335 = vmatpush1.bf16.msra.mxu1 %v8435_v31  ;;  %v8605_v31 = vld [vmem:[#allocation10 + $0x1a4] ss:$16 sps:$4 sm:$0xff]  }
 0x676   :  { %4171 = vmatpush1.bf16.msra.mxu0 %v9181_v42  ;;  %4336 = vmatprep.subr.bf16.mxu1 %v8438_v32  ;;  %v8608_v32 = vld [vmem:[#allocation10 + $0x1a0] ss:$16 sps:$4 sm:$0xff]  }
 0x677   :  { %4172 = vmatprep.subr.bf16.mxu0 %v9182_v6 }
 0x679   :  { %4337 = vmatpush1.bf16.msra.mxu1 %v8441_v44  ;;  %v8612_v44 = vld [vmem:[#allocation10 + $0x1c0] ss:$16 sps:$4 sm:$0xff]  }
 0x67a   :  { %4173 = vmatpush1.bf16.msra.mxu0 %v9183_v3  ;;  %4870 = vmatprep.subr.bf16.mxu1 %v8592_v57  ;;  %v4098_v3 = vrot.slane %v3769_v20, %v7566_v54 }
 0x67b   :  { %4174 = vmatprep.subr.bf16.mxu0 %v9184_v12 }
 0x67e   :  { %4175 = vmatpush1.bf16.msra.mxu0 %v9185_v18 }
 0x67f   :  { %4176 = vmatprep.subr.bf16.mxu0 %v9186_v15 }
 0x682   :  { %4177 = vmatpush1.bf16.msra.mxu0 %v8346_v9  ;;  %v8557_v9 = vld [vmem:[#allocation10 + $0xa0] ss:$16 sps:$4 sm:$0xff]  }
 0x683   :  { %4178 = vmatprep.subr.bf16.mxu0 %v8349_v13  ;;  %v8560_v13 = vld [vmem:[#allocation10 + $0xc4] ss:$16 sps:$4 sm:$0xff]  }
 0x686   :  { %4179 = vmatpush1.bf16.msra.mxu0 %v8352_v34  ;;  %v8563_v34 = vld [vmem:[#allocation10 + $0xc0] ss:$16 sps:$4 sm:$0xff]  }
 0x687   :  { %4180 = vmatprep.subr.bf16.mxu0 %v8355_v37  ;;  %v8567_v37 = vld [vmem:[#allocation10 + $0xe4] ss:$16 sps:$4 sm:$0xff]  }
 0x68a   :  { %4181 = vmatpush1.bf16.msra.mxu0 %v8358_v4  ;;  %v8539_v4 = vld [vmem:[#allocation10 + $0x44] ss:$16 sps:$4 sm:$0xff]  }
 0x68b   :  { %4182 = vmatprep.subr.bf16.mxu0 %v8361_v2  ;;  %v8537_v2 = vld [vmem:[#allocation10 + $0x40] ss:$16 sps:$4 sm:$0xff]  }
 0x68e   :  { %4183 = vmatpush1.bf16.msra.mxu0 %v8364_v55  ;;  %v8554_v55 = vld [vmem:[#allocation10 + $0xa4] ss:$16 sps:$4 sm:$0xff]  }
 0x68f   :  { %4829 = vmatprep.subr.bf16.mxu0 %v8525_v10 }
 0x691   :  { %4185 = vmatmul.mubr.bf16.vlgmr.msra.gmra.mrb[32].mxu0 %v3703_v48 }
 0x692   :  { %4830 = vmatpush1.bf16.msra.mxu0 %v8527_v63 }
 0x693   :  { %4831 = vmatprep.subr.bf16.mxu0 %v8531_v40 }
 0x696   :  { %4832 = vmatpush1.bf16.msra.mxu0 %v8533_v36 }
 0x697   :  { %4833 = vmatprep.subr.bf16.mxu0 %v8539_v4 }
 0x69a   :  { %4834 = vmatpush1.bf16.msra.mxu0 %v8537_v2 }
 0x69b   :  { %4835 = vmatprep.subr.bf16.mxu0 %v8541_v51 }
 0x69e   :  { %4836 = vmatpush1.bf16.msra.mxu0 %v8545_v43 }
 0x69f   :  { %4837 = vmatprep.subr.bf16.mxu0 %v8548_v25 }
 0x6a2   :  { %4838 = vmatpush1.bf16.msra.mxu0 %v8551_v41 }
 0x6a3   :  { %4839 = vmatprep.subr.bf16.mxu0 %v8554_v55 }
 0x6a6   :  { %4840 = vmatpush1.bf16.msra.mxu0 %v8557_v9 }
 0x6a7   :  { %4841 = vmatprep.subr.bf16.mxu0 %v8560_v13 }
 0x6aa   :  { %4842 = vmatpush1.bf16.msra.mxu0 %v8563_v34 }
 0x6ab   :  { %4843 = vmatprep.subr.bf16.mxu0 %v8567_v37 }
 0x6ae   :  { %4844 = vmatpush1.bf16.msra.mxu0 %v8569_v52 }
 0x6af   :  { %4845 = vmatprep.subr.bf16.mxu0 %v8573_v19 }
 0x6b2   :  { %4846 = vmatpush1.bf16.msra.mxu0 %v8575_v30 }
 0x6b3   :  { %4847 = vmatprep.subr.bf16.mxu0 %v8579_v46 }
 0x6b6   :  { %4848 = vmatpush1.bf16.msra.mxu0 %v8581_v22 }
 0x6b7   :  { %4849 = vmatprep.subr.bf16.mxu0 %v8584_v62 }
 0x6ba   :  { %4850 = vmatpush1.bf16.msra.mxu0 %v8587_v11 }
 0x6bb   :  { %4851 = vmatprep.subr.bf16.mxu0 %v8590_v23 }
 0x6be   :  { %4852 = vmatpush1.bf16.msra.mxu0 %v8595_v58 }
 0x6bf   :  { %4853 = vmatprep.subr.bf16.mxu0 %v8599_v61 }
 0x6c2   :  { %4854 = vmatpush1.bf16.msra.mxu0 %v8602_v0 }
 0x6c3   :  { %4855 = vmatprep.subr.bf16.mxu0 %v8605_v31 }
 0x6c6   :  { %4856 = vmatpush1.bf16.msra.mxu0 %v8608_v32 }
 0x6c7   :  { %4857 = vmatprep.subr.bf16.mxu0 %v8614_v17 }
 0x6ca   :  { %4858 = vmatpush1.bf16.msra.mxu0 %v8612_v44 }
 0x6cb   :  { %4859 = vmatprep.subr.bf16.mxu0 %v8620_v1 }
 0x6ce   :  { %4860 = vmatpush1.bf16.msra.mxu0 %v8618_v5 }
 0x724   :  { %v3638_v39 = vpop.f32.mrb[28].mxu0 }
 0x725   :  { %v8629_v45 = vadd.f32 %v3638_v39, %v3597_v26  ;;  %v3640_v50 = vpop.f32.mrb[29].mxu0 }
 0x726   :  { %v8631_v60 = vadd.f32 %v3640_v50, %v3601_v38  ;;  %v3642_v7 = vpop.f32.mrb[30].mxu0  ;;  %v4106_v38 = vrot.slane %v3769_v20, %v7707_v21  ;;  %v4102_v50 = vrot.slane %v3769_v20, %v7710_v28  ;;  %v8647_v20 = vld [vmem:[#allocation10 + $0x8] ss:$16 sps:$4 sm:$0xff]  }
 0x727   :  { %9187 = vst [vmem:[#allocation27_spill] sm:$0xff] %v8629_v45  ;;  %v3643_v27 = vpop.f32.mrb[31].mxu0  ;;  %v3645_v53 = vsel %vm771_vm1, %v8629_v45, -inf  ;;  %v8720_v45 = vld [vmem:[#allocation10 + $0x168] ss:$16 sps:$4 sm:$0xff]  }
 0x728   :  { %9188 = vst [vmem:[#allocation28_spill] sm:$0xff] %v8631_v60  ;;  %v3646_v8 = vsel %vm771_vm1, %v8631_v60, -inf  ;;  %v8717_v60 = vld [vmem:[#allocation10 + $0x16c] ss:$16 sps:$4 sm:$0xff]   ;;  %9195 = vst [vmem:[#allocation39_spill] sm:$0xff] %v8720_v45 }
 0x729   :  { %v3647_v24 = vmax.f32 %v3645_v53, %v3646_v8  ;;  %9194 = vst [vmem:[#allocation36_spill] sm:$0xff] %v8717_v60 }
 0x72b   :  { %3648 = vmax.xlane.f32.xlu0 %v3647_v24 }
 0x72f   :  { %v4145_v59 = vpop.f32.mrb[28].mxu1 }
 0x730   :  { %v4147_v16 = vpop.f32.mrb[29].mxu1  ;;  %v4146_v42 = vadd.f32 %v4145_v59, %v4094_v29 }
 0x731   :  { %v4149_v56 = vpop.f32.mrb[30].mxu1  ;;  %v4148_v12 = vadd.f32 %v4147_v16, %v4098_v3 }
 0x732   :  { %v4150_v48 = vpop.f32.mrb[31].mxu1  ;;  %v6359_v6 = vmul.f32 -1.442695, %v4146_v42 }
 0x733   :  { %v6360_v18 = vmul.f32 -1.442695, %v4148_v12 }
 0x734   :  { %7085 = vpow2.f32 %v6359_v6 }
 0x735   :  { %7087 = vpow2.f32 %v6360_v18 }
 0x73e   :  { %v7086_v15 = vpop.eup %7085 }
 0x73f   :  { %v4199_v33 = vadd.f32 1.0, %v7086_v15  ;;  %v7088_v26 = vpop.eup %7087 }
 0x740   :  { %v4200_v39 = vadd.f32 1.0, %v7088_v26  ;;  %v8657_v26 = vld [vmem:[#allocation10 + $0x28] ss:$16 sps:$4 sm:$0xff]  }
 0x741   :  { %7089 = vrcp.f32 %v4199_v33  ;;  %v8654_v33 = vld [vmem:[#allocation10 + $0x2c] ss:$16 sps:$4 sm:$0xff]  }
 0x742   :  { %7091 = vrcp.f32 %v4200_v39 }
 0x74b   :  { %v7090_v24 = vpop.eup %7089 }
 0x74c   :  { %v7092_v29 = vpop.eup %7091 }
 0x74d   :  { %v4208_v42 = vsub.f32 1.0, %v7092_v29  ;;  %v4210_v12 = vmul.f32 %v7092_v29, %v8467_v47  ;;  %v8660_v47 = vld [vmem:[#allocation10 + $0x4c] ss:$16 sps:$4 sm:$0xff]  }
 0x74e   :  { %v8687_v29 = vld [vmem:[#allocation10 + $0xcc] ss:$16 sps:$4 sm:$0xff]  }
 0x764   :  { %v4186_v7 = vpop.f32.mrb[32].mxu0 }
 0x765   :  { %v4188_v27 = vpop.f32.mrb[33].mxu0  ;;  %v4187_v56 = vadd.f32 %v4186_v7, %v4102_v50 }
 0x766   :  { %v4189_v53 = vadd.f32 %v4188_v27, %v4106_v38  ;;  %v4190_v8 = vpop.f32.mrb[34].mxu0  ;;  %v8663_v38 = vld [vmem:[#allocation10 + $0x48] ss:$16 sps:$4 sm:$0xff]   ;;  %v8668_v27 = vld [vmem:[#allocation10 + $0x6c] ss:$16 sps:$4 sm:$0xff]  }
 0x767   :  { %v4191_v59 = vpop.f32.mrb[35].mxu0 }
 0x768   :  { %v4205_v16 = vmul.f32 %v7090_v24, %v4189_v53  ;;  %v8671_v24 = vld [vmem:[#allocation10 + $0x68] ss:$16 sps:$4 sm:$0xff]   ;;  %v8673_v59 = vld [vmem:[#allocation10 + $0x8c] ss:$16 sps:$4 sm:$0xff]  }
 0x76a   :  { %v4206_v48 = vadd.f32 %v4205_v16, %v4187_v56  ;;  %v8678_v56 = vld [vmem:[#allocation10 + $0x88] ss:$16 sps:$4 sm:$0xff]   ;;  %v8681_v16 = vld [vmem:[#allocation10 + $0xac] ss:$16 sps:$4 sm:$0xff]  }
 0x76c   :  { %7093 = vtanh.f32 %v4206_v48  ;;  %v8684_v48 = vld [vmem:[#allocation10 + $0xa8] ss:$16 sps:$4 sm:$0xff]  }
 0x776   :  { %v7094_v6 = vpop.eup %7093 }
 0x777   :  { %v4209_v3 = vmul.f32 %v7094_v6, %v4208_v42  ;;  %v8690_v42 = vld [vmem:[#allocation10 + $0xc8] ss:$16 sps:$4 sm:$0xff]   ;;  %v8693_v6 = vld [vmem:[#allocation10 + $0xec] ss:$16 sps:$4 sm:$0xff]  }
 0x779   :  { %v8645_v18 = vadd.f32 %v4210_v12, %v4209_v3  ;;  %v8696_v3 = vld [vmem:[#allocation10 + $0xe8] ss:$16 sps:$4 sm:$0xff]   ;;  %v8699_v12 = vld [vmem:[#allocation10 + $0x10c] ss:$16 sps:$4 sm:$0xff]  }
 0x77b   :  { %v4213_v15 = vpack.c.bf16 %v8645_v18, %v8645_v18  ;;  %4212 = vst.msk [vmem:[#allocation2 + $0x1] sm:$0x1] %vm7516_vm0, %v8645_v18 }
 0x77d   :  { %4355 = vmatmul.mubr.bf16.vlgmr.msra.gmra.mrb[32].mxu1 %v4213_v15  ;;  %v8702_v15 = vld [vmem:[#allocation10 + $0x108] ss:$16 sps:$4 sm:$0xff]  }
 0x77e   :  { %4871 = vmatpush1.bf16.msra.mxu1 %v8647_v20  ;;  %9189 = vst [vmem:[#allocation29_spill] sm:$0xff] %v8702_v15 }
 0x77f   :  { %4872 = vmatprep.subr.bf16.mxu1 %v8654_v33 }
 0x782   :  { %4873 = vmatpush1.bf16.msra.mxu1 %v8657_v26  ;;  %v4409_v39 = vld [vmem:[#allocation2] sm:$0x3] }
 0x783   :  { %4874 = vmatprep.subr.bf16.mxu1 %v8660_v47  ;;  %v4418_v50 = vrot.slane %v4409_v39, %v7566_v54  ;;  %v4414_v7 = vrot.slane %v4409_v39, %v7596_v14  ;;  %v8705_v39 = vld [vmem:[#allocation10 + $0x12c] ss:$16 sps:$4 sm:$0xff]  }
 0x784   :  { %9190 = vst [vmem:[#allocation30_spill] sm:$0xff] %v8705_v39 }
 0x785   :  { %v4422_v53 = vpack.c.bf16 %v4418_v50, %v4418_v50  ;;  %v4421_v8 = vpack.c.bf16 %v4414_v7, %v4414_v7  ;;  %v8708_v50 = vld [vmem:[#allocation10 + $0x128] ss:$16 sps:$4 sm:$0xff]   ;;  %v8711_v7 = vld [vmem:[#allocation10 + $0x14c] ss:$16 sps:$4 sm:$0xff]  }
 0x786   :  { %4875 = vmatpush1.bf16.msra.mxu1 %v8663_v38  ;;  %9191 = vst [vmem:[#allocation31_spill] sm:$0xff] %v8708_v50  ;;  %9192 = vst [vmem:[#allocation34_spill] sm:$0xff] %v8711_v7 }
 0x787   :  { %4861 = vmatprep.mubr.bf16.mxu0 %v4422_v53  ;;  %4902 = vmatprep.mubr.bf16.mxu1 %v4422_v53  ;;  %v8714_v53 = vld [vmem:[#allocation10 + $0x148] ss:$16 sps:$4 sm:$0xff]  }
 0x788   :  { %4862 = vmatmul.mubr.bf16.vlgmr.msra.gmra.mrb[36].mxu0 %v4421_v8  ;;  %4876 = vmatprep.subr.bf16.mxu1 %v8668_v27  ;;  %9193 = vst [vmem:[#allocation35_spill] sm:$0xff] %v8714_v53 }
 0x789   :  { %5072 = vmatprep.mubr.bf16.mxu0 %v9159_v49 }
 0x78a   :  { %4877 = vmatpush1.bf16.msra.mxu1 %v8671_v24 }
 0x78b   :  { %4878 = vmatprep.subr.bf16.mxu1 %v8673_v59 }
 0x78e   :  { %4879 = vmatpush1.bf16.msra.mxu1 %v8678_v56 }
 0x78f   :  { %4880 = vmatprep.subr.bf16.mxu1 %v8681_v16 }
 0x792   :  { %4881 = vmatpush1.bf16.msra.mxu1 %v8684_v48 }
 0x793   :  { %4882 = vmatprep.subr.bf16.mxu1 %v8687_v29 }
 0x796   :  { %4883 = vmatpush1.bf16.msra.mxu1 %v8690_v42 }
 0x797   :  { %4884 = vmatprep.subr.bf16.mxu1 %v8693_v6 }
 0x79a   :  { %4885 = vmatpush1.bf16.msra.mxu1 %v8696_v3 }
 0x79b   :  { %4886 = vmatprep.subr.bf16.mxu1 %v8699_v12 }
 0x79e   :  { %4887 = vmatpush1.bf16.msra.mxu1 %v8702_v15  ;;  %v8723_v15 = vld [vmem:[#allocation10 + $0x18c] ss:$16 sps:$4 sm:$0xff]  }
 0x79f   :  { %4888 = vmatprep.subr.bf16.mxu1 %v8705_v39  ;;  %9196 = vst [vmem:[#allocation40_spill] sm:$0xff] %v8723_v15  ;;  %v8726_v39 = vld [vmem:[#allocation10 + $0x188] ss:$16 sps:$4 sm:$0xff]  }
 0x7a2   :  { %4889 = vmatpush1.bf16.msra.mxu1 %v8708_v50  ;;  %v8729_v50 = vld [vmem:[#allocation10 + $0x1ac] ss:$16 sps:$4 sm:$0xff]  }
 0x7a3   :  { %4890 = vmatprep.subr.bf16.mxu1 %v8711_v7  ;;  %v8732_v7 = vld [vmem:[#allocation10 + $0x1a8] ss:$16 sps:$4 sm:$0xff]  }
 0x7a6   :  { %4891 = vmatpush1.bf16.msra.mxu1 %v8714_v53  ;;  %v8735_v53 = vld [vmem:[#allocation10 + $0x1cc] ss:$16 sps:$4 sm:$0xff]  }
 0x7a7   :  { %4892 = vmatprep.subr.bf16.mxu1 %v8717_v60  ;;  %v8738_v60 = vld [vmem:[#allocation10 + $0x1c8] ss:$16 sps:$4 sm:$0xff]  }
 0x7aa   :  { %4893 = vmatpush1.bf16.msra.mxu1 %v8720_v45  ;;  %v8741_v45 = vld [vmem:[#allocation10 + $0x1ec] ss:$16 sps:$4 sm:$0xff]  }
 0x7ab   :  { %4894 = vmatprep.subr.bf16.mxu1 %v8723_v15  ;;  %v8744_v15 = vld [vmem:[#allocation10 + $0x1e8] ss:$16 sps:$4 sm:$0xff]  }
 0x7ae   :  { %4895 = vmatpush1.bf16.msra.mxu1 %v8726_v39 }
 0x7af   :  { %4896 = vmatprep.subr.bf16.mxu1 %v8729_v50 }
 0x7b2   :  { %4897 = vmatpush1.bf16.msra.mxu1 %v8732_v7 }
 0x7b3   :  { %4898 = vmatprep.subr.bf16.mxu1 %v8735_v53 }
 0x7b6   :  { %4899 = vmatpush1.bf16.msra.mxu1 %v8738_v60 }
 0x7b7   :  { %4900 = vmatprep.subr.bf16.mxu1 %v8741_v45 }
 0x7ba   :  { %4901 = vmatpush1.bf16.msra.mxu1 %v8744_v15 }
 0x7bb   :  { %5547 = vmatprep.subr.bf16.mxu1 %v8525_v10  ;;  %v8779_v10 = vld [vmem:[#allocation11] ss:$8 sps:$4 sm:$0xff]  }
 0x7bd   :  { %4903 = vmatmul.mubr.bf16.vlgmr.msra.gmra.mrb[36].mxu1 %v4421_v8 }
 0x7be   :  { %5548 = vmatpush1.bf16.msra.mxu1 %v8527_v63  ;;  %v7013_v63 = vld [vmem:[#allocation11 + $0x4] ss:$8 sps:$4 sm:$0xff]  }
 0x7bf   :  { %5549 = vmatprep.subr.bf16.mxu1 %v8531_v40  ;;  %v8781_v40 = vld [vmem:[#allocation11 + $0x14] ss:$8 sps:$4 sm:$0xff]   ;;  %5040 = vmatprep.subr.bf16.mxu0 %v7013_v63 }
 0x7c0   :  { %5041 = vmatpush1.bf16.msra.mxu0 %v8779_v10 }
 0x7c1   :  { %5042 = vmatprep.subr.bf16.mxu0 %v8781_v40 }
 0x7c2   :  { %5550 = vmatpush1.bf16.msra.mxu1 %v8533_v36  ;;  %v8785_v36 = vld [vmem:[#allocation11 + $0x10] ss:$8 sps:$4 sm:$0xff]  }
 0x7c3   :  { %5551 = vmatprep.subr.bf16.mxu1 %v8539_v4  ;;  %v8791_v4 = vld [vmem:[#allocation11 + $0x20] ss:$8 sps:$4 sm:$0xff]  }
 0x7c4   :  { %5043 = vmatpush1.bf16.msra.mxu0 %v8785_v36 }
 0x7c6   :  { %5552 = vmatpush1.bf16.msra.mxu1 %v8537_v2  ;;  %v8789_v2 = vld [vmem:[#allocation11 + $0x24] ss:$8 sps:$4 sm:$0xff]  }
 0x7c7   :  { %5553 = vmatprep.subr.bf16.mxu1 %v8541_v51  ;;  %5044 = vmatprep.subr.bf16.mxu0 %v8789_v2  ;;  %v8795_v51 = vld [vmem:[#allocation11 + $0x34] ss:$8 sps:$4 sm:$0xff]  }
 0x7c8   :  { %5045 = vmatpush1.bf16.msra.mxu0 %v8791_v4 }
 0x7c9   :  { %5046 = vmatprep.subr.bf16.mxu0 %v8795_v51 }
 0x7ca   :  { %5554 = vmatpush1.bf16.msra.mxu1 %v8545_v43  ;;  %v8797_v43 = vld [vmem:[#allocation11 + $0x30] ss:$8 sps:$4 sm:$0xff]  }
 0x7cb   :  { %5555 = vmatprep.subr.bf16.mxu1 %v8548_v25  ;;  %v8801_v25 = vld [vmem:[#allocation11 + $0x44] ss:$8 sps:$4 sm:$0xff]  }
 0x7cc   :  { %5047 = vmatpush1.bf16.msra.mxu0 %v8797_v43 }
 0x7cd   :  { %5048 = vmatprep.subr.bf16.mxu0 %v8801_v25 }
 0x7ce   :  { %5556 = vmatpush1.bf16.msra.mxu1 %v8551_v41  ;;  %v8803_v41 = vld [vmem:[#allocation11 + $0x40] ss:$8 sps:$4 sm:$0xff]  }
 0x7cf   :  { %5557 = vmatprep.subr.bf16.mxu1 %v8554_v55  ;;  %v8806_v55 = vld [vmem:[#allocation11 + $0x54] ss:$8 sps:$4 sm:$0xff]  }
 0x7d0   :  { %5049 = vmatpush1.bf16.msra.mxu0 %v8803_v41 }
 0x7d1   :  { %5050 = vmatprep.subr.bf16.mxu0 %v8806_v55 }
 0x7d2   :  { %5558 = vmatpush1.bf16.msra.mxu1 %v8557_v9  ;;  %v8809_v9 = vld [vmem:[#allocation11 + $0x50] ss:$8 sps:$4 sm:$0xff]  }
 0x7d3   :  { %5559 = vmatprep.subr.bf16.mxu1 %v8560_v13  ;;  %v8812_v13 = vld [vmem:[#allocation11 + $0x64] ss:$8 sps:$4 sm:$0xff]  }
 0x7d4   :  { %5051 = vmatpush1.bf16.msra.mxu0 %v8809_v9 }
 0x7d5   :  { %5052 = vmatprep.subr.bf16.mxu0 %v8812_v13 }
 0x7d6   :  { %5560 = vmatpush1.bf16.msra.mxu1 %v8563_v34  ;;  %v8815_v34 = vld [vmem:[#allocation11 + $0x60] ss:$8 sps:$4 sm:$0xff]  }
 0x7d7   :  { %5561 = vmatprep.subr.bf16.mxu1 %v8567_v37  ;;  %v8818_v37 = vld [vmem:[#allocation11 + $0x74] ss:$8 sps:$4 sm:$0xff]  }
 0x7d8   :  { %5053 = vmatpush1.bf16.msra.mxu0 %v8815_v34 }
 0x7d9   :  { %5054 = vmatprep.subr.bf16.mxu0 %v8818_v37 }
 0x7da   :  { %5562 = vmatpush1.bf16.msra.mxu1 %v8569_v52  ;;  %v8821_v52 = vld [vmem:[#allocation11 + $0x70] ss:$8 sps:$4 sm:$0xff]  }
 0x7db   :  { %5563 = vmatprep.subr.bf16.mxu1 %v8573_v19  ;;  %v5124_v19 = vld [vmem:[%s5123_s22] sm:$0x1] }
 0x7dc   :  { %5055 = vmatpush1.bf16.msra.mxu0 %v8821_v52 }
 0x7dd   :  { %5588 = vmatprep.subr.bf16.mxu0 %v8592_v57 }
 0x7de   :  { %5564 = vmatpush1.bf16.msra.mxu1 %v8575_v30  ;;  %v5125_v30 = vmax.f32 %v5124_v19, 0.0 }
 0x7df   :  { %5565 = vmatprep.subr.bf16.mxu1 %v8579_v46  ;;  %v4230_v46 = vld [vmem:[%s9103_s6] sm:$0x3] }
 0x7e0   :  { %5126 = vst.msk [vmem:[#allocation2] sm:$0x1] %vm7516_vm0, %v5125_v30 }
 0x7e2   :  { %5566 = vmatpush1.bf16.msra.mxu1 %v8581_v22  ;;  %v4315_v22 = vrot.slane %v4230_v46, %v7596_v14 }
 0x7e3   :  { %5567 = vmatprep.subr.bf16.mxu1 %v8584_v62  ;;  %v4319_v62 = vrot.slane %v4230_v46, %v7566_v54 }
 0x7e6   :  { %5568 = vmatpush1.bf16.msra.mxu1 %v8587_v11 }
 0x7e7   :  { %5569 = vmatprep.subr.bf16.mxu1 %v8590_v23 }
 0x7ea   :  { %5570 = vmatpush1.bf16.msra.mxu1 %v8595_v58 }
 0x7eb   :  { %5571 = vmatprep.subr.bf16.mxu1 %v8599_v61 }
 0x7ee   :  { %5572 = vmatpush1.bf16.msra.mxu1 %v8602_v0 }
 0x7ef   :  { %5573 = vmatprep.subr.bf16.mxu1 %v8605_v31 }
 0x7f2   :  { %5574 = vmatpush1.bf16.msra.mxu1 %v8608_v32 }
 0x7f3   :  { %5575 = vmatprep.subr.bf16.mxu1 %v8614_v17 }
 0x7f6   :  { %5576 = vmatpush1.bf16.msra.mxu1 %v8612_v44 }
 0x7f7   :  { %5577 = vmatprep.subr.bf16.mxu1 %v8620_v1 }
 0x7fa   :  { %5578 = vmatpush1.bf16.msra.mxu1 %v8618_v5 }
 0x7fb   :  { %5758 = vmatprep.subr.bf16.mxu1 %v7013_v63  ;;  %v4487_v63 = vld [vmem:[%s9101_s4] sm:$0xf] }
 0x7fc   :  { %v4812_v19 = vrot.slane %v4487_v63, %v7596_v14 }
 0x850   :  { %v4356_v11 = vpop.f32.mrb[32].mxu1 }
 0x851   :  { %v8833_v23 = vadd.f32 %v4356_v11, %v4315_v22  ;;  %v4358_v58 = vpop.f32.mrb[33].mxu1  ;;  %v4816_v22 = vrot.slane %v4487_v63, %v7566_v54 }
 0x852   :  { %v8835_v61 = vadd.f32 %v4358_v58, %v4319_v62  ;;  %v4360_v0 = vpop.f32.mrb[34].mxu1 }
 0x853   :  { %9197 = vst [vmem:[#allocation41_spill] sm:$0xff] %v8833_v23  ;;  %v4361_v57 = vpop.f32.mrb[35].mxu1  ;;  %v4363_v31 = vsel %vm771_vm1, %v8833_v23, -inf }
 0x854   :  { %9198 = vst [vmem:[#allocation42_spill] sm:$0xff] %v8835_v61  ;;  %v4364_v32 = vsel %vm771_vm1, %v8835_v61, -inf }
 0x855   :  { %v4365_v44 = vmax.f32 %v4363_v31, %v4364_v32  ;;  %v4824_v31 = vrot.slane %v4487_v63, %v7707_v21 }
 0x857   :  { %4366 = vmax.xlane.f32.xlu1 %v4365_v44  ;;  %v4820_v44 = vrot.slane %v4487_v63, %v7710_v28 }
 0x85b   :  { %v4863_v17 = vpop.f32.mrb[36].mxu0 }
 0x85c   :  { %v4865_v5 = vpop.f32.mrb[37].mxu0  ;;  %v4864_v30 = vadd.f32 %v4863_v17, %v4812_v19 }
 0x85d   :  { %v4867_v1 = vpop.f32.mrb[38].mxu0  ;;  %v4866_v62 = vadd.f32 %v4865_v5, %v4816_v22 }
 0x85e   :  { %v4868_v8 = vpop.f32.mrb[39].mxu0  ;;  %v6442_v46 = vmul.f32 -1.442695, %v4864_v30 }
 0x85f   :  { %v6443_v11 = vmul.f32 -1.442695, %v4866_v62 }
 0x860   :  { %7095 = vpow2.f32 %v6442_v46 }
 0x861   :  { %7097 = vpow2.f32 %v6443_v11 }
 0x86a   :  { %v7096_v58 = vpop.eup %7095 }
 0x86b   :  { %v4917_v0 = vadd.f32 1.0, %v7096_v58  ;;  %v7098_v57 = vpop.eup %7097 }
 0x86c   :  { %v4918_v32 = vadd.f32 1.0, %v7098_v57 }
 0x86d   :  { %7099 = vrcp.f32 %v4917_v0 }
 0x86e   :  { %7101 = vrcp.f32 %v4918_v32 }
 0x877   :  { %v7100_v19 = vpop.eup %7099 }
 0x878   :  { %v7102_v62 = vpop.eup %7101 }
 0x879   :  { %v4926_v11 = vsub.f32 1.0, %v7102_v62  ;;  %v4928_v23 = vmul.f32 %v7102_v62, %v8645_v18 }
 0x890   :  { %v4904_v1 = vpop.f32.mrb[36].mxu1 }
 0x891   :  { %v4906_v8 = vpop.f32.mrb[37].mxu1  ;;  %v4905_v46 = vadd.f32 %v4904_v1, %v4820_v44 }
 0x892   :  { %v4907_v61 = vadd.f32 %v4906_v8, %v4824_v31  ;;  %v4908_v17 = vpop.f32.mrb[38].mxu1 }
 0x893   :  { %v4909_v30 = vpop.f32.mrb[39].mxu1 }
 0x894   :  { %v4923_v5 = vmul.f32 %v7100_v19, %v4907_v61 }
 0x896   :  { %v4924_v22 = vadd.f32 %v4923_v5, %v4905_v46 }
 0x898   :  { %7103 = vtanh.f32 %v4924_v22 }
 0x8a2   :  { %v7104_v58 = vpop.eup %7103 }
 0x8a3   :  { %v4927_v0 = vmul.f32 %v7104_v58, %v4926_v11 }
 0x8a5   :  { %v8849_v57 = vadd.f32 %v4928_v23, %v4927_v0 }
 0x8a7   :  { %v4931_v63 = vpack.c.bf16 %v8849_v57, %v8849_v57  ;;  %4930 = vst.msk [vmem:[#allocation2 + $0x1] sm:$0x1] %vm7516_vm0, %v8849_v57 }
 0x8a9   :  { %5073 = vmatmul.mubr.bf16.vlgmr.msra.gmra.mrb[40].mxu0 %v4931_v63 }
 0x8aa   :  { %5589 = vmatpush1.bf16.msra.mxu0 %v8647_v20  ;;  %v9200_v20 = vld [vmem:[#allocation30_spill] sm:$0xff] }
 0x8ab   :  { %5590 = vmatprep.subr.bf16.mxu0 %v8654_v33  ;;  %v9201_v33 = vld [vmem:[#allocation31_spill] sm:$0xff] }
 0x8ae   :  { %5591 = vmatpush1.bf16.msra.mxu0 %v8657_v26  ;;  %v5127_v61 = vld [vmem:[#allocation2] sm:$0x3]  ;;  %v9202_v26 = vld [vmem:[#allocation34_spill] sm:$0xff] }
 0x8af   :  { %5592 = vmatprep.subr.bf16.mxu0 %v8660_v47  ;;  %v5136_v18 = vrot.slane %v5127_v61, %v7566_v54  ;;  %v5132_v23 = vrot.slane %v5127_v61, %v7596_v14  ;;  %v9203_v47 = vld [vmem:[#allocation35_spill] sm:$0xff] }
 0x8b1   :  { %v5140_v31 = vpack.c.bf16 %v5136_v18, %v5136_v18  ;;  %v5139_v32 = vpack.c.bf16 %v5132_v23, %v5132_v23 }
 0x8b2   :  { %5593 = vmatpush1.bf16.msra.mxu0 %v8663_v38  ;;  %v9204_v38 = vld [vmem:[#allocation36_spill] sm:$0xff] }
 0x8b3   :  { %5579 = vmatprep.mubr.bf16.mxu1 %v5140_v31  ;;  %5620 = vmatprep.mubr.bf16.mxu0 %v5140_v31 }
 0x8b4   :  { %5580 = vmatmul.mubr.bf16.vlgmr.msra.gmra.mrb[40].mxu1 %v5139_v32  ;;  %5594 = vmatprep.subr.bf16.mxu0 %v8668_v27  ;;  %v9205_v27 = vld [vmem:[#allocation39_spill] sm:$0xff] }
 0x8b5   :  { %5759 = vmatpush1.bf16.msra.mxu1 %v8779_v10  ;;  %5790 = vmatprep.mubr.bf16.mxu1 %v9159_v49  ;;  %v9199_v49 = vld [vmem:[#allocation29_spill] sm:$0xff] }
 0x8b6   :  { %5595 = vmatpush1.bf16.msra.mxu0 %v8671_v24  ;;  %5760 = vmatprep.subr.bf16.mxu1 %v8781_v40  ;;  %v9206_v24 = vld [vmem:[#allocation40_spill] sm:$0xff] }
 0x8b7   :  { %5596 = vmatprep.subr.bf16.mxu0 %v8673_v59  ;;  %v776_v59 = vpop.xlane.xlu0 %775 }
 0x8b9   :  { %5761 = vmatpush1.bf16.msra.mxu1 %v8785_v36  ;;  %v9212_v36 = vld [vmem:[#allocation28_spill] sm:$0xff] }
 0x8ba   :  { %5597 = vmatpush1.bf16.msra.mxu0 %v8678_v56  ;;  %5762 = vmatprep.subr.bf16.mxu1 %v8789_v2  ;;  %v9207_v56 = vld [vmem:[#allocation23_spill] sm:$0xff] }
 0x8bb   :  { %5598 = vmatprep.subr.bf16.mxu0 %v8681_v16  ;;  %v8906_v16 = vsub.f32 %v9207_v56, %v776_v59 }
 0x8bd   :  { %5763 = vmatpush1.bf16.msra.mxu1 %v8791_v4  ;;  %v4948_v4 = vld [vmem:[%s9103_s6] sm:$0x3] }
 0x8be   :  { %5599 = vmatpush1.bf16.msra.mxu0 %v8684_v48  ;;  %5764 = vmatprep.subr.bf16.mxu1 %v8795_v51  ;;  %v9208_v48 = vld [vmem:[#allocation24_spill] sm:$0xff] }
 0x8bf   :  { %5600 = vmatprep.subr.bf16.mxu0 %v8687_v29  ;;  %v8909_v29 = vsub.f32 %v9208_v48, %v776_v59 }
 0x8c1   :  { %5765 = vmatpush1.bf16.msra.mxu1 %v8797_v43 }
 0x8c2   :  { %5601 = vmatpush1.bf16.msra.mxu0 %v8690_v42  ;;  %5766 = vmatprep.subr.bf16.mxu1 %v8801_v25  ;;  %v8911_v42 = vpop.xlane.xlu0 %1494  ;;  %v5033_v25 = vrot.slane %v4948_v4, %v7596_v14 }
 0x8c3   :  { %5602 = vmatprep.subr.bf16.mxu0 %v8693_v6  ;;  %v2213_v6 = vpop.xlane.xlu1 %2212 }
 0x8c5   :  { %5767 = vmatpush1.bf16.msra.mxu1 %v8803_v41  ;;  %v5037_v41 = vrot.slane %v4948_v4, %v7566_v54 }
 0x8c6   :  { %5603 = vmatpush1.bf16.msra.mxu0 %v8696_v3  ;;  %5768 = vmatprep.subr.bf16.mxu1 %v8806_v55  ;;  %v779_v3 = vmul.f32 1.442695, %v8906_v16 }
 0x8c7   :  { %5604 = vmatprep.subr.bf16.mxu0 %v8699_v12  ;;  %v9209_v12 = vld [vmem:[#allocation25_spill] sm:$0xff] }
 0x8c8   :  { %7105 = vpow2.f32 %v779_v3 }
 0x8c9   :  { %5769 = vmatpush1.bf16.msra.mxu1 %v8809_v9 }
 0x8ca   :  { %5605 = vmatpush1.bf16.msra.mxu0 %v9199_v49  ;;  %5770 = vmatprep.subr.bf16.mxu1 %v8812_v13 }
 0x8cb   :  { %5606 = vmatprep.subr.bf16.mxu0 %v9200_v20 }
 0x8cd   :  { %5771 = vmatpush1.bf16.msra.mxu1 %v8815_v34 }
 0x8ce   :  { %5607 = vmatpush1.bf16.msra.mxu0 %v9201_v33  ;;  %5772 = vmatprep.subr.bf16.mxu1 %v8818_v37 }
 0x8cf   :  { %5608 = vmatprep.subr.bf16.mxu0 %v9202_v26  ;;  %v5205_v26 = vld [vmem:[%s9101_s4] sm:$0xf] }
 0x8d1   :  { %5773 = vmatpush1.bf16.msra.mxu1 %v8821_v52 }
 0x8d2   :  { %5609 = vmatpush1.bf16.msra.mxu0 %v9203_v47  ;;  %v7106_v34 = vpop.eup %7105  ;;  %v5530_v47 = vrot.slane %v5205_v26, %v7596_v14 }
 0x8d3   :  { %5610 = vmatprep.subr.bf16.mxu0 %v9204_v38  ;;  %v783_v46 = vsel %vm771_vm1, %v7106_v34, 0.0 }
 0x8d6   :  { %5611 = vmatpush1.bf16.msra.mxu0 %v9205_v27 }
 0x8d7   :  { %5612 = vmatprep.subr.bf16.mxu0 %v9206_v24  ;;  %v5534_v24 = vrot.slane %v5205_v26, %v7566_v54 }
 0x8da   :  { %5613 = vmatpush1.bf16.msra.mxu0 %v8726_v39  ;;  %v8915_v39 = vsub.f32 %v9209_v12, %v2213_v6  ;;  %v5542_v12 = vrot.slane %v5205_v26, %v7707_v21 }
 0x8db   :  { %5614 = vmatprep.subr.bf16.mxu0 %v8729_v50  ;;  %v3649_v50 = vpop.xlane.xlu0 %3648 }
 0x8dc   :  { %v8927_v2 = vsub.f32 %v9212_v36, %v3649_v50 }
 0x8de   :  { %5615 = vmatpush1.bf16.msra.mxu0 %v8732_v7  ;;  %v2216_v7 = vmul.f32 1.442695, %v8915_v39  ;;  %v3654_v43 = vmul.f32 1.442695, %v8927_v2 }
 0x8df   :  { %5616 = vmatprep.subr.bf16.mxu0 %v8735_v53  ;;  %v9211_v53 = vld [vmem:[#allocation27_spill] sm:$0xff] }
 0x8e0   :  { %v8923_v10 = vsub.f32 %v9211_v53, %v3649_v50 }
 0x8e2   :  { %5617 = vmatpush1.bf16.msra.mxu0 %v8738_v60  ;;  %v9210_v60 = vld [vmem:[#allocation26_spill] sm:$0xff]  ;;  %v3652_v51 = vmul.f32 1.442695, %v8923_v10 }
 0x8e3   :  { %5618 = vmatprep.subr.bf16.mxu0 %v8741_v45  ;;  %v781_v45 = vmul.f32 1.442695, %v8909_v29 }
 0x8e5   :  { %7107 = vpow2.f32 %v781_v45 }
 0x8e6   :  { %5619 = vmatpush1.bf16.msra.mxu0 %v8744_v15  ;;  %v8919_v15 = vsub.f32 %v9210_v60, %v2213_v6  ;;  %7109 = vpow2.f32 %v2216_v7  ;;  %v5538_v60 = vrot.slane %v5205_v26, %v7710_v28 }
 0x8e8   :  { %v2218_v40 = vmul.f32 1.442695, %v8919_v15 }
 0x8e9   :  { %5621 = vmatmul.mubr.bf16.vlgmr.msra.gmra.mrb[44].mxu0 %v5139_v32 }
 0x8ea   :  { %7111 = vpow2.f32 %v2218_v40 }
 0x8eb   :  { %7113 = vpow2.f32 %v3652_v51 }
 0x8ec   :  { %7115 = vpow2.f32 %v3654_v43 }
 0x8ef   :  { %v7108_v44 = vpop.eup %7107 }
 0x8f0   :  { %v7110_v30 = vpop.eup %7109  ;;  %v784_v5 = vsel %vm771_vm1, %v7108_v44, 0.0 }
 0x8f1   :  { %v785_v62 = vadd.f32 %v784_v5, %v783_v46  ;;  %v2220_v58 = vsel %vm771_vm1, %v7110_v30, 0.0 }
 0x8f4   :  { %v7112_v22 = vpop.eup %7111 }
 0x8f5   :  { %v7114_v11 = vpop.eup %7113  ;;  %v2221_v0 = vsel %vm771_vm1, %v7112_v22, 0.0 }
 0x8f6   :  { %v7116_v63 = vpop.eup %7115  ;;  %v2222_v31 = vadd.f32 %v2221_v0, %v2220_v58  ;;  %v3656_v49 = vsel %vm771_vm1, %v7114_v11, 0.0 }
 0x8f7   :  { %v3657_v20 = vsel %vm771_vm1, %v7116_v63, 0.0 }
 0x8f8   :  { %v3658_v33 = vadd.f32 %v3657_v20, %v3656_v49 }
 0x97c   :  { %v5074_v55 = vpop.f32.mrb[40].mxu0 }
 0x97d   :  { %v8936_v9 = vadd.f32 %v5074_v55, %v5033_v25  ;;  %v5076_v13 = vpop.f32.mrb[41].mxu0 }
 0x97e   :  { %v8938_v37 = vadd.f32 %v5076_v13, %v5037_v41  ;;  %v5078_v52 = vpop.f32.mrb[42].mxu0 }
 0x97f   :  { %v5079_v1 = vpop.f32.mrb[43].mxu0  ;;  %v5081_v8 = vsel %vm771_vm1, %v8936_v9, -inf }
 0x980   :  { %v5082_v17 = vsel %vm771_vm1, %v8938_v37, -inf }
 0x981   :  { %v5083_v19 = vmax.f32 %v5081_v8, %v5082_v17 }
 0x983   :  { %5084 = vmax.xlane.f32.xlu0 %v5083_v19 }
 0x987   :  { %786 = vadd.xlane.f32.xlu0 %v785_v62  ;;  %v5581_v61 = vpop.f32.mrb[40].mxu1 }
 0x988   :  { %v5583_v18 = vpop.f32.mrb[41].mxu1  ;;  %v5582_v38 = vadd.f32 %v5581_v61, %v5530_v47 }
 0x989   :  { %v5585_v23 = vpop.f32.mrb[42].mxu1  ;;  %v5584_v59 = vadd.f32 %v5583_v18, %v5534_v24  ;;  %v9213_v18 = vld [vmem:[#allocation22_spill] sm:$0xff] }
 0x98a   :  { %v5586_v32 = vpop.f32.mrb[43].mxu1  ;;  %v6525_v27 = vmul.f32 -1.442695, %v5582_v38 }
 0x98b   :  { %2223 = vadd.xlane.f32.xlu0 %v2222_v31  ;;  %v6526_v56 = vmul.f32 -1.442695, %v5584_v59  ;;  %v9214_v59 = vlaneseq }
 0x98c   :  { %7117 = vpow2.f32 %v6525_v27 }
 0x98d   :  { %7119 = vpow2.f32 %v6526_v56  ;;  %vm8979_vm2 = vcmp.lt.s32.totalorder %v9214_v59, 256 }
 0x98f   :  { %3659 = vadd.xlane.f32.xlu0 %v3658_v33 }
 0x996   :  { %v7118_v48 = vpop.eup %7117 }
 0x997   :  { %v5635_v6 = vadd.f32 1.0, %v7118_v48  ;;  %v7120_v3 = vpop.eup %7119 }
 0x998   :  { %v5636_v45 = vadd.f32 1.0, %v7120_v3 }
 0x999   :  { %7121 = vrcp.f32 %v5635_v6 }
 0x99a   :  { %7123 = vrcp.f32 %v5636_v45 }
 0x9a3   :  { %v7122_v36 = vpop.eup %7121 }
 0x9a4   :  { %v7124_v41 = vpop.eup %7123 }
 0x9a5   :  { %v5644_v55 = vsub.f32 1.0, %v7124_v41  ;;  %v5646_v21 = vmul.f32 %v7124_v41, %v8849_v57  ;;  %v7342_v57 = vmov 1966171168   ;;  %v9221_v41 = vld [vmem:[#allocation41_spill] sm:$0xff] }
 0x9a6   :  { %v796_v46 = vunpack.c.l.s4 %v7342_v57 }
 0x9a8   :  { %v797_v62 = vunpack.c.0.s8 %v796_v46 }
 0x9aa   :  { %v8971_v23 = vsub.s32 %v797_v62, %v9213_v18 }
 0x9bc   :  { %v5622_v50 = vpop.f32.mrb[44].mxu0 }
 0x9bd   :  { %v5624_v7 = vpop.f32.mrb[45].mxu0  ;;  %v5623_v51 = vadd.f32 %v5622_v50, %v5538_v60  ;;  %v2931_v50 = vpop.xlane.xlu1 %2930 }
 0x9be   :  { %v5625_v53 = vadd.f32 %v5624_v7, %v5542_v12  ;;  %v5626_v40 = vpop.f32.mrb[46].mxu0 }
 0x9bf   :  { %v5627_v4 = vpop.f32.mrb[47].mxu0 }
 0x9c0   :  { %v5641_v43 = vmul.f32 %v7122_v36, %v5625_v53  ;;  %v9219_v53 = vld [vmem:[#allocation37_spill] sm:$0xff]  ;;  %v9220_v4 = vld [vmem:[#allocation38_spill] sm:$0xff] }
 0x9c1   :  { %v9006_v40 = vsub.f32 %v9219_v53, %v2931_v50 }
 0x9c2   :  { %v5642_v25 = vadd.f32 %v5641_v43, %v5623_v51  ;;  %v9010_v51 = vsub.f32 %v9220_v4, %v2931_v50  ;;  %v4367_v43 = vpop.xlane.xlu1 %4366 }
 0x9c4   :  { %7125 = vtanh.f32 %v5642_v25  ;;  %v2934_v25 = vmul.f32 1.442695, %v9006_v40 }
 0x9ce   :  { %v7126_v13 = vpop.eup %7125 }
 0x9cf   :  { %v5645_v34 = vmul.f32 %v7126_v13, %v5644_v55  ;;  %v9014_v55 = vsub.f32 %v9221_v41, %v4367_v43  ;;  %v9222_v13 = vld [vmem:[#allocation42_spill] sm:$0xff] }
 0x9d1   :  { %v5647_v52 = vadd.f32 %v5646_v21, %v5645_v34  ;;  %v9018_v34 = vsub.f32 %v9222_v13, %v4367_v43  ;;  %v5666_v21 = vld [vmem:[%s9103_s6] sm:$0x3]  ;;  %s7343_s6 = smov [#allocation14]  }
 0x9d2   :  { %s5857_s30 = sshll.u32 %s7343_s6, 4  ;;  %s5858_s30 = int_to_ptr.vmem [resolvable:$true] %s5857_s30 }
 0x9d3   :  { %5648 = vst.msk [vmem:[#allocation2 + $0x1] sm:$0x1] %vm7516_vm0, %v5647_v52  ;;  %v5649_v28 = vpack.c.bf16 %v5647_v52, %v5647_v52  ;;  %5840 = vst [vmem:[#allocation14] sm:$0x1] %v5647_v52  ;;  %v4370_v52 = vmul.f32 1.442695, %v9014_v55  ;;  %p7281_p10 = scmp.lt.s32.totalorder %s5858_s30, %s5858_s30 }
 0x9d4   :  { %s7276_s9 = scalar_lea.vmem %s5858_s30, 16  ;;  %s7280_s0 = scalar_lea.vmem %s5858_s30, 32 }
 0x9d5   :  { %5791 = vmatmul.mubr.bf16.vlgmr.msra.gmra.mrb[44].mxu1 %v5649_v28  ;;  %v4372_v28 = vmul.f32 1.442695, %v9018_v34  ;;  %p7277_p9 = scmp.ne.s32.totalorder %s5858_s30, %s7276_s9  ;;  %p7282_p11 = scmp.lt.s32.totalorder %s7280_s0, %s7276_s9 }
 0x9d7   :  { %p7283_p12 = por %p7282_p11, %p7281_p10 }
 0x9d9   :  { %p7284_p13 = pnand %p7283_p12, %p7277_p9 }
 0xa10   :  { %v5085_v44 = vpop.xlane.xlu0 %5084 }
 0xa11   :  { %v8961_v1 = vsub.f32 %v8936_v9, %v5085_v44  ;;  %v8964_v8 = vsub.f32 %v8938_v37, %v5085_v44  ;;  %v5751_v44 = vrot.slane %v5666_v21, %v7596_v14 }
 0xa13   :  { %v5088_v17 = vmul.f32 1.442695, %v8961_v1  ;;  %v5090_v19 = vmul.f32 1.442695, %v8964_v8 }
 0xa14   :  { %v787_v30 = vpop.xlane.xlu0 %786 }
 0xa15   :  { %7127 = vpow2.f32 %v5088_v17  ;;  %v5755_v17 = vrot.slane %v5666_v21, %v7566_v54 }
 0xa16   :  { %7129 = vpow2.f32 %v5090_v19 }
 0xa17   :  { %7131 = vlog2.f32 %v787_v30 }
 0xa18   :  { %v2224_v35 = vpop.xlane.xlu0 %2223 }
 0xa19   :  { %7133 = vlog2.f32 %v2224_v35 }
 0xa1c   :  { %v3660_v5 = vpop.xlane.xlu0 %3659 }
 0xa1d   :  { %7135 = vlog2.f32 %v3660_v5 }
 0xa1f   :  { %v7128_v22 = vpop.eup %7127 }
 0xa20   :  { %v7130_v9 = vpop.eup %7129  ;;  %v5092_v37 = vsel %vm771_vm1, %v7128_v22, 0.0 }
 0xa21   :  { %v7132_v11 = vpop.eup %7131  ;;  %v5093_v58 = vsel %vm771_vm1, %v7130_v9, 0.0 }
 0xa22   :  { %v789_v0 = vmul.f32 0.6931472, %v7132_v11  ;;  %v5094_v63 = vadd.f32 %v5093_v58, %v5092_v37 }
 0xa23   :  { %v7134_v61 = vpop.eup %7133 }
 0xa24   :  { %v790_v31 = vsub.f32 %v8906_v16, %v789_v0  ;;  %v791_v32 = vsub.f32 %v8909_v29, %v789_v0  ;;  %v2226_v49 = vmul.f32 0.6931472, %v7134_v61  ;;  %5095 = vadd.xlane.f32.xlu0 %v5094_v63 }
 0xa26   :  { %v794_v20 = vcombine.low %v790_v31, %v791_v32  ;;  %v2227_v33 = vsub.f32 %v8915_v39, %v2226_v49  ;;  %v2228_v26 = vsub.f32 %v8919_v15, %v2226_v49 }
 0xa27   :  { %v7136_v47 = vpop.eup %7135 }
 0xa28   :  { %v801_v38 = vrot.slane %v794_v20, %v8971_v23  ;;  %v2231_v27 = vcombine.low %v2227_v33, %v2228_v26  ;;  %v3662_v24 = vmul.f32 0.6931472, %v7136_v47 }
 0xa2a   :  { %v808_v16 = vrot.slane %v801_v38, %v8971_v23  ;;  %v2238_v29 = vrot.slane %v2231_v27, %v8971_v23  ;;  %v3663_v48 = vsub.f32 %v8923_v10, %v3662_v24  ;;  %v3664_v39 = vsub.f32 %v8927_v2, %v3662_v24  ;;  %v9217_v10 = vld [vmem:[#allocation32_spill] sm:$0xff]  ;;  %v9218_v2 = vld [vmem:[#allocation33_spill] sm:$0xff] }
 0xa2b   :  { %v8998_v45 = vsub.f32 %v9217_v10, %v8911_v42  ;;  %v9002_v60 = vsub.f32 %v9218_v2, %v8911_v42  ;;  %v2936_v42 = vmul.f32 1.442695, %v9010_v51 }
 0xa2c   :  { %812 = vst.msk [vmem:[#allocation13] ss:$8 sm:$0x3] %vm8979_vm2, %v808_v16  ;;  %v2245_v15 = vrot.slane %v2238_v29, %v8971_v23  ;;  %v3667_v6 = vcombine.low %v3663_v48, %v3664_v39 }
 0xa2d   :  { %v1498_v7 = vmul.f32 1.442695, %v8998_v45  ;;  %v1500_v36 = vmul.f32 1.442695, %v9002_v60 }
 0xa2e   :  { %2248 = vst.msk [vmem:[#allocation13 + $0x2] ss:$8 sm:$0x3] %vm8979_vm2, %v2245_v15  ;;  %v3674_v3 = vrot.slane %v3667_v6, %v8971_v23 }
 0xa2f   :  { %7137 = vpow2.f32 %v1498_v7 }
 0xa30   :  { %v3681_v12 = vrot.slane %v3674_v3, %v8971_v23  ;;  %7139 = vpow2.f32 %v1500_v36 }
 0xa31   :  { %7141 = vpow2.f32 %v2934_v25 }
 0xa32   :  { %3684 = vst.msk [vmem:[#allocation13 + $0x4] ss:$8 sm:$0x3] %vm8979_vm2, %v3681_v12  ;;  %7143 = vpow2.f32 %v2936_v42 }
 0xa33   :  { %7145 = vpow2.f32 %v4370_v52 }
 0xa34   :  { %7147 = vpow2.f32 %v4372_v28 }
 0xa39   :  { %v7138_v57 = vpop.eup %7137 }
 0xa3a   :  { %v7140_v22 = vpop.eup %7139  ;;  %v1502_v14 = vsel %vm771_vm1, %v7138_v57, 0.0 }
 0xa3b   :  { %v7142_v58 = vpop.eup %7141  ;;  %v1503_v54 = vsel %vm771_vm1, %v7140_v22, 0.0 }
 0xa3c   :  { %v7144_v0 = vpop.eup %7143  ;;  %v1504_v61 = vadd.f32 %v1503_v54, %v1502_v14  ;;  %v2938_v31 = vsel %vm771_vm1, %v7142_v58, 0.0 }
 0xa3d   :  { %v7146_v18 = vpop.eup %7145  ;;  %v2939_v32 = vsel %vm771_vm1, %v7144_v0, 0.0 }
 0xa3e   :  { %v7148_v49 = vpop.eup %7147  ;;  %v2940_v20 = vadd.f32 %v2939_v32, %v2938_v31  ;;  %v4374_v33 = vsel %vm771_vm1, %v7146_v18, 0.0 }
 0xa3f   :  { %v4375_v26 = vsel %vm771_vm1, %v7148_v49, 0.0 }
 0xa40   :  { %v4376_v47 = vadd.f32 %v4375_v26, %v4374_v33 }
 0xaa8   :  { %v5792_v19 = vpop.f32.mrb[44].mxu1 }
 0xaa9   :  { %v5793_v30 = vadd.f32 %v5792_v19, %v5751_v44  ;;  %v5794_v35 = vpop.f32.mrb[45].mxu1 }
 0xaaa   :  { %v5795_v46 = vadd.f32 %v5794_v35, %v5755_v17  ;;  %v5796_v5 = vpop.f32.mrb[46].mxu1 }
 0xaab   :  { %v5797_v9 = vpop.f32.mrb[47].mxu1  ;;  %v5799_v62 = vsel %vm771_vm1, %v5793_v30, -inf }
 0xaac   :  { %v5800_v37 = vsel %vm771_vm1, %v5795_v46, -inf }
 0xaad   :  { %v5801_v11 = vmax.f32 %v5799_v62, %v5800_v37 }
 0xaaf   :  { %5802 = vmax.xlane.f32.xlu1 %v5801_v11 }
 0xab1   :  { %v5096_v63 = vpop.xlane.xlu0 %5095 }
 0xab2   :  { %7149 = vlog2.f32 %v5096_v63 }
 0xab3   :  { %1505 = vadd.xlane.f32.xlu1 %v1504_v61 }
 0xab7   :  { %2941 = vadd.xlane.f32.xlu1 %v2940_v20 }
 0xabb   :  { %4377 = vadd.xlane.f32.xlu1 %v4376_v47 }
 0xabc   :  { %v7150_v38 = vpop.eup %7149 }
 0xabd   :  { %v5098_v27 = vmul.f32 0.6931472, %v7150_v38 }
 0xabf   :  { %v5099_v24 = vsub.f32 %v8961_v1, %v5098_v27  ;;  %v5100_v59 = vsub.f32 %v8964_v8, %v5098_v27 }
 0xac1   :  { %v5103_v16 = vcombine.low %v5099_v24, %v5100_v59 }
 0xac3   :  { %v5110_v29 = vrot.slane %v5103_v16, %v8971_v23 }
 0xac5   :  { %v5117_v48 = vrot.slane %v5110_v29, %v8971_v23 }
 0xac7   :  { %5120 = vst.msk [vmem:[#allocation13 + $0x6] ss:$8 sm:$0x3] %vm8979_vm2, %v5117_v48 }
 0xb3c   :  { %v5803_v39 = vpop.xlane.xlu1 %5802 }
 0xb3d   :  { %v9041_v15 = vsub.f32 %v5793_v30, %v5803_v39  ;;  %v9043_v6 = vsub.f32 %v5795_v46, %v5803_v39 }
 0xb3f   :  { %v5806_v3 = vmul.f32 1.442695, %v9041_v15  ;;  %v5808_v12 = vmul.f32 1.442695, %v9043_v6 }
 0xb40   :  { %v1506_v1 = vpop.xlane.xlu1 %1505 }
 0xb41   :  { %7151 = vpow2.f32 %v5806_v3 }
 0xb42   :  { %7153 = vpow2.f32 %v5808_v12 }
 0xb43   :  { %7155 = vlog2.f32 %v1506_v1 }
 0xb44   :  { %v2942_v8 = vpop.xlane.xlu1 %2941 }
 0xb45   :  { %7157 = vlog2.f32 %v2942_v8 }
 0xb48   :  { %v4378_v10 = vpop.xlane.xlu1 %4377 }
 0xb49   :  { %7159 = vlog2.f32 %v4378_v10 }
 0xb4b   :  { %v7152_v2 = vpop.eup %7151 }
 0xb4c   :  { %v7154_v50 = vpop.eup %7153  ;;  %v5810_v7 = vsel %vm771_vm1, %v7152_v2, 0.0 }
 0xb4d   :  { %v7156_v53 = vpop.eup %7155  ;;  %v5811_v36 = vsel %vm771_vm1, %v7154_v50, 0.0 }
 0xb4e   :  { %v1508_v4 = vmul.f32 0.6931472, %v7156_v53  ;;  %v5812_v43 = vadd.f32 %v5811_v36, %v5810_v7 }
 0xb4f   :  { %v7158_v25 = vpop.eup %7157 }
 0xb50   :  { %v1509_v41 = vsub.f32 %v8998_v45, %v1508_v4  ;;  %v1510_v42 = vsub.f32 %v9002_v60, %v1508_v4  ;;  %v2944_v13 = vmul.f32 0.6931472, %v7158_v25  ;;  %5813 = vadd.xlane.f32.xlu1 %v5812_v43 }
 0xb52   :  { %v1513_v21 = vcombine.low %v1509_v41, %v1510_v42  ;;  %v2945_v52 = vsub.f32 %v9006_v40, %v2944_v13  ;;  %v2946_v28 = vsub.f32 %v9010_v51, %v2944_v13 }
 0xb53   :  { %v7160_v44 = vpop.eup %7159 }
 0xb54   :  { %v1520_v17 = vrot.slane %v1513_v21, %v8971_v23  ;;  %v2949_v19 = vcombine.low %v2945_v52, %v2946_v28  ;;  %v4380_v30 = vmul.f32 0.6931472, %v7160_v44 }
 0xb56   :  { %v1527_v35 = vrot.slane %v1520_v17, %v8971_v23  ;;  %v2956_v57 = vrot.slane %v2949_v19, %v8971_v23  ;;  %v4381_v45 = vsub.f32 %v9014_v55, %v4380_v30  ;;  %v4382_v60 = vsub.f32 %v9018_v34, %v4380_v30 }
 0xb58   :  { %1530 = vst.msk [vmem:[#allocation13 + $0x1] ss:$8 sm:$0x3] %vm8979_vm2, %v1527_v35  ;;  %v2963_v40 = vrot.slane %v2956_v57, %v8971_v23  ;;  %v4385_v46 = vcombine.low %v4381_v45, %v4382_v60 }
 0xb5a   :  { %2966 = vst.msk [vmem:[#allocation13 + $0x3] ss:$8 sm:$0x3] %vm8979_vm2, %v2963_v40  ;;  %v4392_v51 = vrot.slane %v4385_v46, %v8971_v23 }
 0xb5c   :  { %v4399_v5 = vrot.slane %v4392_v51, %v8971_v23 }
 0xb5e   :  { %4402 = vst.msk [vmem:[#allocation13 + $0x5] ss:$8 sm:$0x3] %vm8979_vm2, %v4399_v5 }
 0xb5f   :  { %7287 = shalt.err (!%p7284_p13)
}
 0xb60   :  { %s7288_s3 = scalar_lea.hbm %s9105_s8, 16 }
 0xb61   :  { %p7289_p0 = scmp.ne.s32.totalorder %s9105_s8, %s7288_s3  ;;  %p7292_p1 = scmp.lt.u32.totalorder %s7288_s3, %s9105_s8 }
 0xb63   :  { %p7294_p2 = pnand %p7292_p1, %p7289_p0 }
 0xb65   :  { %7297 = shalt.err (!%p7294_p2)
}
 0xb66   :  { %5860 = dma.vmem_to_hbm [thread:$0]  %s5858_s30, 16, %s9105_s8, [#allocation15]  }
 0xb67   :  { %s7344_s17 = smov [#allocation13]  }
 0xb68   :  { %s5847_s18 = sshll.u32 %s7344_s17, 4  ;;  %s5848_s18 = int_to_ptr.vmem [resolvable:$true] %s5847_s18 }
 0xb69   :  { %s7298_s8 = scalar_lea.vmem %s5848_s18, 256  ;;  %p7303_p4 = scmp.lt.s32.totalorder %s5848_s18, %s5848_s18 }
 0xb6a   :  { %p7299_p3 = scmp.ne.s32.totalorder %s5848_s18, %s7298_s8  ;;  %p7304_p5 = scmp.lt.s32.totalorder %s7298_s8, %s7298_s8 }
 0xb6c   :  { %p7305_p6 = por %p7304_p5, %p7303_p4 }
 0xb6e   :  { %p7306_p7 = pnand %p7305_p6, %p7299_p3 }
 0xbdd   :  { %v5814_v55 = vpop.xlane.xlu1 %5813 }
 0xbde   :  { %7161 = vlog2.f32 %v5814_v55 }
 0xbe8   :  { %v7162_v34 = vpop.eup %7161 }
 0xbe9   :  { %v5816_v22 = vmul.f32 0.6931472, %v7162_v34 }
 0xbeb   :  { %v5817_v9 = vsub.f32 %v9041_v15, %v5816_v22  ;;  %v5818_v62 = vsub.f32 %v9043_v6, %v5816_v22 }
 0xbed   :  { %v5821_v37 = vcombine.low %v5817_v9, %v5818_v62 }
 0xbef   :  { %v5828_v11 = vrot.slane %v5821_v37, %v8971_v23 }
 0xbf1   :  { %v5835_v58 = vrot.slane %v5828_v11, %v8971_v23 }
 0xbf3   :  { %5838 = vst.msk [vmem:[#allocation13 + $0x7] ss:$8 sm:$0x3] %vm8979_vm2, %v5835_v58 }
 0xbf4   :  { %7309 = shalt.err (!%p7306_p7)
}
 0xbf5   :  { %s7310_s21 = scalar_lea.hbm %s9104_s7, 256 }
 0xbf6   :  { %p7311_p8 = scmp.ne.s32.totalorder %s9104_s7, %s7310_s21  ;;  %p7314_p9 = scmp.lt.u32.totalorder %s7310_s21, %s9104_s7 }
 0xbf8   :  { %p7316_p10 = pnand %p7314_p9, %p7311_p8 }
 0xbfa   :  { %7319 = shalt.err (!%p7316_p10)
}
 0xbfb   :  { %5850 = dma.vmem_to_hbm [thread:$0]  %s5848_s18, 256, %s9104_s7, [#allocation7]  }
 0xbfc   :  { %7328 = dma.done.wait [#allocation7], 256  }
 0xbfd   :  { %7329 = vsyncadd [#allocation7], 4294967040 }
 0xbfe   :  { %7330 = dma.done.wait [#allocation15], 16  }
 0xbff   :  { %7331 = vsyncadd [#allocation15], 4294967280 }
 0xc00   :  { %5867 = vsyncpa [#allocation6], 1 }
 0xc01   :  { %5868 = vsyncpa [#allocation9], 1 }
 0xc02   :  { %5869 = vsyncpa [#allocation12], 1 }
 0xc03   :  { %5870 = vsyncpa [#allocation7], 1 }
 0xc04   :  { %5871 = vsyncpa [#allocation15], 1 }

</bundles_post_ra>
